<compile_context>
chip_gen: v7x
topology: tpu7x:2x2x1
jax: 0.10.0
libtpu: 0.0.40
codegen_flags: <defaults>
</compile_context>

<pallas_src>
import functools

import jax
import jax.numpy as jnp
from jax import lax
from jax.experimental import pallas as pl
from jax.experimental.pallas import tpu as pltpu


def _split_channels(channels, num_groups):
    split = [channels // num_groups for _ in range(num_groups)]
    split[0] += channels - sum(split)
    return split


# -----------------------------------------------------------------------------
# Kernel: one image per grid step.  Everything lane-dense; 2 MXU matmuls total.
# -----------------------------------------------------------------------------
def _double_blaze_kernel(H, W, Ho, Wo, S, C, M, O,
                         x_ref, dwa_ref, w1_ref, b1_ref, wb_ref, b2_ref,
                         o_ref, xpad, mpad, pan):
    # x_ref : (H, W*C)              lane-dense input image (N squeezed)
    # dwa_ref: (25, W*C)            depthwise tap weights, BN1-scale folded, W-tiled
    # w1_ref: (W*C, Wo*M)           block-diag 1x1 weight (BN2 + stride folded)
    # b1_ref: (1, Wo*M)             fused stage-A bias (BN1 shift + b1 + BN2)
    # wb_ref: (25*Wo*M, Wo*O)       stacked block-diag W5*BN3*W2*BN4 weight
    # b2_ref: (1, Wo*O)             fused stage-B bias
    # o_ref : (Ho, Wo*O)            lane-dense output
    # xpad  : (H+4, (W+4)*C)        VMEM scratch (pad=2 input)
    # mpad  : (Ho+4, (Wo+4)*M)      VMEM scratch (pad=2 mid activation)
    # pan   : (Ho, 25*Wo*M)         VMEM scratch (lane-dense im2col panel)
    f32 = jnp.float32
    PXW = (W + 4) * C
    PMW = (Wo + 4) * M

    # ---- padded input (pad=2): zero only the 2-wide halo ---------------------
    xpad[0:2, :] = jnp.zeros((2, PXW), f32)
    xpad[H + 2:H + 4, :] = jnp.zeros((2, PXW), f32)
    xpad[:, 0:2 * C] = jnp.zeros((H + 4, 2 * C), f32)
    xpad[:, (W + 2) * C:PXW] = jnp.zeros((H + 4, 2 * C), f32)
    xpad[2:2 + H, 2 * C:(2 + W) * C] = x_ref[...]
    xp = xpad[...]

    # ---- stage A depthwise: 25 lane-dense VPU FMAs (full input resolution) ---
    dwa = dwa_ref[...]
    acc = xp[0:H, 0:W * C] * dwa[0]
    for dy in range(5):
        for dx in range(5):
            k = dy * 5 + dx
            if k == 0:
                continue
            acc = acc + xp[dy:dy + H, dx * C:(dx + W) * C] * dwa[k]
    if S != 1:                                     # stride: subsample output rows
        acc = acc[0:S * (Ho - 1) + 1:S, :]         # (Ho, W*C)

    # ---- stage A 1x1 (+BN2 + BN1-shift + W-stride) as ONE block-diag matmul --
    y = jnp.dot(acc, w1_ref[...], preferred_element_type=f32) + b1_ref[...]
    y = jnp.maximum(y, 0.0)                        # (Ho, Wo*M), ReLU

    # ---- padded mid activation (pad=2): zero only the halo --------------------
    mpad[0:2, :] = jnp.zeros((2, PMW), f32)
    mpad[Ho + 2:Ho + 4, :] = jnp.zeros((2, PMW), f32)
    mpad[:, 0:2 * M] = jnp.zeros((Ho + 4, 2 * M), f32)
    mpad[:, (Wo + 2) * M:PMW] = jnp.zeros((Ho + 4, 2 * M), f32)
    mpad[2:2 + Ho, 2 * M:(2 + Wo) * M] = y
    mp = mpad[...]

    # ---- stage B: lane-dense im2col panel (25 aligned full-lane copies) ------
    for dy in range(5):
        for dx in range(5):
            k = dy * 5 + dx
            pan[:, k * Wo * M:(k + 1) * Wo * M] = mp[dy:dy + Ho,
                                                     dx * M:(dx + Wo) * M]
    # ---- stage B: 5x5*BN3*1x1*BN4 as ONE MXU matmul (K = 25*Wo*M) ------------
    y2 = jnp.dot(pan[...], wb_ref[...], preferred_element_type=f32) + b2_ref[...]

    # ---- hswish: x * relu6(x+3)/6, lane-dense store ---------------------------
    y2 = y2 * jnp.clip(y2 + 3.0, 0.0, 6.0) * (1.0 / 6.0)
    o_ref[...] = y2


# -----------------------------------------------------------------------------
# Parameter folding: eval-mode BN + biases + cross-layer fusion + lane layout.
# -----------------------------------------------------------------------------
def _fold_params(p, W, Wo, stride, eps=1e-5):
    def sb(g, b, m, v):
        s = g / jnp.sqrt(v + eps)
        return s, b - m * s

    s1, t1 = sb(p['g1'], p['be1'], p['m1'], p['v1'])
    s2, t2 = sb(p['g2'], p['be2'], p['m2'], p['v2'])
    s3, t3 = sb(p['g3'], p['be3'], p['m3'], p['v3'])
    s4, t4 = sb(p['g4'], p['be4'], p['m4'], p['v4'])

    C = p['g1'].shape[0]
    C0 = p['w3'].shape[-1]
    M = p['w1'].shape[1]
    O = p['w2'].shape[1]

    # Mixed depthwise: 3x3 group embedded in the centre of a 5x5 kernel; BN1
    # scale folded into the tap weights, lane-tiled along W.
    wdw = jnp.zeros((5, 5, C), jnp.float32)
    wdw = wdw.at[1:4, 1:4, :C0].set(p['w3'])
    wdw = wdw.at[:, :, C0:].set(p['w5dw'])
    wdw = wdw * s1
    dwa = jnp.tile(wdw.reshape(25, C), (1, W))                    # (25, W*C)

    # Stage A 1x1: BN2 folded on outputs; BN1 shift folded into the bias.
    w1f = p['w1'] * s2[None, :]                                   # (C, M)
    b1f = t1 @ w1f + p['b1'] * s2 + t2                            # (M,)
    # Block-diagonal + stride-subsampling weight: (W*C, Wo*M).
    sel = jnp.zeros((Wo, W), jnp.float32)
    sel = sel.at[jnp.arange(Wo), stride * jnp.arange(Wo)].set(1.0)
    w1bd = jnp.einsum('ow,cm->wcom', sel, w1f).reshape(W * C, Wo * M)
    b1t = jnp.tile(b1f, Wo).reshape(1, Wo * M)

    # Stage B: (5x5 * BN3) fused with (1x1 * BN4):  Wb[k] = W5'[k] @ W2'.
    w5f = p['w5'] * s3                                            # (5,5,M,M)
    b5f = p['b5'] * s3 + t3
    w2f = p['w2'] * s4[None, :]                                   # (M, O)
    b2f = p['b2'] * s4 + t4
    wb = jnp.einsum('kmi,io->kmo', w5f.reshape(25, M, M), w2f)    # (25, M, O)
    bb = b5f @ w2f + b2f                                          # (O,)
    # Stacked block-diagonal weight for the single stage-B matmul.
    wbbd = jnp.einsum('wx,kmo->kwmxo', jnp.eye(Wo, dtype=jnp.float32),
                      wb).reshape(25 * Wo * M, Wo * O)
    b2t = jnp.tile(bb, Wo).reshape(1, Wo * O)
    return dwa, w1bd, b1t, wbbd, b2t


# -----------------------------------------------------------------------------
# Wrapper: NCHW in -> NCHW out.
# -----------------------------------------------------------------------------
def double_blaze_block_pallas(x_nchw, params, stride=1):
    N, C, H, W = x_nchw.shape
    M = params['w1'].shape[1]
    O = params['w2'].shape[1]
    Ho = (H - 1) // stride + 1
    Wo = (W - 1) // stride + 1

    # NCHW -> lane-dense (N, H, W*C)
    x2d = jnp.transpose(x_nchw, (0, 2, 3, 1)).astype(jnp.float32)
    x2d = x2d.reshape(N, H, W * C)
    dwa, w1bd, b1t, wbbd, b2t = _fold_params(params, W, Wo, stride)
    # TODO(synk): on v6e/v7x, cast x2d/w1bd/wbbd to bfloat16 (keeping f32
    # accumulation) to halve DMA/VMEM bytes; kept f32 to hold the 1e-3 check.

    kernel = functools.partial(_double_blaze_kernel,
                               H, W, Ho, Wo, stride, C, M, O)

    def const(shape):
        nd = len(shape)
        return pl.BlockSpec(shape, lambda n: (0,) * nd)

    out = pl.pallas_call(
        kernel,
        out_shape=jax.ShapeDtypeStruct((N, Ho, Wo * O), jnp.float32),
        grid=(N,),
        in_specs=[
            pl.BlockSpec((None, H, W * C), lambda n: (n, 0, 0)),   # per-image x
            const(dwa.shape), const(w1bd.shape), const(b1t.shape),
            const(wbbd.shape), const(b2t.shape),
        ],
        out_specs=pl.BlockSpec((None, Ho, Wo * O), lambda n: (n, 0, 0)),
        scratch_shapes=[
            pltpu.VMEM((H + 4, (W + 4) * C), jnp.float32),
            pltpu.VMEM((Ho + 4, (Wo + 4) * M), jnp.float32),
            pltpu.VMEM((Ho, 25 * Wo * M), jnp.float32),
        ],
        compiler_params=pltpu.CompilerParams(
            dimension_semantics=("parallel",)),
    )(x2d, dwa, w1bd, b1t, wbbd, b2t)

    out = out.reshape(N, Ho, Wo, O)                   # un-flatten lane-dense
    return jnp.transpose(out, (0, 3, 1, 2))           # back to NCHW


# -----------------------------------------------------------------------------
# Pure-JAX reference (mirrors the PyTorch forward, eval-mode BN), NCHW io.
# -----------------------------------------------------------------------------
def double_blaze_block_ref(x_nchw, p, stride=1, eps=1e-5):
    x = jnp.transpose(x_nchw, (0, 2, 3, 1)).astype(jnp.float32)
    dn = ('NHWC', 'HWIO', 'NHWC')

    def bn(y, g, b, m, v):
        return (y - m) / jnp.sqrt(v + eps) * g + b

    C0 = p['w3'].shape[-1]
    C1 = p['w5dw'].shape[-1]
    x0, x1 = x[..., :C0], x[..., C0:]
    y0 = lax.conv_general_dilated(x0, p['w3'][:, :, None, :], (stride, stride),
                                  [(1, 1), (1, 1)], dimension_numbers=dn,
                                  feature_group_count=C0)
    y1 = lax.conv_general_dilated(x1, p['w5dw'][:, :, None, :], (stride, stride),
                                  [(2, 2), (2, 2)], dimension_numbers=dn,
                                  feature_group_count=C1)
    y = jnp.concatenate([y0, y1], axis=-1)
    y = bn(y, p['g1'], p['be1'], p['m1'], p['v1'])
    y = jnp.einsum('nhwc,cm->nhwm', y, p['w1']) + p['b1']
    y = bn(y, p['g2'], p['be2'], p['m2'], p['v2'])
    y = jnp.maximum(y, 0.0)
    y = lax.conv_general_dilated(y, p['w5'], (1, 1), [(2, 2), (2, 2)],
                                 dimension_numbers=dn) + p['b5']
    y = bn(y, p['g3'], p['be3'], p['m3'], p['v3'])
    y = jnp.einsum('nhwm,mo->nhwo', y, p['w2']) + p['b2']
    y = bn(y, p['g4'], p['be4'], p['m4'], p['v4'])
    y = y * jnp.clip(y + 3.0, 0.0, 6.0) / 6.0
    return jnp.transpose(y, (0, 3, 1, 2))


if __name__ == "__main__":
    N, C, H, W = 2, 4, 16, 16          # in_channels = 4
    M, O = 8, 8                        # mid_channels = 8, out_channels = 8
    stride = 1
    C0, C1 = _split_channels(C, 2)     # MDConv kernel_size=[3, 5] -> [2, 2]

    key = jax.random.PRNGKey(0)
    ks = jax.random.split(key, 26)

    def nrm(k, shape, scale=0.2):
        return scale * jax.random.normal(k, shape, dtype=jnp.float32)

    params = dict(
        # mixed depthwise weights (HW, per-channel layout)
        w3=nrm(ks[0], (3, 3, C0)),
        w5dw=nrm(ks[1], (5, 5, C1)),
        # BN1 (in_channels)
        g1=1.0 + 0.1 * jax.random.normal(ks[2], (C,), dtype=jnp.float32),
        be1=nrm(ks[3], (C,)), m1=nrm(ks[4], (C,)),
        v1=0.5 + jax.random.uniform(ks[5], (C,), dtype=jnp.float32),
        # 1x1 conv in->mid
        w1=nrm(ks[6], (C, M)), b1=nrm(ks[7], (M,)),
        # BN2 (mid)
        g2=1.0 + 0.1 * jax.random.normal(ks[8], (M,), dtype=jnp.float32),
        be2=nrm(ks[9], (M,)), m2=nrm(ks[10], (M,)),
        v2=0.5 + jax.random.uniform(ks[11], (M,), dtype=jnp.float32),
        # 5x5 conv mid->mid (HWIO)
        w5=nrm(ks[12], (5, 5, M, M)), b5=nrm(ks[13], (M,)),
        # BN3 (mid)
        g3=1.0 + 0.1 * jax.random.normal(ks[14], (M,), dtype=jnp.float32),
        be3=nrm(ks[15], (M,)), m3=nrm(ks[16], (M,)),
        v3=0.5 + jax.random.uniform(ks[17], (M,), dtype=jnp.float32),
        # 1x1 conv mid->out
        w2=nrm(ks[18], (M, O)), b2=nrm(ks[19], (O,)),
        # BN4 (out)
        g4=1.0 + 0.1 * jax.random.normal(ks[20], (O,), dtype=jnp.float32),
        be4=nrm(ks[21], (O,)), m4=nrm(ks[22], (O,)),
        v4=0.5 + jax.random.uniform(ks[23], (O,), dtype=jnp.float32),
    )

    x = jax.random.normal(ks[24], (N, C, H, W), dtype=jnp.float32)

    out = double_blaze_block_pallas(x, params, stride=stride)
    out = jax.block_until_ready(out)

    ref = double_blaze_block_ref(x, params, stride=stride)
    assert out.shape == ref.shape == (N, O, (H - 1) // stride + 1,
                                      (W - 1) // stride + 1)
    err = float(jnp.max(jnp.abs(out - ref)))
    if not bool(jnp.all(jnp.isfinite(out))) or err > 1e-3:
        raise SystemExit(f"MISMATCH max_abs_err={err}")
    print("KERNEL_OK")
</pallas_src>

<mosaic_0001>
module attributes {stable_mosaic.version = 11 : i64} {
  func.func @_double_blaze_kernel(%arg0: i32, %arg1: memref<1x16x64xf32, #tpu.memory_space<vmem>>, %arg2: memref<25x64xf32, #tpu.memory_space<vmem>>, %arg3: memref<64x128xf32, #tpu.memory_space<vmem>>, %arg4: memref<1x128xf32, #tpu.memory_space<vmem>>, %arg5: memref<3200x128xf32, #tpu.memory_space<vmem>>, %arg6: memref<1x128xf32, #tpu.memory_space<vmem>>, %arg7: memref<1x16x128xf32, #tpu.memory_space<vmem>>, %arg8: memref<20x80xf32, #tpu.memory_space<vmem>>, %arg9: memref<20x160xf32, #tpu.memory_space<vmem>>, %arg10: memref<16x3200xf32, #tpu.memory_space<vmem>>) attributes {dimension_semantics = [#tpu.dimension_semantics<parallel>], iteration_bounds = array<i64: 2>, scalar_prefetch = 0 : i64, scratch_operands = 3 : i64, tpu.core_type = #tpu.core_type<tc>, window_params = [{transform_indices = @transform_0, window_bounds = array<i64: 1, 16, 64>}, {pipeline_mode = #tpu.pipeline_mode<synchronous>, transform_indices = @transform_1, window_bounds = array<i64: 25, 64>}, {pipeline_mode = #tpu.pipeline_mode<synchronous>, transform_indices = @transform_2, window_bounds = array<i64: 64, 128>}, {pipeline_mode = #tpu.pipeline_mode<synchronous>, transform_indices = @transform_3, window_bounds = array<i64: 1, 128>}, {pipeline_mode = #tpu.pipeline_mode<synchronous>, transform_indices = @transform_4, window_bounds = array<i64: 3200, 128>}, {pipeline_mode = #tpu.pipeline_mode<synchronous>, transform_indices = @transform_5, window_bounds = array<i64: 1, 128>}, {transform_indices = @transform_6, window_bounds = array<i64: 1, 16, 128>}]} {
    %cst = arith.constant 0.000000e+00 : f32
    %0 = vector.broadcast %cst : f32 to vector<2x80xf32>
    %c0 = arith.constant 0 : index
    %c0_0 = arith.constant 0 : index
    %1 = vector.load %arg8[%c0, %c0_0] : memref<20x80xf32, #tpu.memory_space<vmem>>, vector<2x80xf32>
    tpu.vector_store %arg8[%c0, %c0_0], %0 {strides = array<i32>} : memref<20x80xf32, #tpu.memory_space<vmem>>, vector<2x80xf32>,
    %cst_1 = arith.constant 0.000000e+00 : f32
    %2 = vector.broadcast %cst_1 : f32 to vector<2x80xf32>
    %c18 = arith.constant 18 : index
    %c0_2 = arith.constant 0 : index
    %3 = vector.load %arg8[%c18, %c0_2] : memref<20x80xf32, #tpu.memory_space<vmem>>, vector<2x80xf32>
    tpu.vector_store %arg8[%c18, %c0_2], %2 {strides = array<i32>} : memref<20x80xf32, #tpu.memory_space<vmem>>, vector<2x80xf32>,
    %cst_3 = arith.constant 0.000000e+00 : f32
    %4 = vector.broadcast %cst_3 : f32 to vector<20x8xf32>
    %c0_4 = arith.constant 0 : index
    %c0_5 = arith.constant 0 : index
    %5 = vector.load %arg8[%c0_4, %c0_5] : memref<20x80xf32, #tpu.memory_space<vmem>>, vector<20x8xf32>
    tpu.vector_store %arg8[%c0_4, %c0_5], %4 {strides = array<i32>} : memref<20x80xf32, #tpu.memory_space<vmem>>, vector<20x8xf32>,
    %cst_6 = arith.constant 0.000000e+00 : f32
    %6 = vector.broadcast %cst_6 : f32 to vector<20x8xf32>
    %c0_7 = arith.constant 0 : index
    %c72 = arith.constant 72 : index
    %7 = vector.load %arg8[%c0_7, %c72] : memref<20x80xf32, #tpu.memory_space<vmem>>, vector<20x8xf32>
    tpu.vector_store %arg8[%c0_7, %c72], %6 {strides = array<i32>} : memref<20x80xf32, #tpu.memory_space<vmem>>, vector<20x8xf32>,
    %c0_8 = arith.constant 0 : index
    %c0_9 = arith.constant 0 : index
    %c0_10 = arith.constant 0 : index
    %8 = vector.load %arg1[%c0_8, %c0_9, %c0_10] : memref<1x16x64xf32, #tpu.memory_space<vmem>>, vector<1x16x64xf32>
    %9 = vector.shape_cast %8 : vector<1x16x64xf32> to vector<16x64xf32>
    %c2 = arith.constant 2 : index
    %c8 = arith.constant 8 : index
    %10 = vector.load %arg8[%c2, %c8] : memref<20x80xf32, #tpu.memory_space<vmem>>, vector<16x64xf32>
    tpu.vector_store %arg8[%c2, %c8], %9 {strides = array<i32>} : memref<20x80xf32, #tpu.memory_space<vmem>>, vector<16x64xf32>,
    %c0_11 = arith.constant 0 : index
    %c0_12 = arith.constant 0 : index
    %11 = vector.load %arg8[%c0_11, %c0_12] : memref<20x80xf32, #tpu.memory_space<vmem>>, vector<20x80xf32>
    %c0_13 = arith.constant 0 : index
    %c0_14 = arith.constant 0 : index
    %12 = vector.load %arg2[%c0_13, %c0_14] : memref<25x64xf32, #tpu.memory_space<vmem>>, vector<25x64xf32>
    %13 = vector.extract_strided_slice %11 {offsets = [0, 0], sizes = [16, 64], strides = [1, 1]} : vector<20x80xf32> to vector<16x64xf32>
    %14 = vector.extract_strided_slice %12 {offsets = [0, 0], sizes = [1, 64], strides = [1, 1]} : vector<25x64xf32> to vector<1x64xf32>
    %15 = vector.shape_cast %14 : vector<1x64xf32> to vector<64xf32>
    %16 = vector.shape_cast %15 : vector<64xf32> to vector<1x64xf32>
    %17 = vector.broadcast %16 : vector<1x64xf32> to vector<16x64xf32>
    %18 = arith.mulf %13, %17 : vector<16x64xf32>
    %19 = vector.extract_strided_slice %11 {offsets = [0, 4], sizes = [16, 64], strides = [1, 1]} : vector<20x80xf32> to vector<16x64xf32>
    %20 = vector.extract_strided_slice %12 {offsets = [1, 0], sizes = [1, 64], strides = [1, 1]} : vector<25x64xf32> to vector<1x64xf32>
    %21 = vector.shape_cast %20 : vector<1x64xf32> to vector<64xf32>
    %22 = vector.shape_cast %21 : vector<64xf32> to vector<1x64xf32>
    %23 = vector.broadcast %22 : vector<1x64xf32> to vector<16x64xf32>
    %24 = arith.mulf %19, %23 : vector<16x64xf32>
    %25 = arith.addf %18, %24 : vector<16x64xf32>
    %26 = vector.extract_strided_slice %11 {offsets = [0, 8], sizes = [16, 64], strides = [1, 1]} : vector<20x80xf32> to vector<16x64xf32>
    %27 = vector.extract_strided_slice %12 {offsets = [2, 0], sizes = [1, 64], strides = [1, 1]} : vector<25x64xf32> to vector<1x64xf32>
    %28 = vector.shape_cast %27 : vector<1x64xf32> to vector<64xf32>
    %29 = vector.shape_cast %28 : vector<64xf32> to vector<1x64xf32>
    %30 = vector.broadcast %29 : vector<1x64xf32> to vector<16x64xf32>
    %31 = arith.mulf %26, %30 : vector<16x64xf32>
    %32 = arith.addf %25, %31 : vector<16x64xf32>
    %33 = vector.extract_strided_slice %11 {offsets = [0, 12], sizes = [16, 64], strides = [1, 1]} : vector<20x80xf32> to vector<16x64xf32>
    %34 = vector.extract_strided_slice %12 {offsets = [3, 0], sizes = [1, 64], strides = [1, 1]} : vector<25x64xf32> to vector<1x64xf32>
    %35 = vector.shape_cast %34 : vector<1x64xf32> to vector<64xf32>
    %36 = vector.shape_cast %35 : vector<64xf32> to vector<1x64xf32>
    %37 = vector.broadcast %36 : vector<1x64xf32> to vector<16x64xf32>
    %38 = arith.mulf %33, %37 : vector<16x64xf32>
    %39 = arith.addf %32, %38 : vector<16x64xf32>
    %40 = vector.extract_strided_slice %11 {offsets = [0, 16], sizes = [16, 64], strides = [1, 1]} : vector<20x80xf32> to vector<16x64xf32>
    %41 = vector.extract_strided_slice %12 {offsets = [4, 0], sizes = [1, 64], strides = [1, 1]} : vector<25x64xf32> to vector<1x64xf32>
    %42 = vector.shape_cast %41 : vector<1x64xf32> to vector<64xf32>
    %43 = vector.shape_cast %42 : vector<64xf32> to vector<1x64xf32>
    %44 = vector.broadcast %43 : vector<1x64xf32> to vector<16x64xf32>
    %45 = arith.mulf %40, %44 : vector<16x64xf32>
    %46 = arith.addf %39, %45 : vector<16x64xf32>
    %47 = vector.extract_strided_slice %11 {offsets = [1, 0], sizes = [16, 64], strides = [1, 1]} : vector<20x80xf32> to vector<16x64xf32>
    %48 = vector.extract_strided_slice %12 {offsets = [5, 0], sizes = [1, 64], strides = [1, 1]} : vector<25x64xf32> to vector<1x64xf32>
    %49 = vector.shape_cast %48 : vector<1x64xf32> to vector<64xf32>
    %50 = vector.shape_cast %49 : vector<64xf32> to vector<1x64xf32>
    %51 = vector.broadcast %50 : vector<1x64xf32> to vector<16x64xf32>
    %52 = arith.mulf %47, %51 : vector<16x64xf32>
    %53 = arith.addf %46, %52 : vector<16x64xf32>
    %54 = vector.extract_strided_slice %11 {offsets = [1, 4], sizes = [16, 64], strides = [1, 1]} : vector<20x80xf32> to vector<16x64xf32>
    %55 = vector.extract_strided_slice %12 {offsets = [6, 0], sizes = [1, 64], strides = [1, 1]} : vector<25x64xf32> to vector<1x64xf32>
    %56 = vector.shape_cast %55 : vector<1x64xf32> to vector<64xf32>
    %57 = vector.shape_cast %56 : vector<64xf32> to vector<1x64xf32>
    %58 = vector.broadcast %57 : vector<1x64xf32> to vector<16x64xf32>
    %59 = arith.mulf %54, %58 : vector<16x64xf32>
    %60 = arith.addf %53, %59 : vector<16x64xf32>
    %61 = vector.extract_strided_slice %11 {offsets = [1, 8], sizes = [16, 64], strides = [1, 1]} : vector<20x80xf32> to vector<16x64xf32>
    %62 = vector.extract_strided_slice %12 {offsets = [7, 0], sizes = [1, 64], strides = [1, 1]} : vector<25x64xf32> to vector<1x64xf32>
    %63 = vector.shape_cast %62 : vector<1x64xf32> to vector<64xf32>
    %64 = vector.shape_cast %63 : vector<64xf32> to vector<1x64xf32>
    %65 = vector.broadcast %64 : vector<1x64xf32> to vector<16x64xf32>
    %66 = arith.mulf %61, %65 : vector<16x64xf32>
    %67 = arith.addf %60, %66 : vector<16x64xf32>
    %68 = vector.extract_strided_slice %11 {offsets = [1, 12], sizes = [16, 64], strides = [1, 1]} : vector<20x80xf32> to vector<16x64xf32>
    %69 = vector.extract_strided_slice %12 {offsets = [8, 0], sizes = [1, 64], strides = [1, 1]} : vector<25x64xf32> to vector<1x64xf32>
    %70 = vector.shape_cast %69 : vector<1x64xf32> to vector<64xf32>
    %71 = vector.shape_cast %70 : vector<64xf32> to vector<1x64xf32>
    %72 = vector.broadcast %71 : vector<1x64xf32> to vector<16x64xf32>
    %73 = arith.mulf %68, %72 : vector<16x64xf32>
    %74 = arith.addf %67, %73 : vector<16x64xf32>
    %75 = vector.extract_strided_slice %11 {offsets = [1, 16], sizes = [16, 64], strides = [1, 1]} : vector<20x80xf32> to vector<16x64xf32>
    %76 = vector.extract_strided_slice %12 {offsets = [9, 0], sizes = [1, 64], strides = [1, 1]} : vector<25x64xf32> to vector<1x64xf32>
    %77 = vector.shape_cast %76 : vector<1x64xf32> to vector<64xf32>
    %78 = vector.shape_cast %77 : vector<64xf32> to vector<1x64xf32>
    %79 = vector.broadcast %78 : vector<1x64xf32> to vector<16x64xf32>
    %80 = arith.mulf %75, %79 : vector<16x64xf32>
    %81 = arith.addf %74, %80 : vector<16x64xf32>
    %82 = vector.extract_strided_slice %11 {offsets = [2, 0], sizes = [16, 64], strides = [1, 1]} : vector<20x80xf32> to vector<16x64xf32>
    %83 = vector.extract_strided_slice %12 {offsets = [10, 0], sizes = [1, 64], strides = [1, 1]} : vector<25x64xf32> to vector<1x64xf32>
    %84 = vector.shape_cast %83 : vector<1x64xf32> to vector<64xf32>
    %85 = vector.shape_cast %84 : vector<64xf32> to vector<1x64xf32>
    %86 = vector.broadcast %85 : vector<1x64xf32> to vector<16x64xf32>
    %87 = arith.mulf %82, %86 : vector<16x64xf32>
    %88 = arith.addf %81, %87 : vector<16x64xf32>
    %89 = vector.extract_strided_slice %11 {offsets = [2, 4], sizes = [16, 64], strides = [1, 1]} : vector<20x80xf32> to vector<16x64xf32>
    %90 = vector.extract_strided_slice %12 {offsets = [11, 0], sizes = [1, 64], strides = [1, 1]} : vector<25x64xf32> to vector<1x64xf32>
    %91 = vector.shape_cast %90 : vector<1x64xf32> to vector<64xf32>
    %92 = vector.shape_cast %91 : vector<64xf32> to vector<1x64xf32>
    %93 = vector.broadcast %92 : vector<1x64xf32> to vector<16x64xf32>
    %94 = arith.mulf %89, %93 : vector<16x64xf32>
    %95 = arith.addf %88, %94 : vector<16x64xf32>
    %96 = vector.extract_strided_slice %11 {offsets = [2, 8], sizes = [16, 64], strides = [1, 1]} : vector<20x80xf32> to vector<16x64xf32>
    %97 = vector.extract_strided_slice %12 {offsets = [12, 0], sizes = [1, 64], strides = [1, 1]} : vector<25x64xf32> to vector<1x64xf32>
    %98 = vector.shape_cast %97 : vector<1x64xf32> to vector<64xf32>
    %99 = vector.shape_cast %98 : vector<64xf32> to vector<1x64xf32>
    %100 = vector.broadcast %99 : vector<1x64xf32> to vector<16x64xf32>
    %101 = arith.mulf %96, %100 : vector<16x64xf32>
    %102 = arith.addf %95, %101 : vector<16x64xf32>
    %103 = vector.extract_strided_slice %11 {offsets = [2, 12], sizes = [16, 64], strides = [1, 1]} : vector<20x80xf32> to vector<16x64xf32>
    %104 = vector.extract_strided_slice %12 {offsets = [13, 0], sizes = [1, 64], strides = [1, 1]} : vector<25x64xf32> to vector<1x64xf32>
    %105 = vector.shape_cast %104 : vector<1x64xf32> to vector<64xf32>
    %106 = vector.shape_cast %105 : vector<64xf32> to vector<1x64xf32>
    %107 = vector.broadcast %106 : vector<1x64xf32> to vector<16x64xf32>
    %108 = arith.mulf %103, %107 : vector<16x64xf32>
    %109 = arith.addf %102, %108 : vector<16x64xf32>
    %110 = vector.extract_strided_slice %11 {offsets = [2, 16], sizes = [16, 64], strides = [1, 1]} : vector<20x80xf32> to vector<16x64xf32>
    %111 = vector.extract_strided_slice %12 {offsets = [14, 0], sizes = [1, 64], strides = [1, 1]} : vector<25x64xf32> to vector<1x64xf32>
    %112 = vector.shape_cast %111 : vector<1x64xf32> to vector<64xf32>
    %113 = vector.shape_cast %112 : vector<64xf32> to vector<1x64xf32>
    %114 = vector.broadcast %113 : vector<1x64xf32> to vector<16x64xf32>
    %115 = arith.mulf %110, %114 : vector<16x64xf32>
    %116 = arith.addf %109, %115 : vector<16x64xf32>
    %117 = vector.extract_strided_slice %11 {offsets = [3, 0], sizes = [16, 64], strides = [1, 1]} : vector<20x80xf32> to vector<16x64xf32>
    %118 = vector.extract_strided_slice %12 {offsets = [15, 0], sizes = [1, 64], strides = [1, 1]} : vector<25x64xf32> to vector<1x64xf32>
    %119 = vector.shape_cast %118 : vector<1x64xf32> to vector<64xf32>
    %120 = vector.shape_cast %119 : vector<64xf32> to vector<1x64xf32>
    %121 = vector.broadcast %120 : vector<1x64xf32> to vector<16x64xf32>
    %122 = arith.mulf %117, %121 : vector<16x64xf32>
    %123 = arith.addf %116, %122 : vector<16x64xf32>
    %124 = vector.extract_strided_slice %11 {offsets = [3, 4], sizes = [16, 64], strides = [1, 1]} : vector<20x80xf32> to vector<16x64xf32>
    %125 = vector.extract_strided_slice %12 {offsets = [16, 0], sizes = [1, 64], strides = [1, 1]} : vector<25x64xf32> to vector<1x64xf32>
    %126 = vector.shape_cast %125 : vector<1x64xf32> to vector<64xf32>
    %127 = vector.shape_cast %126 : vector<64xf32> to vector<1x64xf32>
    %128 = vector.broadcast %127 : vector<1x64xf32> to vector<16x64xf32>
    %129 = arith.mulf %124, %128 : vector<16x64xf32>
    %130 = arith.addf %123, %129 : vector<16x64xf32>
    %131 = vector.extract_strided_slice %11 {offsets = [3, 8], sizes = [16, 64], strides = [1, 1]} : vector<20x80xf32> to vector<16x64xf32>
    %132 = vector.extract_strided_slice %12 {offsets = [17, 0], sizes = [1, 64], strides = [1, 1]} : vector<25x64xf32> to vector<1x64xf32>
    %133 = vector.shape_cast %132 : vector<1x64xf32> to vector<64xf32>
    %134 = vector.shape_cast %133 : vector<64xf32> to vector<1x64xf32>
    %135 = vector.broadcast %134 : vector<1x64xf32> to vector<16x64xf32>
    %136 = arith.mulf %131, %135 : vector<16x64xf32>
    %137 = arith.addf %130, %136 : vector<16x64xf32>
    %138 = vector.extract_strided_slice %11 {offsets = [3, 12], sizes = [16, 64], strides = [1, 1]} : vector<20x80xf32> to vector<16x64xf32>
    %139 = vector.extract_strided_slice %12 {offsets = [18, 0], sizes = [1, 64], strides = [1, 1]} : vector<25x64xf32> to vector<1x64xf32>
    %140 = vector.shape_cast %139 : vector<1x64xf32> to vector<64xf32>
    %141 = vector.shape_cast %140 : vector<64xf32> to vector<1x64xf32>
    %142 = vector.broadcast %141 : vector<1x64xf32> to vector<16x64xf32>
    %143 = arith.mulf %138, %142 : vector<16x64xf32>
    %144 = arith.addf %137, %143 : vector<16x64xf32>
    %145 = vector.extract_strided_slice %11 {offsets = [3, 16], sizes = [16, 64], strides = [1, 1]} : vector<20x80xf32> to vector<16x64xf32>
    %146 = vector.extract_strided_slice %12 {offsets = [19, 0], sizes = [1, 64], strides = [1, 1]} : vector<25x64xf32> to vector<1x64xf32>
    %147 = vector.shape_cast %146 : vector<1x64xf32> to vector<64xf32>
    %148 = vector.shape_cast %147 : vector<64xf32> to vector<1x64xf32>
    %149 = vector.broadcast %148 : vector<1x64xf32> to vector<16x64xf32>
    %150 = arith.mulf %145, %149 : vector<16x64xf32>
    %151 = arith.addf %144, %150 : vector<16x64xf32>
    %152 = vector.extract_strided_slice %11 {offsets = [4, 0], sizes = [16, 64], strides = [1, 1]} : vector<20x80xf32> to vector<16x64xf32>
    %153 = vector.extract_strided_slice %12 {offsets = [20, 0], sizes = [1, 64], strides = [1, 1]} : vector<25x64xf32> to vector<1x64xf32>
    %154 = vector.shape_cast %153 : vector<1x64xf32> to vector<64xf32>
    %155 = vector.shape_cast %154 : vector<64xf32> to vector<1x64xf32>
    %156 = vector.broadcast %155 : vector<1x64xf32> to vector<16x64xf32>
    %157 = arith.mulf %152, %156 : vector<16x64xf32>
    %158 = arith.addf %151, %157 : vector<16x64xf32>
    %159 = vector.extract_strided_slice %11 {offsets = [4, 4], sizes = [16, 64], strides = [1, 1]} : vector<20x80xf32> to vector<16x64xf32>
    %160 = vector.extract_strided_slice %12 {offsets = [21, 0], sizes = [1, 64], strides = [1, 1]} : vector<25x64xf32> to vector<1x64xf32>
    %161 = vector.shape_cast %160 : vector<1x64xf32> to vector<64xf32>
    %162 = vector.shape_cast %161 : vector<64xf32> to vector<1x64xf32>
    %163 = vector.broadcast %162 : vector<1x64xf32> to vector<16x64xf32>
    %164 = arith.mulf %159, %163 : vector<16x64xf32>
    %165 = arith.addf %158, %164 : vector<16x64xf32>
    %166 = vector.extract_strided_slice %11 {offsets = [4, 8], sizes = [16, 64], strides = [1, 1]} : vector<20x80xf32> to vector<16x64xf32>
    %167 = vector.extract_strided_slice %12 {offsets = [22, 0], sizes = [1, 64], strides = [1, 1]} : vector<25x64xf32> to vector<1x64xf32>
    %168 = vector.shape_cast %167 : vector<1x64xf32> to vector<64xf32>
    %169 = vector.shape_cast %168 : vector<64xf32> to vector<1x64xf32>
    %170 = vector.broadcast %169 : vector<1x64xf32> to vector<16x64xf32>
    %171 = arith.mulf %166, %170 : vector<16x64xf32>
    %172 = arith.addf %165, %171 : vector<16x64xf32>
    %173 = vector.extract_strided_slice %11 {offsets = [4, 12], sizes = [16, 64], strides = [1, 1]} : vector<20x80xf32> to vector<16x64xf32>
    %174 = vector.extract_strided_slice %12 {offsets = [23, 0], sizes = [1, 64], strides = [1, 1]} : vector<25x64xf32> to vector<1x64xf32>
    %175 = vector.shape_cast %174 : vector<1x64xf32> to vector<64xf32>
    %176 = vector.shape_cast %175 : vector<64xf32> to vector<1x64xf32>
    %177 = vector.broadcast %176 : vector<1x64xf32> to vector<16x64xf32>
    %178 = arith.mulf %173, %177 : vector<16x64xf32>
    %179 = arith.addf %172, %178 : vector<16x64xf32>
    %180 = vector.extract_strided_slice %11 {offsets = [4, 16], sizes = [16, 64], strides = [1, 1]} : vector<20x80xf32> to vector<16x64xf32>
    %181 = vector.extract_strided_slice %12 {offsets = [24, 0], sizes = [1, 64], strides = [1, 1]} : vector<25x64xf32> to vector<1x64xf32>
    %182 = vector.shape_cast %181 : vector<1x64xf32> to vector<64xf32>
    %183 = vector.shape_cast %182 : vector<64xf32> to vector<1x64xf32>
    %184 = vector.broadcast %183 : vector<1x64xf32> to vector<16x64xf32>
    %185 = arith.mulf %180, %184 : vector<16x64xf32>
    %186 = arith.addf %179, %185 : vector<16x64xf32>
    %c0_15 = arith.constant 0 : index
    %c0_16 = arith.constant 0 : index
    %187 = vector.load %arg3[%c0_15, %c0_16] : memref<64x128xf32, #tpu.memory_space<vmem>>, vector<64x128xf32>
    %cst_17 = arith.constant dense<0.000000e+00> : vector<16x128xf32>
    %188 = tpu.matmul %186, %187, %cst_17 {dimension_numbers = #tpu.dot_dimension_numbers<[1], [0], [0], [1], [0, 0, 1, 1], [], []>} : vector<16x64xf32>, vector<64x128xf32>, vector<16x128xf32> -> vector<16x128xf32>
    %c0_18 = arith.constant 0 : index
    %c0_19 = arith.constant 0 : index
    %189 = vector.load %arg4[%c0_18, %c0_19] : memref<1x128xf32, #tpu.memory_space<vmem>>, vector<1x128xf32>
    %190 = vector.broadcast %189 : vector<1x128xf32> to vector<16x128xf32>
    %191 = arith.addf %188, %190 : vector<16x128xf32>
    %cst_20 = arith.constant 0.000000e+00 : f32
    %192 = vector.broadcast %cst_20 : f32 to vector<16x128xf32>
    %193 = arith.maximumf %191, %192 : vector<16x128xf32>
    %cst_21 = arith.constant 0.000000e+00 : f32
    %194 = vector.broadcast %cst_21 : f32 to vector<2x160xf32>
    %c0_22 = arith.constant 0 : index
    %c0_23 = arith.constant 0 : index
    %195 = vector.load %arg9[%c0_22, %c0_23] : memref<20x160xf32, #tpu.memory_space<vmem>>, vector<2x160xf32>
    tpu.vector_store %arg9[%c0_22, %c0_23], %194 {strides = array<i32>} : memref<20x160xf32, #tpu.memory_space<vmem>>, vector<2x160xf32>,
    %cst_24 = arith.constant 0.000000e+00 : f32
    %196 = vector.broadcast %cst_24 : f32 to vector<2x160xf32>
    %c18_25 = arith.constant 18 : index
    %c0_26 = arith.constant 0 : index
    %197 = vector.load %arg9[%c18_25, %c0_26] : memref<20x160xf32, #tpu.memory_space<vmem>>, vector<2x160xf32>
    tpu.vector_store %arg9[%c18_25, %c0_26], %196 {strides = array<i32>} : memref<20x160xf32, #tpu.memory_space<vmem>>, vector<2x160xf32>,
    %cst_27 = arith.constant 0.000000e+00 : f32
    %198 = vector.broadcast %cst_27 : f32 to vector<20x16xf32>
    %c0_28 = arith.constant 0 : index
    %c0_29 = arith.constant 0 : index
    %199 = vector.load %arg9[%c0_28, %c0_29] : memref<20x160xf32, #tpu.memory_space<vmem>>, vector<20x16xf32>
    tpu.vector_store %arg9[%c0_28, %c0_29], %198 {strides = array<i32>} : memref<20x160xf32, #tpu.memory_space<vmem>>, vector<20x16xf32>,
    %cst_30 = arith.constant 0.000000e+00 : f32
    %200 = vector.broadcast %cst_30 : f32 to vector<20x16xf32>
    %c0_31 = arith.constant 0 : index
    %c144 = arith.constant 144 : index
    %201 = vector.load %arg9[%c0_31, %c144] : memref<20x160xf32, #tpu.memory_space<vmem>>, vector<20x16xf32>
    tpu.vector_store %arg9[%c0_31, %c144], %200 {strides = array<i32>} : memref<20x160xf32, #tpu.memory_space<vmem>>, vector<20x16xf32>,
    %c2_32 = arith.constant 2 : index
    %c16 = arith.constant 16 : index
    %202 = vector.load %arg9[%c2_32, %c16] : memref<20x160xf32, #tpu.memory_space<vmem>>, vector<16x128xf32>
    tpu.vector_store %arg9[%c2_32, %c16], %193 {strides = array<i32>} : memref<20x160xf32, #tpu.memory_space<vmem>>, vector<16x128xf32>,
    %c0_33 = arith.constant 0 : index
    %c0_34 = arith.constant 0 : index
    %203 = vector.load %arg9[%c0_33, %c0_34] : memref<20x160xf32, #tpu.memory_space<vmem>>, vector<20x160xf32>
    %204 = vector.extract_strided_slice %203 {offsets = [0, 0], sizes = [16, 128], strides = [1, 1]} : vector<20x160xf32> to vector<16x128xf32>
    %c0_35 = arith.constant 0 : index
    %c0_36 = arith.constant 0 : index
    %205 = vector.load %arg10[%c0_35, %c0_36] : memref<16x3200xf32, #tpu.memory_space<vmem>>, vector<16x128xf32>
    tpu.vector_store %arg10[%c0_35, %c0_36], %204 {strides = array<i32>} : memref<16x3200xf32, #tpu.memory_space<vmem>>, vector<16x128xf32>,
    %206 = vector.extract_strided_slice %203 {offsets = [0, 8], sizes = [16, 128], strides = [1, 1]} : vector<20x160xf32> to vector<16x128xf32>
    %c0_37 = arith.constant 0 : index
    %c128 = arith.constant 128 : index
    %207 = vector.load %arg10[%c0_37, %c128] : memref<16x3200xf32, #tpu.memory_space<vmem>>, vector<16x128xf32>
    tpu.vector_store %arg10[%c0_37, %c128], %206 {strides = array<i32>} : memref<16x3200xf32, #tpu.memory_space<vmem>>, vector<16x128xf32>,
    %208 = vector.extract_strided_slice %203 {offsets = [0, 16], sizes = [16, 128], strides = [1, 1]} : vector<20x160xf32> to vector<16x128xf32>
    %c0_38 = arith.constant 0 : index
    %c256 = arith.constant 256 : index
    %209 = vector.load %arg10[%c0_38, %c256] : memref<16x3200xf32, #tpu.memory_space<vmem>>, vector<16x128xf32>
    tpu.vector_store %arg10[%c0_38, %c256], %208 {strides = array<i32>} : memref<16x3200xf32, #tpu.memory_space<vmem>>, vector<16x128xf32>,
    %210 = vector.extract_strided_slice %203 {offsets = [0, 24], sizes = [16, 128], strides = [1, 1]} : vector<20x160xf32> to vector<16x128xf32>
    %c0_39 = arith.constant 0 : index
    %c384 = arith.constant 384 : index
    %211 = vector.load %arg10[%c0_39, %c384] : memref<16x3200xf32, #tpu.memory_space<vmem>>, vector<16x128xf32>
    tpu.vector_store %arg10[%c0_39, %c384], %210 {strides = array<i32>} : memref<16x3200xf32, #tpu.memory_space<vmem>>, vector<16x128xf32>,
    %212 = vector.extract_strided_slice %203 {offsets = [0, 32], sizes = [16, 128], strides = [1, 1]} : vector<20x160xf32> to vector<16x128xf32>
    %c0_40 = arith.constant 0 : index
    %c512 = arith.constant 512 : index
    %213 = vector.load %arg10[%c0_40, %c512] : memref<16x3200xf32, #tpu.memory_space<vmem>>, vector<16x128xf32>
    tpu.vector_store %arg10[%c0_40, %c512], %212 {strides = array<i32>} : memref<16x3200xf32, #tpu.memory_space<vmem>>, vector<16x128xf32>,
    %214 = vector.extract_strided_slice %203 {offsets = [1, 0], sizes = [16, 128], strides = [1, 1]} : vector<20x160xf32> to vector<16x128xf32>
    %c0_41 = arith.constant 0 : index
    %c640 = arith.constant 640 : index
    %215 = vector.load %arg10[%c0_41, %c640] : memref<16x3200xf32, #tpu.memory_space<vmem>>, vector<16x128xf32>
    tpu.vector_store %arg10[%c0_41, %c640], %214 {strides = array<i32>} : memref<16x3200xf32, #tpu.memory_space<vmem>>, vector<16x128xf32>,
    %216 = vector.extract_strided_slice %203 {offsets = [1, 8], sizes = [16, 128], strides = [1, 1]} : vector<20x160xf32> to vector<16x128xf32>
    %c0_42 = arith.constant 0 : index
    %c768 = arith.constant 768 : index
    %217 = vector.load %arg10[%c0_42, %c768] : memref<16x3200xf32, #tpu.memory_space<vmem>>, vector<16x128xf32>
    tpu.vector_store %arg10[%c0_42, %c768], %216 {strides = array<i32>} : memref<16x3200xf32, #tpu.memory_space<vmem>>, vector<16x128xf32>,
    %218 = vector.extract_strided_slice %203 {offsets = [1, 16], sizes = [16, 128], strides = [1, 1]} : vector<20x160xf32> to vector<16x128xf32>
    %c0_43 = arith.constant 0 : index
    %c896 = arith.constant 896 : index
    %219 = vector.load %arg10[%c0_43, %c896] : memref<16x3200xf32, #tpu.memory_space<vmem>>, vector<16x128xf32>
    tpu.vector_store %arg10[%c0_43, %c896], %218 {strides = array<i32>} : memref<16x3200xf32, #tpu.memory_space<vmem>>, vector<16x128xf32>,
    %220 = vector.extract_strided_slice %203 {offsets = [1, 24], sizes = [16, 128], strides = [1, 1]} : vector<20x160xf32> to vector<16x128xf32>
    %c0_44 = arith.constant 0 : index
    %c1024 = arith.constant 1024 : index
    %221 = vector.load %arg10[%c0_44, %c1024] : memref<16x3200xf32, #tpu.memory_space<vmem>>, vector<16x128xf32>
    tpu.vector_store %arg10[%c0_44, %c1024], %220 {strides = array<i32>} : memref<16x3200xf32, #tpu.memory_space<vmem>>, vector<16x128xf32>,
    %222 = vector.extract_strided_slice %203 {offsets = [1, 32], sizes = [16, 128], strides = [1, 1]} : vector<20x160xf32> to vector<16x128xf32>
    %c0_45 = arith.constant 0 : index
    %c1152 = arith.constant 1152 : index
    %223 = vector.load %arg10[%c0_45, %c1152] : memref<16x3200xf32, #tpu.memory_space<vmem>>, vector<16x128xf32>
    tpu.vector_store %arg10[%c0_45, %c1152], %222 {strides = array<i32>} : memref<16x3200xf32, #tpu.memory_space<vmem>>, vector<16x128xf32>,
    %224 = vector.extract_strided_slice %203 {offsets = [2, 0], sizes = [16, 128], strides = [1, 1]} : vector<20x160xf32> to vector<16x128xf32>
    %c0_46 = arith.constant 0 : index
    %c1280 = arith.constant 1280 : index
    %225 = vector.load %arg10[%c0_46, %c1280] : memref<16x3200xf32, #tpu.memory_space<vmem>>, vector<16x128xf32>
    tpu.vector_store %arg10[%c0_46, %c1280], %224 {strides = array<i32>} : memref<16x3200xf32, #tpu.memory_space<vmem>>, vector<16x128xf32>,
    %226 = vector.extract_strided_slice %203 {offsets = [2, 8], sizes = [16, 128], strides = [1, 1]} : vector<20x160xf32> to vector<16x128xf32>
    %c0_47 = arith.constant 0 : index
    %c1408 = arith.constant 1408 : index
    %227 = vector.load %arg10[%c0_47, %c1408] : memref<16x3200xf32, #tpu.memory_space<vmem>>, vector<16x128xf32>
    tpu.vector_store %arg10[%c0_47, %c1408], %226 {strides = array<i32>} : memref<16x3200xf32, #tpu.memory_space<vmem>>, vector<16x128xf32>,
    %228 = vector.extract_strided_slice %203 {offsets = [2, 16], sizes = [16, 128], strides = [1, 1]} : vector<20x160xf32> to vector<16x128xf32>
    %c0_48 = arith.constant 0 : index
    %c1536 = arith.constant 1536 : index
    %229 = vector.load %arg10[%c0_48, %c1536] : memref<16x3200xf32, #tpu.memory_space<vmem>>, vector<16x128xf32>
    tpu.vector_store %arg10[%c0_48, %c1536], %228 {strides = array<i32>} : memref<16x3200xf32, #tpu.memory_space<vmem>>, vector<16x128xf32>,
    %230 = vector.extract_strided_slice %203 {offsets = [2, 24], sizes = [16, 128], strides = [1, 1]} : vector<20x160xf32> to vector<16x128xf32>
    %c0_49 = arith.constant 0 : index
    %c1664 = arith.constant 1664 : index
    %231 = vector.load %arg10[%c0_49, %c1664] : memref<16x3200xf32, #tpu.memory_space<vmem>>, vector<16x128xf32>
    tpu.vector_store %arg10[%c0_49, %c1664], %230 {strides = array<i32>} : memref<16x3200xf32, #tpu.memory_space<vmem>>, vector<16x128xf32>,
    %232 = vector.extract_strided_slice %203 {offsets = [2, 32], sizes = [16, 128], strides = [1, 1]} : vector<20x160xf32> to vector<16x128xf32>
    %c0_50 = arith.constant 0 : index
    %c1792 = arith.constant 1792 : index
    %233 = vector.load %arg10[%c0_50, %c1792] : memref<16x3200xf32, #tpu.memory_space<vmem>>, vector<16x128xf32>
    tpu.vector_store %arg10[%c0_50, %c1792], %232 {strides = array<i32>} : memref<16x3200xf32, #tpu.memory_space<vmem>>, vector<16x128xf32>,
    %234 = vector.extract_strided_slice %203 {offsets = [3, 0], sizes = [16, 128], strides = [1, 1]} : vector<20x160xf32> to vector<16x128xf32>
    %c0_51 = arith.constant 0 : index
    %c1920 = arith.constant 1920 : index
    %235 = vector.load %arg10[%c0_51, %c1920] : memref<16x3200xf32, #tpu.memory_space<vmem>>, vector<16x128xf32>
    tpu.vector_store %arg10[%c0_51, %c1920], %234 {strides = array<i32>} : memref<16x3200xf32, #tpu.memory_space<vmem>>, vector<16x128xf32>,
    %236 = vector.extract_strided_slice %203 {offsets = [3, 8], sizes = [16, 128], strides = [1, 1]} : vector<20x160xf32> to vector<16x128xf32>
    %c0_52 = arith.constant 0 : index
    %c2048 = arith.constant 2048 : index
    %237 = vector.load %arg10[%c0_52, %c2048] : memref<16x3200xf32, #tpu.memory_space<vmem>>, vector<16x128xf32>
    tpu.vector_store %arg10[%c0_52, %c2048], %236 {strides = array<i32>} : memref<16x3200xf32, #tpu.memory_space<vmem>>, vector<16x128xf32>,
    %238 = vector.extract_strided_slice %203 {offsets = [3, 16], sizes = [16, 128], strides = [1, 1]} : vector<20x160xf32> to vector<16x128xf32>
    %c0_53 = arith.constant 0 : index
    %c2176 = arith.constant 2176 : index
    %239 = vector.load %arg10[%c0_53, %c2176] : memref<16x3200xf32, #tpu.memory_space<vmem>>, vector<16x128xf32>
    tpu.vector_store %arg10[%c0_53, %c2176], %238 {strides = array<i32>} : memref<16x3200xf32, #tpu.memory_space<vmem>>, vector<16x128xf32>,
    %240 = vector.extract_strided_slice %203 {offsets = [3, 24], sizes = [16, 128], strides = [1, 1]} : vector<20x160xf32> to vector<16x128xf32>
    %c0_54 = arith.constant 0 : index
    %c2304 = arith.constant 2304 : index
    %241 = vector.load %arg10[%c0_54, %c2304] : memref<16x3200xf32, #tpu.memory_space<vmem>>, vector<16x128xf32>
    tpu.vector_store %arg10[%c0_54, %c2304], %240 {strides = array<i32>} : memref<16x3200xf32, #tpu.memory_space<vmem>>, vector<16x128xf32>,
    %242 = vector.extract_strided_slice %203 {offsets = [3, 32], sizes = [16, 128], strides = [1, 1]} : vector<20x160xf32> to vector<16x128xf32>
    %c0_55 = arith.constant 0 : index
    %c2432 = arith.constant 2432 : index
    %243 = vector.load %arg10[%c0_55, %c2432] : memref<16x3200xf32, #tpu.memory_space<vmem>>, vector<16x128xf32>
    tpu.vector_store %arg10[%c0_55, %c2432], %242 {strides = array<i32>} : memref<16x3200xf32, #tpu.memory_space<vmem>>, vector<16x128xf32>,
    %244 = vector.extract_strided_slice %203 {offsets = [4, 0], sizes = [16, 128], strides = [1, 1]} : vector<20x160xf32> to vector<16x128xf32>
    %c0_56 = arith.constant 0 : index
    %c2560 = arith.constant 2560 : index
    %245 = vector.load %arg10[%c0_56, %c2560] : memref<16x3200xf32, #tpu.memory_space<vmem>>, vector<16x128xf32>
    tpu.vector_store %arg10[%c0_56, %c2560], %244 {strides = array<i32>} : memref<16x3200xf32, #tpu.memory_space<vmem>>, vector<16x128xf32>,
    %246 = vector.extract_strided_slice %203 {offsets = [4, 8], sizes = [16, 128], strides = [1, 1]} : vector<20x160xf32> to vector<16x128xf32>
    %c0_57 = arith.constant 0 : index
    %c2688 = arith.constant 2688 : index
    %247 = vector.load %arg10[%c0_57, %c2688] : memref<16x3200xf32, #tpu.memory_space<vmem>>, vector<16x128xf32>
    tpu.vector_store %arg10[%c0_57, %c2688], %246 {strides = array<i32>} : memref<16x3200xf32, #tpu.memory_space<vmem>>, vector<16x128xf32>,
    %248 = vector.extract_strided_slice %203 {offsets = [4, 16], sizes = [16, 128], strides = [1, 1]} : vector<20x160xf32> to vector<16x128xf32>
    %c0_58 = arith.constant 0 : index
    %c2816 = arith.constant 2816 : index
    %249 = vector.load %arg10[%c0_58, %c2816] : memref<16x3200xf32, #tpu.memory_space<vmem>>, vector<16x128xf32>
    tpu.vector_store %arg10[%c0_58, %c2816], %248 {strides = array<i32>} : memref<16x3200xf32, #tpu.memory_space<vmem>>, vector<16x128xf32>,
    %250 = vector.extract_strided_slice %203 {offsets = [4, 24], sizes = [16, 128], strides = [1, 1]} : vector<20x160xf32> to vector<16x128xf32>
    %c0_59 = arith.constant 0 : index
    %c2944 = arith.constant 2944 : index
    %251 = vector.load %arg10[%c0_59, %c2944] : memref<16x3200xf32, #tpu.memory_space<vmem>>, vector<16x128xf32>
    tpu.vector_store %arg10[%c0_59, %c2944], %250 {strides = array<i32>} : memref<16x3200xf32, #tpu.memory_space<vmem>>, vector<16x128xf32>,
    %252 = vector.extract_strided_slice %203 {offsets = [4, 32], sizes = [16, 128], strides = [1, 1]} : vector<20x160xf32> to vector<16x128xf32>
    %c0_60 = arith.constant 0 : index
    %c3072 = arith.constant 3072 : index
    %253 = vector.load %arg10[%c0_60, %c3072] : memref<16x3200xf32, #tpu.memory_space<vmem>>, vector<16x128xf32>
    tpu.vector_store %arg10[%c0_60, %c3072], %252 {strides = array<i32>} : memref<16x3200xf32, #tpu.memory_space<vmem>>, vector<16x128xf32>,
    %c0_61 = arith.constant 0 : index
    %c0_62 = arith.constant 0 : index
    %254 = vector.load %arg10[%c0_61, %c0_62] : memref<16x3200xf32, #tpu.memory_space<vmem>>, vector<16x3200xf32>
    %c0_63 = arith.constant 0 : index
    %c0_64 = arith.constant 0 : index
    %255 = vector.load %arg5[%c0_63, %c0_64] : memref<3200x128xf32, #tpu.memory_space<vmem>>, vector<3200x128xf32>
    %cst_65 = arith.constant dense<0.000000e+00> : vector<16x128xf32>
    %256 = tpu.matmul %254, %255, %cst_65 {dimension_numbers = #tpu.dot_dimension_numbers<[1], [0], [0], [1], [0, 0, 1, 1], [], []>} : vector<16x3200xf32>, vector<3200x128xf32>, vector<16x128xf32> -> vector<16x128xf32>
    %c0_66 = arith.constant 0 : index
    %c0_67 = arith.constant 0 : index
    %257 = vector.load %arg6[%c0_66, %c0_67] : memref<1x128xf32, #tpu.memory_space<vmem>>, vector<1x128xf32>
    %258 = vector.broadcast %257 : vector<1x128xf32> to vector<16x128xf32>
    %259 = arith.addf %256, %258 : vector<16x128xf32>
    %cst_68 = arith.constant 3.000000e+00 : f32
    %260 = vector.broadcast %cst_68 : f32 to vector<16x128xf32>
    %261 = arith.addf %259, %260 : vector<16x128xf32>
    %cst_69 = arith.constant 0.000000e+00 : f32
    %cst_70 = arith.constant 6.000000e+00 : f32
    %262 = vector.broadcast %cst_69 : f32 to vector<16x128xf32>
    %263 = arith.maximumf %262, %261 : vector<16x128xf32>
    %264 = vector.broadcast %cst_70 : f32 to vector<16x128xf32>
    %265 = arith.minimumf %264, %263 : vector<16x128xf32>
    %266 = arith.mulf %259, %265 : vector<16x128xf32>
    %cst_71 = arith.constant 0.166666672 : f32
    %267 = vector.broadcast %cst_71 : f32 to vector<16x128xf32>
    %268 = arith.mulf %266, %267 : vector<16x128xf32>
    %c0_72 = arith.constant 0 : index
    %c0_73 = arith.constant 0 : index
    %c0_74 = arith.constant 0 : index
    %269 = vector.load %arg7[%c0_72, %c0_73, %c0_74] : memref<1x16x128xf32, #tpu.memory_space<vmem>>, vector<1x16x128xf32>
    %270 = vector.shape_cast %269 : vector<1x16x128xf32> to vector<16x128xf32>
    %271 = vector.shape_cast %268 : vector<16x128xf32> to vector<1x16x128xf32>
    tpu.vector_store %arg7[%c0_72, %c0_73, %c0_74], %271 {strides = array<i32>} : memref<1x16x128xf32, #tpu.memory_space<vmem>>, vector<1x16x128xf32>,
    return
  }
  func.func @transform_0(%arg0: i32) -> (i32, i32, i32) {
    %c0_i32 = arith.constant 0 : i32
    %c0_i32_0 = arith.constant 0 : i32
    %c0_i32_1 = arith.constant 0 : i32
    return %arg0, %c0_i32, %c0_i32_0 : i32, i32, i32
  }
  func.func @transform_1(%arg0: i32) -> (i32, i32) {
    %c0_i32 = arith.constant 0 : i32
    %c0_i32_0 = arith.constant 0 : i32
    %c0_i32_1 = arith.constant 0 : i32
    return %c0_i32, %c0_i32_0 : i32, i32
  }
  func.func @transform_2(%arg0: i32) -> (i32, i32) {
    %c0_i32 = arith.constant 0 : i32
    %c0_i32_0 = arith.constant 0 : i32
    %c0_i32_1 = arith.constant 0 : i32
    return %c0_i32, %c0_i32_0 : i32, i32
  }
  func.func @transform_3(%arg0: i32) -> (i32, i32) {
    %c0_i32 = arith.constant 0 : i32
    %c0_i32_0 = arith.constant 0 : i32
    %c0_i32_1 = arith.constant 0 : i32
    return %c0_i32, %c0_i32_0 : i32, i32
  }
  func.func @transform_4(%arg0: i32) -> (i32, i32) {
    %c0_i32 = arith.constant 0 : i32
    %c0_i32_0 = arith.constant 0 : i32
    %c0_i32_1 = arith.constant 0 : i32
    return %c0_i32, %c0_i32_0 : i32, i32
  }
  func.func @transform_5(%arg0: i32) -> (i32, i32) {
    %c0_i32 = arith.constant 0 : i32
    %c0_i32_0 = arith.constant 0 : i32
    %c0_i32_1 = arith.constant 0 : i32
    return %c0_i32, %c0_i32_0 : i32, i32
  }
  func.func @transform_6(%arg0: i32) -> (i32, i32, i32) {
    %c0_i32 = arith.constant 0 : i32
    %c0_i32_0 = arith.constant 0 : i32
    %c0_i32_1 = arith.constant 0 : i32
    return %arg0, %c0_i32, %c0_i32_0 : i32, i32, i32
  }
}

</mosaic_0001>

<bundles_post_ra>
// kernel: tpu_custom_call.1
= control target key start
LH: loop header
LB: loop body
LE: loop exit
PB: predicated region body
PF: predicated region fallthrough
CT: control target
= control target key end

     0   :  { %11 = vsyncpa [#allocation6], 0  ;;  %s5574_s0 = inlined_call_operand.hbm [shape: f32[2,16,64], index: 0, kind: input, shape index: {}]   ;;  %s5575_s1 = inlined_call_operand.hbm [shape: f32[25,64], index: 1, kind: input, shape index: {}]   ;;  %s5576_s2 = inlined_call_operand.hbm [shape: f32[64,128], index: 2, kind: input, shape index: {}]   ;;  %s5577_s3 = inlined_call_operand.hbm [shape: f32[1,128], index: 3, kind: input, shape index: {}]   ;;  %s5578_s4 = inlined_call_operand.hbm [shape: f32[3200,128], index: 4, kind: input, shape index: {}]   ;;  %s5579_s5 = inlined_call_operand.hbm [shape: f32[1,128], index: 5, kind: input, shape index: {}]   ;;  %s5580_s6 = inlined_call_operand.hbm [shape: f32[2,16,128], index: 6, kind: output, shape index: {}]  }
   0x1   :  { %13 = vsyncpa [#allocation6 + $0x1], 0 }
   0x2   :  { %14 = vsyncpa [#allocation9], 0 }
   0x3   :  { %15 = vsyncpa [#allocation12], 0 }
   0x4   :  { %16 = vsyncpa [#allocation15], 0 }
   0x5   :  { %17 = vsyncpa [#allocation7], 0 }
   0x6   :  { %19 = vsyncpa [#allocation7 + $0x1], 0  ;;  %s4662_s21 = smov 0   ;;  %s4664_s22 = smov 0  }
   0x7   :  { %s4666_s23 = smov 0   ;;  %s4668_s24 = smov 0  }
   0x8 LB: > { %s4606_s25 = smov [#allocation8]   ;;  %s4683_s27 = sadd.s32 4294967295, %s4604_s24   ;;  %s4604_s24 = sphi %s4668_s24, %s5605_s24   ;;  %s4600_s23 = sphi %s4666_s23, %s5604_s23   ;;  %s4596_s22 = sphi %s4664_s22, %s5603_s22   ;;  %s4592_s21 = sphi %s4662_s21, %s5602_s21  }
   0x9   : > { %s199_s26 = sshll.u32 %s4606_s25, 4  ;;  %p3045_p0 = scmp.ge.s32.totalorder %s4604_s24, 1  ;;  %s4688_s26 = int_to_ptr.vmem [resolvable:$true] %s199_s26 }
   0xa   : > { %p5581_p1 = scmp.eq.s32.totalorder %s4683_s27, 0  ;;  %p187_p2 = scmp.lt.s32.totalorder %s4604_s24, 3 }
   0xb   : > { %s4607_s29 = smov [#allocation11]   ;;  %s4608_s8 = smov [#allocation10]  }
   0xc   : > { %p4690_p3 = pnand %p3045_p0, %p187_p2  ;;  %s226_s30 = sshll.u32 %s4607_s29, 4  ;;  %s4703_s30 = int_to_ptr.vmem [resolvable:$true] %s226_s30 }
   0xd   : > { %s212_s9 = sshll.u32 %s4608_s8, 4  ;;  %s4356_s12 = scalar_lea.hbm %s5575_s1, 512  ;;  %s4705_s9 = int_to_ptr.vmem [resolvable:$true] %s212_s9 }
   0xe   : > { %s5584_s28 = scalar_select %p4690_p3, 1, 0 }
   0xf   : > { %p4069_p5 = pneg %p4690_p3  ;;  %p4357_p7 = scmp.ne.s32.totalorder %s5575_s1, %s4356_s12 }
  0x10   : > { %p4363_p11 = scmp.lt.u32.totalorder %s4356_s12, %s5575_s1 }
  0x11   : > { %p4699_p6 = pnand %p4069_p5, %p5581_p1 }
  0x13   : > { %p4715_p8 = pneg %p4699_p6 }
  0x15   : > { %p4359_p9 = pnand %p4715_p8, %p4357_p7 }
  0x17   : > { %p4360_p10 = pneg %p4359_p9 }
  0x19   : > { %p4365_p12 = pnand %p4363_p11, %p4360_p10 }
  0x1b   : > { %4368 = shalt.err (!%p4365_p12)
}
  0x1c   : > { %s4369_s18 = scalar_lea.vmem %s4688_s26, 512  ;;  %p4377_p5 = scmp.lt.s32.totalorder %s4688_s26, %s4688_s26 }
  0x1d   : > { %p4370_p13 = scmp.ne.s32.totalorder %s4688_s26, %s4369_s18  ;;  %p4378_p4 = scmp.lt.s32.totalorder %s4369_s18, %s4369_s18 }
  0x1f   : > { %p4372_p0 = pnand %p4370_p13, %p4715_p8  ;;  %p4379_p7 = por %p4378_p4, %p4377_p5 }
  0x21   : > { %p4373_p2 = pneg %p4372_p0 }
  0x23   : > { %p4380_p9 = pnand %p4379_p7, %p4373_p2 }
  0x25   : > { %4383 = shalt.err (!%p4380_p9)
}
  0x26   : > { %s4609_s19 = smov 128   ;;  %s4610_s20 = smov 8  }
  0x27   : > { %4072 = dma.hbm_to_vmem [thread:$0]  (!%p4699_p6), %s5575_s1, 512, %s4688_s26, [#allocation9], %s4609_s19, %s4609_s19, %s4610_s20  }
  0x28   : > { %s4384_s11 = scalar_lea.hbm %s5577_s3, 16 }
  0x29   : > { %p4385_p4 = scmp.ne.s32.totalorder %s5577_s3, %s4384_s11  ;;  %p4391_p12 = scmp.lt.u32.totalorder %s4384_s11, %s5577_s3 }
  0x2b   : > { %p4387_p10 = pnand %p4385_p4, %p4715_p8 }
  0x2d   : > { %p4388_p11 = pneg %p4387_p10 }
  0x2f   : > { %p4393_p13 = pnand %p4391_p12, %p4388_p11 }
  0x31   : > { %4396 = shalt.err (!%p4393_p13)
}
  0x32   : > { %s4397_s26 = scalar_lea.vmem %s4703_s30, 16  ;;  %s4404_s17 = scalar_lea.vmem %s4703_s30, 32 }
  0x33   : > { %p4398_p0 = scmp.ne.s32.totalorder %s4703_s30, %s4397_s26  ;;  %p4405_p7 = scmp.lt.s32.totalorder %s4703_s30, %s4703_s30 }
  0x34   : > { %p4406_p9 = scmp.lt.s32.totalorder %s4404_s17, %s4397_s26 }
  0x35   : > { %p4400_p2 = pnand %p4398_p0, %p4715_p8 }
  0x36   : > { %p4407_p4 = por %p4406_p9, %p4405_p7 }
  0x37   : > { %p4401_p5 = pneg %p4400_p2 }
  0x39   : > { %p4408_p10 = pnand %p4407_p4, %p4401_p5 }
  0x3b   : > { %4411 = shalt.err (!%p4408_p10)
}
  0x3c   : > { %4078 = dma.hbm_to_vmem [thread:$0]  (!%p4699_p6), %s5577_s3, 16, %s4703_s30, [#allocation12]  }
  0x3d   : > { %s4412_s10 = scalar_lea.hbm %s5576_s2, 1024 }
  0x3e   : > { %p4413_p11 = scmp.ne.s32.totalorder %s5576_s2, %s4412_s10  ;;  %p4419_p0 = scmp.lt.u32.totalorder %s4412_s10, %s5576_s2 }
  0x40   : > { %p4415_p12 = pnand %p4413_p11, %p4715_p8 }
  0x42   : > { %p4416_p13 = pneg %p4415_p12 }
  0x44   : > { %p4421_p2 = pnand %p4419_p0, %p4416_p13 }
  0x46   : > { %4424 = shalt.err (!%p4421_p2)
}
  0x47   : > { %s4425_s30 = scalar_lea.vmem %s4705_s9, 1024  ;;  %p4433_p4 = scmp.lt.s32.totalorder %s4705_s9, %s4705_s9 }
  0x48   : > { %p4426_p5 = scmp.ne.s32.totalorder %s4705_s9, %s4425_s30  ;;  %p4434_p10 = scmp.lt.s32.totalorder %s4425_s30, %s4425_s30 }
  0x4a   : > { %p4428_p7 = pnand %p4426_p5, %p4715_p8  ;;  %p4435_p11 = por %p4434_p10, %p4433_p4 }
  0x4c   : > { %p4429_p9 = pneg %p4428_p7 }
  0x4e   : > { %p4436_p12 = pnand %p4435_p11, %p4429_p9 }
  0x50   : > { %4439 = shalt.err (!%p4436_p12)
}
  0x51   : > { %4075 = dma.hbm_to_vmem [thread:$0]  (!%p4699_p6), %s5576_s2, 1024, %s4705_s9, [#allocation9], %s4609_s19, %s4609_s19, %s4610_s20  }
  0x52   : > { %s4611_s17 = smov [#allocation13]   ;;  %s4612_s25 = smov [#allocation14]  }
  0x53   : > { %s236_s18 = sshll.u32 %s4611_s17, 4  ;;  %s250_s29 = sshll.u32 %s4612_s25, 4  ;;  %s237_s18 = int_to_ptr.vmem [resolvable:$true] %s236_s18  ;;  %s251_s29 = int_to_ptr.vmem [resolvable:$true] %s250_s29 }
  0x54   : > { %s4440_s11 = scalar_lea.hbm %s5578_s4, 51200 }
  0x55   : > { %p4441_p13 = scmp.ne.s32.totalorder %s5578_s4, %s4440_s11  ;;  %p4447_p5 = scmp.lt.u32.totalorder %s4440_s11, %s5578_s4 }
  0x57   : > { %p4443_p0 = pnand %p4441_p13, %p4715_p8 }
  0x59   : > { %p4444_p2 = pneg %p4443_p0 }
  0x5b   : > { %p4449_p7 = pnand %p4447_p5, %p4444_p2 }
  0x5d   : > { %4452 = shalt.err (!%p4449_p7)
}
  0x5e   : > { %s4453_s9 = scalar_lea.vmem %s237_s18, 51200  ;;  %p4461_p11 = scmp.lt.s32.totalorder %s237_s18, %s237_s18 }
  0x5f   : > { %p4454_p9 = scmp.ne.s32.totalorder %s237_s18, %s4453_s9  ;;  %p4462_p12 = scmp.lt.s32.totalorder %s4453_s9, %s4453_s9 }
  0x61   : > { %p4456_p4 = pnand %p4454_p9, %p4715_p8  ;;  %p4463_p1 = por %p4462_p12, %p4461_p11 }
  0x63   : > { %p4457_p10 = pneg %p4456_p4 }
  0x65   : > { %p4464_p3 = pnand %p4463_p1, %p4457_p10 }
  0x67   : > { %4467 = shalt.err (!%p4464_p3)
}
  0x68   : > { %4081 = dma.hbm_to_vmem [thread:$0]  (!%p4699_p6), %s5578_s4, 51200, %s237_s18, [#allocation12], %s4609_s19, %s4609_s19, %s4610_s20  }
  0x69   : > { %s4468_s8 = scalar_lea.hbm %s5579_s5, 16 }
  0x6a   : > { %p4469_p1 = scmp.ne.s32.totalorder %s5579_s5, %s4468_s8  ;;  %p4475_p0 = scmp.lt.u32.totalorder %s4468_s8, %s5579_s5 }
  0x6c   : > { %p4471_p3 = pnand %p4469_p1, %p4715_p8 }
  0x6e   : > { %p4472_p13 = pneg %p4471_p3 }
  0x70   : > { %p4477_p2 = pnand %p4475_p0, %p4472_p13 }
  0x72   : > { %4480 = shalt.err (!%p4477_p2)
}
  0x73   : > { %s4481_s14 = scalar_lea.vmem %s251_s29, 16  ;;  %s4488_s18 = scalar_lea.vmem %s251_s29, 32 }
  0x74   : > { %p4482_p5 = scmp.ne.s32.totalorder %s251_s29, %s4481_s14  ;;  %p4489_p4 = scmp.lt.s32.totalorder %s251_s29, %s251_s29 }
  0x75   : > { %p4490_p10 = scmp.lt.s32.totalorder %s4488_s18, %s4481_s14 }
  0x76   : > { %p4484_p7 = pnand %p4482_p5, %p4715_p8 }
  0x77   : > { %p4491_p11 = por %p4490_p10, %p4489_p4 }
  0x78   : > { %p4485_p9 = pneg %p4484_p7 }
  0x7a   : > { %p4492_p12 = pnand %p4491_p11, %p4485_p9 }
  0x7c   : > { %4495 = shalt.err (!%p4492_p12)
}
  0x7d   : > { %4084 = dma.hbm_to_vmem [thread:$0]  (!%p4699_p6), %s5579_s5, 16, %s251_s29, [#allocation15]  }
  0x7e   : > { %s3044_s15 = sadd.s32 4294967294, %s4604_s24   ;;  %s4830_s7 = sadd.s32 1, %s4604_s24  }
  0x7f   : > { %s32_s16 = sadd.s32 1, %s4600_s23  ;;  %s29_s26 = ssub.s32 %s4604_s24, %s4830_s7 }
  0x80   : > { %p39_p8 = scmp.ne.s32.totalorder %s4600_s23, %s4596_s22  ;;  %p30_p1 = scmp.eq.s32.totalorder %s29_s26, 0 }
  0x81   : > { %p40_p3 = scmp.eq.s32.totalorder %s4604_s24, 0  ;;  %p45_p13 = scmp.ne.s32.totalorder %s4596_s22, %s4592_s21 }
  0x82   : > { %p174_p0 = scmp.eq.s32.totalorder %s4683_s27, 1  ;;  %p5587_p5 = scmp.eq.s32.totalorder %s4683_s27, 0 }
  0x83   : > { %s4842_s17 = scalar_select %p30_p1, %s4600_s23, %s32_s16  }
  0x84   : > { %p41_p2 = por %p40_p3, %p39_p8  ;;  %p4846_p7 = por %p5587_p5, %p45_p13 }
  0x85   : > { %p4850_p6 = por %p174_p0, %p39_p8  ;;  %p180_p9 = scmp.eq.s32.totalorder %s3044_s15, 1 }
  0x86   : > { %p4098_p4 = scmp.lt.s32.totalorder %s4604_s24, 2  ;;  %s261_s8 = sand.u32 1, %s4600_s23  }
  0x87   : > { %s5589_s29 = scalar_select %p4850_p6, 1, 0 }
  0x88   : > { %p4856_p10 = por %p180_p9, %p45_p13  ;;  %s3052_s11 = sshll.u32 %s261_s8, 4 }
  0x89   : > { %s3073_s12 = sshll.u32 %s4604_s24, 8  ;;  %s265_s30 = scalar_lea.vmem [#allocation5], %s3052_s11 }
  0x8a   : > { %s5590_s10 = scalar_select %p4856_p10, 1, 0 }
  0x8b   : > { %s4864_s18 = scalar_lea.hbm %s5574_s0, %s3073_s12  ;;  %s272_s9 = sshll.u32 %s265_s30, 4  ;;  %s4870_s9 = int_to_ptr.vmem [resolvable:$true] %s272_s9 }
  0x8c   : > { %p4866_p11 = pnand %p4098_p4, %p41_p2  ;;  %s4872_s16 = scalar_lea.sflag [#allocation6], %s261_s8 }
  0x8d   : > { %s4496_s26 = scalar_lea.hbm %s4864_s18, 256  ;;  %s4501_s13 = scalar_lea.hbm %s5574_s0, 512 }
  0x8e   : > { %p4497_p12 = scmp.ne.s32.totalorder %s4864_s18, %s4496_s26  ;;  %p4498_p8 = pneg %p4866_p11 }
  0x8f   : > { %p4502_p13 = scmp.lt.u32.totalorder %s4864_s18, %s5574_s0  ;;  %p4503_p0 = scmp.lt.u32.totalorder %s4501_s13, %s4496_s26 }
  0x90   : > { %p4499_p1 = pnand %p4498_p8, %p4497_p12  ;;  %p4505_p5 = scmp.lt.u32.totalorder %s4496_s26, %s4864_s18 }
  0x91   : > { %p4504_p2 = por %p4503_p0, %p4502_p13 }
  0x92   : > { %p4500_p3 = pneg %p4499_p1 }
  0x93   : > { %p4506_p9 = por %p4505_p5, %p4504_p2 }
  0x95   : > { %p4507_p4 = pnand %p4506_p9, %p4500_p3 }
  0x97   : > { %4510 = shalt.err (!%p4507_p4)
}
  0x98   : > { %s4511_s8 = scalar_lea.vmem %s4870_s9, 256  ;;  %s4613_s11 = smov [#allocation5]  }
  0x99   : > { %p4512_p12 = scmp.ne.s32.totalorder %s4870_s9, %s4511_s8  ;;  %s4516_s12 = sshll.u32 %s4613_s11, 4  ;;  %s4517_s12 = int_to_ptr.vmem [resolvable:$false] %s4516_s12 }
  0x9a   : > { %s4518_s14 = scalar_lea.vmem %s4517_s12, 512  ;;  %p4519_p6 = scmp.lt.s32.totalorder %s4870_s9, %s4517_s12 }
  0x9b   : > { %p4514_p1 = pnand %p4512_p12, %p4498_p8  ;;  %p4520_p13 = scmp.lt.s32.totalorder %s4518_s14, %s4511_s8 }
  0x9d   : > { %p4515_p10 = pneg %p4514_p1  ;;  %p4521_p0 = por %p4520_p13, %p4519_p6 }
  0x9f   : > { %p4522_p2 = pnand %p4521_p0, %p4515_p10 }
  0xa1   : > { %4525 = shalt.err (!%p4522_p2)
}
  0xa2   : > { %4088 = dma.hbm_to_vmem [thread:$0]  (!%p4866_p11), %s4864_s18, 256, %s4870_s9, %s4872_s16, %s4609_s19, %s4609_s19, %s4610_s20  }
  0xa3   : > { %p5592_p8 = scmp.ne.s32.totalorder %s5584_s28, 0 }
  0xa4   : > { %s4906_s26 = sand.u32 (!%p5592_p8), 1, %s4596_s22  }
  0xa5   : > { %284 = sbr.rel (%p5592_p8) target bundleno = 1408 (0x580), region = 44  ;;  %s3056_s13 = sshll.u32 (!%p5592_p8), %s4906_s26, 4 }
  0xa6   : > { %s287_s30 = scalar_lea.sflag (!%p5592_p8), [#allocation6], %s4906_s26  ;;  %s4912_s15 = scalar_lea.vmem (!%p5592_p8), [#allocation5], %s3056_s13 }
  0xac   : > { %4571 = dma.done.wait (%p4846_p7), %s287_s30, 256  }
  0xad   : > { %4573 = vsyncadd (%p4846_p7), %s287_s30, 4294967040  ;;  %p5593_p6 = scmp.eq.s32.totalorder %s4683_s27, 0 }
  0xaf   : > { %4575 = dma.done.wait (%p5593_p6), [#allocation9], 1536   ;;  %p5594_p10 = pmov %p5593_p6 }
  0xb0   : > { %p5595_p11 = pmov %p5593_p6 }
  0xb1   : > { %4577 = vsyncadd (%p5594_p10), [#allocation9], 4294965760 }
  0xb2   : > { %4579 = dma.done.wait (%p5595_p11), [#allocation12], 51216   ;;  %p5596_p3 = pmov %p5593_p6 }
  0xb4   : > { %4581 = vsyncadd (%p5596_p3), [#allocation12], 4294916080  ;;  %p5597_p5 = pmov %p5596_p3 }
  0xb5   : > { %p5598_p9 = pmov %p5596_p3 }
  0xb6   : > { %4583 = dma.done.wait (%p5597_p5), [#allocation15], 16  }
  0xb7   : > { %4585 = vsyncadd (%p5598_p9), [#allocation15], 4294967280  ;;  %v372_v0 = vlaneseq  ;;  %vm339_vm0 = vcmask 648192   ;;  %vm342_vm1 = vcmask 64512   ;;  %vm347_vm2 = vcmask 654912   ;;  %v352_v5 = vld [vmem:[%s4912_s15] sm:$0xff] }
  0xb8   : > { %v4614_v1 = vmov 0.0   ;;  %vm345_vm3 = vcmask 60416   ;;  %vm350_vm4 = vcmask 650816   ;;  %v368_v6 = vld [vmem:[#allocation8] sm:$0xff]  ;;  %s4615_s28 = smov 8   ;;  %v353_v9 = vld [vmem:[%s4912_s15 + $0x8] sm:$0xff] }
  0xb9   : > { %340 = vst.msk [vmem:[#allocation2] sm:$0x3] %vm339_vm0, %v4614_v1  ;;  %341 = vst.msk [vmem:[#allocation2 + $0x12] sm:$0x3] %vm339_vm0, %v4614_v1  ;;  %v373_v2 = vshrl.u32 %v372_v0, 7  ;;  %356 = vrot.lane.b32.xlu0 %v352_v5, %s4615_s28  ;;  %s4616_s19 = smov 4  }
  0xba   : > { %1069 = vst [vmem:[#allocation3] sm:$0x3] %v4614_v1  ;;  %1072 = vst [vmem:[#allocation3 + $0x20] sm:$0xc] %v4614_v1  ;;  %s4617_s20 = smov 12   ;;  %v369_v21 = vld [vmem:[#allocation8 + $0x8] sm:$0xff] }
  0xbb   : > { %343 = vst.msk [vmem:[#allocation2] sm:$0xff] %vm342_vm1, %v4614_v1  ;;  %344 = vst.msk [vmem:[#allocation2 + $0x8] sm:$0xff] %vm342_vm1, %v4614_v1  ;;  %v380_v3 = vsub.s32 1, %v373_v2  ;;  %v400_v4 = vsub.s32 2, %v373_v2  ;;  %v420_v8 = vsub.s32 3, %v373_v2  ;;  %v440_v11 = vsub.s32 4, %v373_v2 }
  0xbc   : > { %346 = vst.msk [vmem:[#allocation2 + $0x10] sm:$0xf] %vm345_vm3, %v4614_v1  ;;  %v374_v12 = vsub.s32 0, %v373_v2  ;;  %v480_v14 = vsub.s32 6, %v373_v2  ;;  %v460_v15 = vsub.s32 5, %v373_v2  ;;  %v507_v18 = vsub.s32 7, %v373_v2 }
  0xbd   : > { %348 = vst.msk [vmem:[#allocation2] sm:$0xff] %vm347_vm2, %v4614_v1  ;;  %349 = vst.msk [vmem:[#allocation2 + $0x8] sm:$0xff] %vm347_vm2, %v4614_v1  ;;  %v381_v7 = vrot.slane %v368_v6, %v380_v3  ;;  %v401_v10 = vrot.slane %v368_v6, %v400_v4  ;;  %358 = vrot.lane.b32.xlu0 %v353_v9, %s4615_s28  ;;  %v421_v13 = vrot.slane %v368_v6, %v420_v8  ;;  %s4618_s25 = smov 16   ;;  %v370_v28 = vld [vmem:[#allocation8 + $0x10] sm:$0xff]  ;;  %v3063_v40 = vld [vmem:[#allocation8 + $0x18] ss:$0 sm:$0xff] }
  0xbe   : > { %351 = vst.msk [vmem:[#allocation2 + $0x10] sm:$0xf] %vm350_vm4, %v4614_v1  ;;  %v4945_v16 = vrot.slane %v368_v6, %v374_v12  ;;  %v441_v17 = vrot.slane %v368_v6, %v440_v11  ;;  %v4948_v19 = vrot.slane %v368_v6, %v460_v15  ;;  %v481_v20 = vrot.slane %v368_v6, %v480_v14  ;;  %s4619_s18 = smov 124   ;;  %s4620_s9 = smov 120  }
  0xbf   : > { %383 = vrot.lane.b32.xlu1 %v381_v7, %s4616_s19  ;;  %v508_v22 = vrot.slane %v368_v6, %v507_v18  ;;  %v535_v23 = vrot.slane %v369_v21, %v374_v12  ;;  %v562_v24 = vrot.slane %v369_v21, %v380_v3  ;;  %v609_v25 = vrot.slane %v369_v21, %v420_v8  ;;  %s4621_s16 = smov 116   ;;  %s4622_s8 = smov 112  }
  0xc0   : > { %v636_v26 = vrot.slane %v369_v21, %v440_v11  ;;  %v663_v27 = vrot.slane %v369_v21, %v460_v15  ;;  %v690_v29 = vrot.slane %v369_v21, %v480_v14  ;;  %v737_v30 = vrot.slane %v370_v28, %v374_v12  ;;  %s4623_s11 = smov 104   ;;  %s4624_s12 = smov 96  }
  0xc1   : > { %423 = vrot.lane.b32.xlu0 %v421_v13, %s4617_s20  ;;  %v4959_v31 = vrot.slane %v369_v21, %v400_v4  ;;  %v764_v32 = vrot.slane %v370_v28, %v380_v3  ;;  %v4962_v33 = vrot.slane %v369_v21, %v507_v18  ;;  %v791_v34 = vrot.slane %v370_v28, %v400_v4  ;;  %s338_s14 = scalar_lea.vmem [#allocation16], %s3056_s13  ;;  %s3074_s15 = sshll.u32 %s4683_s27, 8 }
  0xc2   : > { %v4965_v35 = vrot.slane %v370_v28, %v440_v11  ;;  %v818_v36 = vrot.slane %v370_v28, %v420_v8  ;;  %v865_v37 = vrot.slane %v370_v28, %v460_v15  ;;  %v892_v38 = vrot.slane %v370_v28, %v480_v14  ;;  %s2923_s30 = sshll.u32 %s338_s14, 4  ;;  %s2910_s13 = scalar_lea.sflag [#allocation7], %s4906_s26  ;;  %s5524_s30 = int_to_ptr.vmem [resolvable:$true] %s2923_s30 }
  0xc3   : > { %403 = vrot.lane.b32.xlu1 %v401_v10, %s4615_s28  ;;  %v919_v39 = vrot.slane %v370_v28, %v507_v18  ;;  %vm362_vm5 = vcmask 588864   ;;  %vm468_vm6 = vcmask 1046528   ;;  %vm596_vm7 = vcmask 1045504   ;;  %p5599_p4 = scmp.ne.s32.totalorder %s5589_s29, 0  ;;  %s4625_s27 = smov [#allocation16]  }
  0xc4   : > { %vm852_vm8 = vcmask 1043456   ;;  %vm724_vm9 = vcmask 1044480   ;;  %vm985_vm10 = vcmask 523264   ;;  %vm1070_vm11 = vcmask 254976  }
  0xc5   : > { %483 = vrot.lane.b32.xlu0 %v481_v20, %s4616_s19  ;;  %vm1075_vm12 = vcmask 130048   ;;  %vm1080_vm13 = vcmask 261248   ;;  %1071 = vst.msk [vmem:[#allocation3 + $0x8] sm:$0x3] %vm1070_vm11, %v4614_v1  ;;  %vm1073_vm14 = vcmask 257026   ;;  %vm1078_vm15 = vcmask 125952  }
  0xc6   : > { %1076 = vst.msk [vmem:[#allocation3] sm:$0xff] %vm1075_vm12, %v4614_v1  ;;  %1077 = vst.msk [vmem:[#allocation3 + $0x10] sm:$0xff] %vm1075_vm12, %v4614_v1  ;;  %vm1083_vm0 = vcmask 257152   ;;  %vm1087_vm1 = vcmask 1041408   ;;  %vm1100_vm2 = vcmask 1047682   ;;  %vm1102_vm3 = vcmask 130050  }
  0xc7   : > { %443 = vrot.lane.b32.xlu1 %v441_v17, %s4618_s25  ;;  %1082 = vst.msk [vmem:[#allocation3 + $0x18] sm:$0xff] %vm1080_vm13, %v4614_v1  ;;  %1081 = vst.msk [vmem:[#allocation3 + $0x8] sm:$0xff] %vm1080_vm13, %v4614_v1  ;;  %vm1104_vm4 = vcmask 1047680  }
  0xc8   : > { %1074 = vst.msk [vmem:[#allocation3 + $0x28] sm:$0xc] %vm1073_vm14, %v4614_v1 }
  0xc9   : > { %537 = vrot.lane.b32.xlu0 %v535_v23, %s4617_s20  ;;  %1079 = vst.msk [vmem:[#allocation3 + $0x20] sm:$0xf] %vm1078_vm15, %v4614_v1 }
  0xca   : > { %1084 = vst.msk [vmem:[#allocation3 + $0x28] sm:$0xf] %vm1083_vm0, %v4614_v1 }
  0xcb   : > { %510 = vrot.lane.b32.xlu1 %v508_v22, %s4615_s28 }
  0xcd   : > { %611 = vrot.lane.b32.xlu0 %v609_v25, %s4616_s19 }
  0xcf   : > { %564 = vrot.lane.b32.xlu1 %v562_v24, %s4618_s25 }
  0xd1   : > { %665 = vrot.lane.b32.xlu0 %v663_v27, %s4617_s20 }
  0xd3   : > { %638 = vrot.lane.b32.xlu1 %v636_v26, %s4615_s28 }
  0xd5   : > { %739 = vrot.lane.b32.xlu0 %v737_v30, %s4616_s19 }
  0xd7   : > { %692 = vrot.lane.b32.xlu1 %v690_v29, %s4618_s25 }
  0xd9   : > { %793 = vrot.lane.b32.xlu0 %v791_v34, %s4617_s20 }
  0xdb   : > { %766 = vrot.lane.b32.xlu1 %v764_v32, %s4615_s28 }
  0xdd   : > { %867 = vrot.lane.b32.xlu0 %v865_v37, %s4616_s19 }
  0xdf   : > { %820 = vrot.lane.b32.xlu1 %v818_v36, %s4618_s25 }
  0xe1   : > { %921 = vrot.lane.b32.xlu0 %v919_v39, %s4617_s20 }
  0xe3   : > { %894 = vrot.lane.b32.xlu1 %v892_v38, %s4615_s28 }
  0xe7   : > { %948 = vrot.lane.b32.xlu1 %v3063_v40, %s4618_s25 }
 0x12b   : > { %v357_v41 = vpop.permute.xlu0 %356 }
 0x12c   : > { %363 = vst.msk [vmem:[#allocation2 + $0x2] sm:$0xff] %vm362_vm5, %v357_v41 }
 0x12f   : > { %v359_v43 = vpop.permute.xlu0 %358 }
 0x130   : > { %364 = vst.msk [vmem:[#allocation2 + $0xa] sm:$0xff] %vm362_vm5, %v359_v43  ;;  %vm1107_vm5 = vcmask 1041536  }
 0x131   : > { %v384_v42 = vpop.permute.xlu1 %383 }
 0x133   : > { %v4974_v45 = vld [vmem:[#allocation2] sm:$0xff]  ;;  %v424_v46 = vpop.permute.xlu0 %423 }
 0x134   : > { %v386_v47 = vmul.f32 %v384_v42, %v4974_v45  ;;  %v4979_v48 = vmul.f32 %v4945_v16, %v4974_v45  ;;  %v4983_v50 = vmul.f32 %v4948_v19, %v4974_v45  ;;  %v4987_v51 = vmul.f32 %v4959_v31, %v4974_v45 }
 0x135   : > { %v404_v44 = vpop.permute.xlu1 %403  ;;  %v4991_v52 = vmul.f32 %v4962_v33, %v4974_v45  ;;  %v4995_v53 = vmul.f32 %v4965_v35, %v4974_v45  ;;  %v426_v0 = vmul.f32 %v424_v46, %v4974_v45 }
 0x136   : > { %390 = vrot.lane.b32.xlu0 %v386_v47, %s4619_s18  ;;  %v406_v57 = vmul.f32 %v404_v44, %v4974_v45 }
 0x137   : > { %v4998_v54 = vld [vmem:[#allocation2 + $0x8] sm:$0xff]  ;;  %v484_v55 = vpop.permute.xlu0 %483  ;;  %v5000_v56 = vld [vmem:[#allocation2 + $0x10] sm:$0xf] }
 0x138   : > { %v387_v59 = vmul.f32 %v384_v42, %v4998_v54  ;;  %v5006_v60 = vmul.f32 %v4945_v16, %v4998_v54  ;;  %v5012_v62 = vmul.f32 %v4948_v19, %v4998_v54  ;;  %v5016_v63 = vmul.f32 %v4948_v19, %v5000_v56 }
 0x139   : > { %v444_v49 = vpop.permute.xlu1 %443  ;;  %v407_v2 = vmul.f32 %v404_v44, %v4998_v54  ;;  %v486_v3 = vmul.f32 %v484_v55, %v4974_v45  ;;  %v487_v4 = vmul.f32 %v484_v55, %v4998_v54  ;;  %v427_v7 = vmul.f32 %v424_v46, %v4998_v54 }
 0x13a   : > { %410 = vrot.lane.b32.xlu0 %v406_v57, %s4620_s9  ;;  %392 = vrot.lane.b32.xlu1 %v387_v59, %s4619_s18  ;;  %v446_v8 = vmul.f32 %v444_v49, %v4974_v45  ;;  %v488_v14 = vmul.f32 %v484_v55, %v5000_v56  ;;  %v447_v16 = vmul.f32 %v444_v49, %v4998_v54 }
 0x13b   : > { %v538_v61 = vpop.permute.xlu0 %537  ;;  %v492_v12 = vrot.slane %v486_v3, 1  ;;  %v493_v13 = vrot.slane %v487_v4, 1 }
 0x13c   : > { %v540_v17 = vmul.f32 %v538_v61, %v4974_v45  ;;  %v541_v20 = vmul.f32 %v538_v61, %v4998_v54  ;;  %v495_v24 = vrot.slane %v488_v14, 1  ;;  %v542_v36 = vmul.f32 %v538_v61, %v5000_v56 }
 0x13d   : > { %v511_v58 = vpop.permute.xlu1 %510  ;;  %v494_v22 = vsel %vm468_vm6, %v492_v12, %v493_v13 }
 0x13e   : > { %430 = vrot.lane.b32.xlu0 %v426_v0, %s4621_s16  ;;  %412 = vrot.lane.b32.xlu1 %v407_v2, %s4620_s9  ;;  %v513_v9 = vmul.f32 %v511_v58, %v4974_v45  ;;  %v514_v10 = vmul.f32 %v511_v58, %v4998_v54  ;;  %v515_v23 = vmul.f32 %v511_v58, %v5000_v56  ;;  %v546_v26 = vrot.slane %v540_v17, 1 }
 0x13f   : > { %v612_v6 = vpop.permute.xlu0 %611  ;;  %v547_v27 = vrot.slane %v541_v20, 1  ;;  %v496_v38 = vsel %vm468_vm6, %v493_v13, %v495_v24  ;;  %v549_v49 = vrot.slane %v542_v36, 1  ;;  %v725_v13 = vrot.slane %v4991_v52, 3 }
 0x140   : > { %v519_v18 = vrot.slane %v513_v9, 1  ;;  %v520_v19 = vrot.slane %v514_v10, 1  ;;  %v522_v34 = vrot.slane %v515_v23, 1  ;;  %v614_v40 = vmul.f32 %v612_v6, %v4974_v45 }
 0x141   : > { %v565_v5 = vpop.permute.xlu1 %564  ;;  %v615_v41 = vmul.f32 %v612_v6, %v4998_v54  ;;  %v616_v42 = vmul.f32 %v612_v6, %v5000_v56  ;;  %v548_v47 = vsel %vm468_vm6, %v546_v26, %v547_v27  ;;  %v597_v9 = vrot.slane %v4987_v51, 2 }
 0x142   : > { %450 = vrot.lane.b32.xlu0 %v446_v8, %s4622_s8  ;;  %432 = vrot.lane.b32.xlu1 %v427_v7, %s4621_s16  ;;  %v567_v28 = vmul.f32 %v565_v5, %v4974_v45  ;;  %v568_v29 = vmul.f32 %v565_v5, %v4998_v54  ;;  %v521_v32 = vsel %vm468_vm6, %v519_v18, %v520_v19  ;;  %v620_v2 = vrot.slane %v614_v40, 2 }
 0x143   : > { %v666_v15 = vpop.permute.xlu0 %665  ;;  %v569_v37 = vmul.f32 %v565_v5, %v5000_v56  ;;  %v523_v57 = vsel %vm468_vm6, %v520_v19, %v522_v34  ;;  %v621_v3 = vrot.slane %v615_v41, 2  ;;  %v623_v4 = vrot.slane %v616_v42, 2 }
 0x144   : > { %v573_v43 = vrot.slane %v567_v28, 1  ;;  %v574_v44 = vrot.slane %v568_v29, 1  ;;  %v668_v5 = vmul.f32 %v666_v15, %v4974_v45  ;;  %v469_v8 = vrot.slane %v4983_v50, 1 }
 0x145   : > { %v639_v11 = vpop.permute.xlu1 %638  ;;  %v576_v55 = vrot.slane %v569_v37, 1  ;;  %v5075_v10 = vmul.f32 %v666_v15, %v4998_v54  ;;  %v5082_v18 = vmul.f32 %v666_v15, %v5000_v56  ;;  %v622_v20 = vsel %vm596_vm7, %v620_v2, %v621_v3 }
 0x146   : > { %497 = vrot.lane.b32.xlu0 %v494_v22, %s4619_s18  ;;  %452 = vrot.lane.b32.xlu1 %v447_v16, %s4622_s8  ;;  %v641_v58 = vmul.f32 %v639_v11, %v4974_v45  ;;  %v642_v59 = vmul.f32 %v639_v11, %v4998_v54  ;;  %v643_v61 = vmul.f32 %v639_v11, %v5000_v56  ;;  %v674_v22 = vrot.slane %v668_v5, 2 }
 0x147   : > { %v5040_v25 = vpop.permute.xlu0 %739  ;;  %v575_v7 = vsel %vm468_vm6, %v573_v43, %v574_v44  ;;  %v550_v11 = vsel %vm468_vm6, %v547_v27, %v549_v49  ;;  %v577_v12 = vsel %vm468_vm6, %v574_v44, %v576_v55  ;;  %v624_v52 = vsel %vm596_vm7, %v621_v3, %v623_v4 }
 0x148   : > { %v647_v14 = vrot.slane %v641_v58, 2  ;;  %v648_v16 = vrot.slane %v642_v59, 2  ;;  %v650_v17 = vrot.slane %v643_v61, 2  ;;  %v675_v27 = vrot.slane %v5075_v10, 2 }
 0x149   : > { %v5034_v21 = vpop.permute.xlu1 %692  ;;  %v470_v42 = vrot.slane %v5012_v62, 1  ;;  %v591_v49 = vmul.f32 %v4959_v31, %v4998_v54  ;;  %v742_v55 = vmul.f32 %v5040_v25, %v4974_v45  ;;  %v592_v58 = vmul.f32 %v4959_v31, %v5000_v56 }
 0x14a   : > { %524 = vrot.lane.b32.xlu0 %v521_v32, %s4620_s9  ;;  %499 = vrot.lane.b32.xlu1 %v496_v38, %s4619_s18  ;;  %v695_v51 = vmul.f32 %v5034_v21, %v4974_v45  ;;  %v5095_v15 = vmul.f32 %v5034_v21, %v4998_v54  ;;  %v5099_v23 = vmul.f32 %v5034_v21, %v5000_v56  ;;  %v677_v21 = vrot.slane %v5082_v18, 2 }
 0x14b   : > { %v5052_v39 = vpop.permute.xlu0 %793  ;;  %v649_v36 = vsel %vm596_vm7, %v647_v14, %v648_v16  ;;  %v651_v37 = vsel %vm596_vm7, %v648_v16, %v650_v17  ;;  %v598_v59 = vrot.slane %v591_v49, 2  ;;  %v719_v61 = vmul.f32 %v4962_v33, %v4998_v54 }
 0x14c   : > { %v701_v38 = vrot.slane %v695_v51, 2  ;;  %v702_v43 = vrot.slane %v5095_v15, 2  ;;  %v720_v2 = vmul.f32 %v4962_v33, %v5000_v56  ;;  %v743_v3 = vmul.f32 %v5040_v25, %v4998_v54 }
 0x14d   : > { %v5044_v30 = vpop.permute.xlu1 %766  ;;  %v600_v4 = vrot.slane %v592_v58, 2  ;;  %v847_v5 = vmul.f32 %v4965_v35, %v4998_v54  ;;  %v848_v31 = vmul.f32 %v4965_v35, %v5000_v56  ;;  %v726_v10 = vrot.slane %v719_v61, 3  ;;  %v970_v58 = vld [vmem:[#allocation10] sm:$0xff] }
 0x14e   : > { %551 = vrot.lane.b32.xlu0 %v548_v47, %s4621_s16  ;;  %526 = vrot.lane.b32.xlu1 %v523_v57, %s4620_s9  ;;  %v472_v47 = vrot.slane %v5016_v63, 1  ;;  %v5140_v57 = vsel %vm468_vm6, %v469_v8, %v470_v42  ;;  %v5160_v8 = vsel %vm596_vm7, %v597_v9, %v598_v59  ;;  %v748_v9 = vrot.slane %v742_v55, 3 }
 0x14f   : > { %v5066_v0 = vpop.permute.xlu0 %867  ;;  %v5164_v33 = vsel %vm596_vm7, %v598_v59, %v600_v4  ;;  %v854_v14 = vrot.slane %v847_v5, 4  ;;  %v856_v16 = vrot.slane %v848_v31, 4  ;;  %v5169_v35 = vsel %vm724_vm9, %v725_v13, %v726_v10  ;;  %v971_v59 = vld [vmem:[#allocation10 + $0x8] sm:$0xff] }
 0x150   : > { %v5146_v63 = vsel %vm468_vm6, %v470_v42, %v472_v47  ;;  %v703_v13 = vsel %vm596_vm7, %v701_v38, %v702_v43  ;;  %v678_v15 = vsel %vm596_vm7, %v675_v27, %v677_v21  ;;  %v3613_v61 = vpack.c.bf16 %v971_v59, %v970_v58 }
 0x151   : > { %v5057_v46 = vpop.permute.xlu1 %820  ;;  %v5178_v51 = vsel %vm852_vm8, %v854_v14, %v856_v16  ;;  %v871_v5 = vmul.f32 %v5066_v0, %v4998_v54 }
 0x152   : > { %578 = vrot.lane.b32.xlu0 %v575_v7, %s4622_s8  ;;  %553 = vrot.lane.b32.xlu1 %v550_v11, %s4621_s16  ;;  %v676_v7 = vsel %vm596_vm7, %v674_v22, %v675_v27  ;;  %v728_v11 = vrot.slane %v720_v2, 3  ;;  %v744_v22 = vmul.f32 %v5040_v25, %v5000_v56  ;;  %v771_v25 = vmul.f32 %v5044_v30, %v5000_v56 }
 0x153   : > { %v5085_v50 = vpop.permute.xlu0 %921  ;;  %v823_v42 = vmul.f32 %v5057_v46, %v4974_v45  ;;  %v824_v47 = vmul.f32 %v5057_v46, %v4998_v54  ;;  %v870_v2 = vmul.f32 %v5066_v0, %v4974_v45  ;;  %3614 = vmatprep.subr.bf16.mxu0 %v3613_v61 }
 0x154   : > { %v924_v19 = vmul.f32 %v5085_v50, %v4974_v45  ;;  %v5103_v24 = vmul.f32 %v5085_v50, %v4998_v54  ;;  %v5172_v17 = vsel %vm724_vm9, %v726_v10, %v728_v11  ;;  %v778_v55 = vrot.slane %v771_v25, 3  ;;  %3616 = vmatpush3.bf16.msra.mxu0 %v3613_v61  ;;  %v972_v11 = vld [vmem:[#allocation10 + $0x10] sm:$0xff] }
 0x155   : > { %v5069_v6 = vpop.permute.xlu1 %894  ;;  %v830_v4 = vrot.slane %v824_v47, 3  ;;  %v876_v16 = vrot.slane %v870_v2, 4 }
 0x156   : > { %v930_v28 = vrot.slane %v924_v19, 4  ;;  %625 = vrot.lane.b32.xlu0 %v622_v20, %s4619_s18  ;;  %v931_v34 = vrot.slane %v5103_v24, 4  ;;  %580 = vrot.lane.b32.xlu1 %v577_v12, %s4622_s8  ;;  %v853_v12 = vrot.slane %v4995_v53, 4  ;;  %v749_v19 = vrot.slane %v743_v3, 3 }
 0x157   : > { %v769_v53 = vmul.f32 %v5044_v30, %v4974_v45  ;;  %v770_v20 = vmul.f32 %v5044_v30, %v4998_v54  ;;  %v798_v30 = vmul.f32 %v5052_v39, %v5000_v56  ;;  %v829_v3 = vrot.slane %v823_v42, 3 }
 0x158   : > { %v5126_v44 = vsel %vm852_vm8, %v930_v28, %v931_v34  ;;  %v5175_v18 = vsel %vm852_vm8, %v853_v12, %v854_v14  ;;  %v796_v28 = vmul.f32 %v5052_v39, %v4974_v45  ;;  %v750_v38 = vsel %vm724_vm9, %v748_v9, %v749_v19  ;;  %v973_v12 = vld [vmem:[#allocation10 + $0x18] sm:$0xff] }
 0x159   : > { %v5105_v26 = vpop.permute.xlu1 %948  ;;  %v3617_v14 = vpack.c.bf16 %v973_v12, %v972_v11  ;;  %v877_v9 = vrot.slane %v871_v5, 4 }
 0x15a   : > { %v951_v29 = vmul.f32 %v5105_v26, %v4974_v45  ;;  %v5112_v32 = vmul.f32 %v5105_v26, %v4998_v54  ;;  %652 = vrot.lane.b32.xlu0 %v649_v36, %s4620_s9  ;;  %627 = vrot.lane.b32.xlu1 %v624_v52, %s4619_s18  ;;  %v704_v52 = vrot.slane %v5099_v23, 2  ;;  %v776_v36 = vrot.slane %v770_v20, 3 }
 0x15b   : > { %v751_v23 = vrot.slane %v744_v22, 3  ;;  %v802_v21 = vrot.slane %v796_v28, 3  ;;  %3618 = vmatprep.subr.bf16.mxu0 %v3617_v14  ;;  %v974_v22 = vld [vmem:[#allocation10 + $0x20] sm:$0xff]  ;;  %v953_v47 = vmul.f32 %v5105_v26, %v5000_v56 }
 0x15c   : > { %v957_v40 = vrot.slane %v951_v29, 4  ;;  %v958_v41 = vrot.slane %v5112_v32, 4  ;;  %v775_v29 = vrot.slane %v769_v53, 3  ;;  %v705_v27 = vsel %vm596_vm7, %v702_v43, %v704_v52  ;;  %3620 = vmatpush3.bf16.msra.mxu0 %v3617_v14 }
 0x15d   : > { %v752_v43 = vsel %vm724_vm9, %v749_v19, %v751_v23  ;;  %v779_v10 = vsel %vm724_vm9, %v776_v36, %v778_v55  ;;  %v897_v19 = vmul.f32 %v5069_v6, %v4974_v45  ;;  %v898_v53 = vmul.f32 %v5069_v6, %v4998_v54  ;;  %v977_v23 = vld [vmem:[#allocation10 + $0x38] sm:$0xff] }
 0x15e   : > { %v5137_v62 = vsel %vm852_vm8, %v957_v40, %v958_v41  ;;  %679 = vrot.lane.b32.xlu0 %v676_v7, %s4621_s16  ;;  %654 = vrot.lane.b32.xlu1 %v651_v37, %s4620_s9  ;;  %v797_v37 = vmul.f32 %v5052_v39, %v4998_v54  ;;  %v777_v49 = vsel %vm724_vm9, %v775_v29, %v776_v36  ;;  %v805_v39 = vrot.slane %v798_v30, 3 }
 0x15f   : > { %v825_v7 = vmul.f32 %v5057_v46, %v5000_v56  ;;  %v831_v46 = vsel %vm724_vm9, %v829_v3, %v830_v4  ;;  %v903_v28 = vrot.slane %v897_v19, 4  ;;  %v904_v29 = vrot.slane %v898_v53, 4 }
 0x160   : > { %v803_v40 = vrot.slane %v797_v37, 3  ;;  %v878_v54 = vsel %vm852_vm8, %v876_v16, %v877_v9  ;;  %v899_v37 = vmul.f32 %v5069_v6, %v5000_v56  ;;  %v960_v55 = vrot.slane %v953_v47, 4 }
 0x161   : > { %v832_v20 = vrot.slane %v825_v7, 3 }
 0x162   : > { %706 = vrot.lane.b32.xlu0 %v703_v13, %s4622_s8  ;;  %681 = vrot.lane.b32.xlu1 %v678_v15, %s4621_s16  ;;  %v804_v31 = vsel %vm724_vm9, %v802_v21, %v803_v40  ;;  %v872_v13 = vmul.f32 %v5066_v0, %v5000_v56  ;;  %v806_v52 = vsel %vm724_vm9, %v803_v40, %v805_v39  ;;  %v975_v15 = vld [vmem:[#allocation10 + $0x28] sm:$0xff]  ;;  %v906_v21 = vrot.slane %v899_v37, 4 }
 0x163   : > { %v3621_v45 = vpack.c.bf16 %v975_v15, %v974_v22  ;;  %v833_v0 = vsel %vm724_vm9, %v830_v4, %v832_v20  ;;  %v926_v40 = vmul.f32 %v5085_v50, %v5000_v56  ;;  %v961_v56 = vsel %vm852_vm8, %v958_v41, %v960_v55 }
 0x164   : > { %v879_v36 = vrot.slane %v872_v13, 4 }
 0x165   : > { %3622 = vmatprep.subr.bf16.mxu0 %v3621_v45  ;;  %v933_v6 = vrot.slane %v926_v40, 4 }
 0x166   : > { %753 = vrot.lane.b32.xlu0 %v750_v38, %s4619_s18  ;;  %708 = vrot.lane.b32.xlu1 %v705_v27, %s4622_s8  ;;  %v976_v38 = vld [vmem:[#allocation10 + $0x30] sm:$0xff]  ;;  %v905_v27 = vsel %vm852_vm8, %v903_v28, %v904_v29  ;;  %v880_v42 = vsel %vm852_vm8, %v877_v9, %v879_v36 }
 0x167   : > { %3624 = vmatpush3.bf16.msra.mxu0 %v3621_v45  ;;  %v3625_v25 = vpack.c.bf16 %v977_v23, %v976_v38  ;;  %v934_v50 = vsel %vm852_vm8, %v931_v34, %v933_v6 }
 0x169   : > { %3626 = vmatprep.subr.bf16.mxu0 %v3625_v25 }
 0x16a   : > { %780 = vrot.lane.b32.xlu0 %v777_v49, %s4620_s9  ;;  %755 = vrot.lane.b32.xlu1 %v752_v43, %s4619_s18  ;;  %v907_v49 = vsel %vm852_vm8, %v904_v29, %v906_v21 }
 0x16b   : > { %3628 = vmatpush3.bf16.msra.mxu0 %v3625_v25 }
 0x16e   : > { %807 = vrot.lane.b32.xlu0 %v804_v31, %s4621_s16  ;;  %782 = vrot.lane.b32.xlu1 %v779_v10, %s4620_s9 }
 0x172   : > { %834 = vrot.lane.b32.xlu0 %v831_v46, %s4622_s8  ;;  %809 = vrot.lane.b32.xlu1 %v806_v52, %s4621_s16 }
 0x176   : > { %881 = vrot.lane.b32.xlu0 %v878_v54, %s4619_s18  ;;  %836 = vrot.lane.b32.xlu1 %v833_v0, %s4622_s8 }
 0x17a   : > { %908 = vrot.lane.b32.xlu0 %v905_v27, %s4620_s9  ;;  %883 = vrot.lane.b32.xlu1 %v880_v42, %s4619_s18  ;;  %s4526_s18 = scalar_lea.vmem %s5524_s30, 256 }
 0x17b   : > { %p4527_p7 = scmp.ne.s32.totalorder %s5524_s30, %s4526_s18 }
 0x17d   : > { %p4528_p12 = pnand %p4527_p7, %p5599_p4 }
 0x17e   : > { %935 = vrot.lane.b32.xlu0 %v5126_v44, %s4621_s16  ;;  %910 = vrot.lane.b32.xlu1 %v907_v49, %s4620_s9 }
 0x17f   : > { %p4529_p1 = pneg %p4528_p12 }
 0x182   : > { %962 = vrot.lane.b32.xlu0 %v5137_v62, %s4622_s8  ;;  %937 = vrot.lane.b32.xlu1 %v934_v50, %s4621_s16 }
 0x186   : > { %964 = vrot.lane.b32.xlu1 %v961_v56, %s4622_s8 }
 0x1a8   : > { %v391_v26 = vpop.permute.xlu0 %390 }
 0x1a9   : > { %v396_v43 = vadd.f32 %v391_v26, %v4979_v48 }
 0x1ac   : > { %v411_v44 = vpop.permute.xlu0 %410  ;;  %v393_v30 = vpop.permute.xlu1 %392 }
 0x1ad   : > { %v416_v24 = vadd.f32 %v411_v44, %v396_v43  ;;  %v397_v61 = vadd.f32 %v393_v30, %v5006_v60 }
 0x1b0   : > { %v431_v58 = vpop.permute.xlu0 %430  ;;  %v413_v59 = vpop.permute.xlu1 %412 }
 0x1b1   : > { %v436_v34 = vadd.f32 %v431_v58, %v416_v24  ;;  %v417_v4 = vadd.f32 %v413_v59, %v397_v61 }
 0x1b4   : > { %v451_v62 = vpop.permute.xlu0 %450  ;;  %v433_v2 = vpop.permute.xlu1 %432 }
 0x1b5   : > { %v456_v3 = vadd.f32 %v451_v62, %v436_v34  ;;  %v437_v41 = vadd.f32 %v433_v2, %v417_v4 }
 0x1b7   : > { %v476_v32 = vadd.f32 %v5140_v57, %v456_v3 }
 0x1b8   : > { %v498_v5 = vpop.permute.xlu0 %497  ;;  %v453_v31 = vpop.permute.xlu1 %452 }
 0x1b9   : > { %v457_v39 = vadd.f32 %v453_v31, %v437_v41  ;;  %v503_v11 = vadd.f32 %v498_v5, %v476_v32 }
 0x1bb   : > { %v477_v7 = vadd.f32 %v5146_v63, %v457_v39 }
 0x1bc   : > { %v525_v10 = vpop.permute.xlu0 %524  ;;  %v500_v48 = vpop.permute.xlu1 %499 }
 0x1bd   : > { %v530_v14 = vadd.f32 %v525_v10, %v503_v11  ;;  %v504_v60 = vadd.f32 %v500_v48, %v477_v7 }
 0x1c0   : > { %v552_v12 = vpop.permute.xlu0 %551  ;;  %v527_v16 = vpop.permute.xlu1 %526 }
 0x1c1   : > { %v557_v9 = vadd.f32 %v552_v12, %v530_v14  ;;  %v531_v20 = vadd.f32 %v527_v16, %v504_v60 }
 0x1c4   : > { %v579_v19 = vpop.permute.xlu0 %578  ;;  %v554_v53 = vpop.permute.xlu1 %553 }
 0x1c5   : > { %v584_v46 = vadd.f32 %v579_v19, %v557_v9  ;;  %v558_v13 = vadd.f32 %v554_v53, %v531_v20 }
 0x1c7   : > { %v604_v57 = vadd.f32 %v5160_v8, %v584_v46 }
 0x1c8   : > { %v626_v52 = vpop.permute.xlu0 %625  ;;  %v581_v22 = vpop.permute.xlu1 %580 }
 0x1c9   : > { %v585_v15 = vadd.f32 %v581_v22, %v558_v13  ;;  %v631_v29 = vadd.f32 %v626_v52, %v604_v57 }
 0x1cb   : > { %v605_v63 = vadd.f32 %v5164_v33, %v585_v15  ;;  %v1531_v15 = vld [vmem:[#allocation13 + $0x80] sm:$0xff] }
 0x1cc   : > { %v653_v45 = vpop.permute.xlu0 %652  ;;  %v628_v28 = vpop.permute.xlu1 %627 }
 0x1cd   : > { %v658_v36 = vadd.f32 %v653_v45, %v631_v29  ;;  %v632_v38 = vadd.f32 %v628_v28, %v605_v63  ;;  %v1532_v63 = vld [vmem:[#allocation13 + $0x88] sm:$0xff]  ;;  %v1515_v45 = vld [vmem:[#allocation13] sm:$0xff]  ;;  %v1533_v29 = vld [vmem:[#allocation13 + $0x90] sm:$0xff] }
 0x1ce   : > { %v3629_v1 = vpack.c.bf16 %v1532_v63, %v1531_v15  ;;  %v1516_v28 = vld [vmem:[#allocation13 + $0x8] sm:$0xff]  ;;  %v1525_v15 = vld [vmem:[#allocation13 + $0x50] sm:$0xff]  ;;  %v1526_v63 = vld [vmem:[#allocation13 + $0x58] sm:$0xff] }
 0x1d0   : > { %v680_v54 = vpop.permute.xlu0 %679  ;;  %v655_v37 = vpop.permute.xlu1 %654  ;;  %3630 = vmatprep.subr.bf16.mxu1 %v3629_v1  ;;  %v1543_v1 = vld [vmem:[#allocation13 + $0xe0] sm:$0xff] }
 0x1d1   : > { %v685_v0 = vadd.f32 %v680_v54, %v658_v36  ;;  %v659_v21 = vadd.f32 %v655_v37, %v632_v38  ;;  %v1534_v54 = vld [vmem:[#allocation13 + $0x98] sm:$0xff]  ;;  %v3631_v36 = vpack.c.bf16 %v1516_v28, %v1515_v45  ;;  %v1564_v38 = vld [vmem:[#allocation13 + $0x188] sm:$0xff] }
 0x1d2   : > { %v3633_v37 = vpack.c.bf16 %v1534_v54, %v1533_v29  ;;  %v1544_v28 = vld [vmem:[#allocation13 + $0xe8] sm:$0xff]  ;;  %v1557_v54 = vld [vmem:[#allocation13 + $0x150] sm:$0xff] }
 0x1d3   : > { %3632 = vmatpush3.bf16.msra.mxu1 %v3631_v36  ;;  %v1558_v36 = vld [vmem:[#allocation13 + $0x158] sm:$0xff] }
 0x1d4   : > { %v707_v23 = vpop.permute.xlu0 %706  ;;  %v682_v25 = vpop.permute.xlu1 %681  ;;  %3634 = vmatprep.subr.bf16.mxu1 %v3633_v37  ;;  %v3651_v37 = vpack.c.bf16 %v1526_v63, %v1525_v15 }
 0x1d5   : > { %v712_v27 = vadd.f32 %v707_v23, %v685_v0  ;;  %v686_v40 = vadd.f32 %v682_v25, %v659_v21  ;;  %v1563_v0 = vld [vmem:[#allocation13 + $0x180] sm:$0xff]  ;;  %v1517_v23 = vld [vmem:[#allocation13 + $0x10] sm:$0xff] }
 0x1d6   : > { %v3661_v25 = vpack.c.bf16 %v1564_v38, %v1563_v0  ;;  %v1547_v21 = vld [vmem:[#allocation13 + $0x100] sm:$0xff]  ;;  %v1576_v38 = vld [vmem:[#allocation13 + $0x1e8] sm:$0xff] }
 0x1d7   : > { %v732_v8 = vadd.f32 %v5169_v35, %v712_v27  ;;  %v1518_v27 = vld [vmem:[#allocation13 + $0x18] sm:$0xff]  ;;  %v1575_v0 = vld [vmem:[#allocation13 + $0x1e0] sm:$0xff] }
 0x1d8   : > { %v754_v42 = vpop.permute.xlu0 %753  ;;  %v709_v6 = vpop.permute.xlu1 %708  ;;  %3662 = vmatprep.subr.bf16.mxu0 %v3661_v25  ;;  %v1527_v25 = vld [vmem:[#allocation13 + $0x60] sm:$0xff] }
 0x1d9   : > { %v713_v47 = vadd.f32 %v709_v6, %v686_v40  ;;  %v759_v50 = vadd.f32 %v754_v42, %v732_v8  ;;  %v1548_v8 = vld [vmem:[#allocation13 + $0x108] sm:$0xff]  ;;  %v3635_v40 = vpack.c.bf16 %v1518_v27, %v1517_v23  ;;  %v1535_v6 = vld [vmem:[#allocation13 + $0xa0] sm:$0xff]  ;;  %v3653_v23 = vpack.c.bf16 %v1544_v28, %v1543_v1 }
 0x1da   : > { %v3663_v42 = vpack.c.bf16 %v1548_v8, %v1547_v21  ;;  %v1528_v27 = vld [vmem:[#allocation13 + $0x68] sm:$0xff]  ;;  %v3683_v21 = vpack.c.bf16 %v1558_v36, %v1557_v54  ;;  %v1545_v8 = vld [vmem:[#allocation13 + $0xf0] sm:$0xff] }
 0x1db   : > { %v733_v33 = vadd.f32 %v5172_v17, %v713_v47  ;;  %v1536_v47 = vld [vmem:[#allocation13 + $0xa8] sm:$0xff]  ;;  %3636 = vmatpush3.bf16.msra.mxu1 %v3635_v40  ;;  %v1546_v40 = vld [vmem:[#allocation13 + $0xf8] sm:$0xff] }
 0x1dc   : > { %v781_v49 = vpop.permute.xlu0 %780  ;;  %v756_v55 = vpop.permute.xlu1 %755 }
 0x1dd   : > { %v786_v26 = vadd.f32 %v781_v49, %v759_v50  ;;  %v760_v43 = vadd.f32 %v756_v55, %v733_v33  ;;  %v1565_v33 = vld [vmem:[#allocation13 + $0x190] sm:$0xff]  ;;  %v3637_v49 = vpack.c.bf16 %v1536_v47, %v1535_v6  ;;  %v1566_v55 = vld [vmem:[#allocation13 + $0x198] sm:$0xff]  ;;  %v1519_v50 = vld [vmem:[#allocation13 + $0x20] sm:$0xff]  ;;  %v3655_v6 = vpack.c.bf16 %v1528_v27, %v1527_v25 }
 0x1de   : > { %v3657_v47 = vpack.c.bf16 %v1546_v40, %v1545_v8 }
 0x1df   : > { %3638 = vmatprep.subr.bf16.mxu1 %v3637_v49  ;;  %v1530_v49 = vld [vmem:[#allocation13 + $0x78] sm:$0xff] }
 0x1e0   : > { %v808_v56 = vpop.permute.xlu0 %807  ;;  %v783_v44 = vpop.permute.xlu1 %782 }
 0x1e1   : > { %v813_v30 = vadd.f32 %v808_v56, %v786_v26  ;;  %v787_v34 = vadd.f32 %v783_v44, %v760_v43  ;;  %v1520_v56 = vld [vmem:[#allocation13 + $0x28] sm:$0xff]  ;;  %v3665_v26 = vpack.c.bf16 %v1566_v55, %v1565_v33  ;;  %v1549_v44 = vld [vmem:[#allocation13 + $0x110] sm:$0xff]  ;;  %v1559_v55 = vld [vmem:[#allocation13 + $0x160] sm:$0xff] }
 0x1e2   : > { %v1537_v43 = vld [vmem:[#allocation13 + $0xb0] sm:$0xff] }
 0x1e3   : > { %v1529_v33 = vld [vmem:[#allocation13 + $0x70] sm:$0xff] }
 0x1e4   : > { %v835_v58 = vpop.permute.xlu0 %834  ;;  %v810_v24 = vpop.permute.xlu1 %809 }
 0x1e5   : > { %v840_v59 = vadd.f32 %v835_v58, %v813_v30  ;;  %v814_v61 = vadd.f32 %v810_v24, %v787_v34  ;;  %v1550_v30 = vld [vmem:[#allocation13 + $0x118] sm:$0xff]  ;;  %v1568_v34 = vld [vmem:[#allocation13 + $0x1a8] sm:$0xff] }
 0x1e6   : > { %v3667_v58 = vpack.c.bf16 %v1550_v30, %v1549_v44  ;;  %v1538_v24 = vld [vmem:[#allocation13 + $0xb8] sm:$0xff] }
 0x1e7   : > { %v860_v35 = vadd.f32 %v5175_v18, %v840_v59  ;;  %v1567_v59 = vld [vmem:[#allocation13 + $0x1a0] sm:$0xff]  ;;  %v1578_v44 = vld [vmem:[#allocation13 + $0x1f8] sm:$0xff] }
 0x1e8   : > { %v882_v62 = vpop.permute.xlu0 %881  ;;  %v837_v2 = vpop.permute.xlu1 %836 }
 0x1e9   : > { %v841_v3 = vadd.f32 %v837_v2, %v814_v61  ;;  %v887_v41 = vadd.f32 %v882_v62, %v860_v35  ;;  %v3639_v35 = vpack.c.bf16 %v1520_v56, %v1519_v50  ;;  %v3669_v61 = vpack.c.bf16 %v1568_v34, %v1567_v59  ;;  %v1521_v62 = vld [vmem:[#allocation13 + $0x30] sm:$0xff]  ;;  %v1551_v2 = vld [vmem:[#allocation13 + $0x120] sm:$0xff]  ;;  %v1560_v56 = vld [vmem:[#allocation13 + $0x168] sm:$0xff] }
 0x1ea   : > { %v3659_v50 = vpack.c.bf16 %v1530_v49, %v1529_v33  ;;  %v1596_v59 = vld [vmem:[#allocation13 + $0x288] sm:$0xff] }
 0x1eb   : > { %v861_v17 = vadd.f32 %v5178_v51, %v841_v3  ;;  %v3064_v51 = vld [vmem:[#allocation11] ss:$0 sm:$0xff]  ;;  %v3641_v3 = vpack.c.bf16 %v1538_v24, %v1537_v43  ;;  %3640 = vmatpush3.bf16.msra.mxu1 %v3639_v35  ;;  %v3687_v43 = vpack.c.bf16 %v1560_v56, %v1559_v55  ;;  %v1595_v24 = vld [vmem:[#allocation13 + $0x280] sm:$0xff] }
 0x1ec   : > { %v909_v4 = vpop.permute.xlu0 %908  ;;  %v884_v32 = vpop.permute.xlu1 %883  ;;  %v3693_v35 = vpack.c.bf16 %v1596_v59, %v1595_v24 }
 0x1ed   : > { %v914_v31 = vadd.f32 %v909_v4, %v887_v41  ;;  %v888_v10 = vadd.f32 %v884_v32, %v861_v17  ;;  %v1522_v17 = vld [vmem:[#allocation13 + $0x38] sm:$0xff]  ;;  %v1552_v4 = vld [vmem:[#allocation13 + $0x128] sm:$0xff]  ;;  %v1539_v32 = vld [vmem:[#allocation13 + $0xc0] sm:$0xff]  ;;  %3642 = vmatprep.subr.bf16.mxu1 %v3641_v3 }
 0x1ee   : > { %v3671_v41 = vpack.c.bf16 %v1552_v4, %v1551_v2  ;;  %v1628_v4 = vld [vmem:[#allocation13 + $0x388] sm:$0xff] }
 0x1f0   : > { %v936_v5 = vpop.permute.xlu0 %935  ;;  %v911_v39 = vpop.permute.xlu1 %910 }
 0x1f1   : > { %v941_v7 = vadd.f32 %v936_v5, %v914_v31  ;;  %v915_v14 = vadd.f32 %v911_v39, %v888_v10  ;;  %v1540_v5 = vld [vmem:[#allocation13 + $0xc8] sm:$0xff]  ;;  %v1569_v31 = vld [vmem:[#allocation13 + $0x1b0] sm:$0xff]  ;;  %v1570_v39 = vld [vmem:[#allocation13 + $0x1b8] sm:$0xff] }
 0x1f2   : > { %v1553_v10 = vld [vmem:[#allocation13 + $0x130] sm:$0xff] }
 0x1f4   : > { %v963_v48 = vpop.permute.xlu0 %962  ;;  %v938_v11 = vpop.permute.xlu1 %937 }
 0x1f5   : > { %v968_v12 = vadd.f32 %v963_v48, %v941_v7  ;;  %v942_v18 = vadd.f32 %v938_v11, %v915_v14  ;;  %v3673_v7 = vpack.c.bf16 %v1570_v39, %v1569_v31  ;;  %v1554_v48 = vld [vmem:[#allocation13 + $0x138] sm:$0xff]  ;;  %v3643_v11 = vpack.c.bf16 %v1522_v17, %v1521_v62  ;;  %v1627_v17 = vld [vmem:[#allocation13 + $0x380] sm:$0xff] }
 0x1f6   : > { %v3645_v14 = vpack.c.bf16 %v1540_v5, %v1539_v32  ;;  %v1562_v62 = vld [vmem:[#allocation13 + $0x178] sm:$0xff]  ;;  %v3725_v32 = vpack.c.bf16 %v1628_v4, %v1627_v17 }
 0x1f7   : > { %3575 = vmatprep.mubr.msk.f32.mxu0 %vm985_vm10, %v968_v12  ;;  %v1571_v12 = vld [vmem:[#allocation13 + $0x1c0] sm:$0xff]  ;;  %3644 = vmatpush3.bf16.msra.mxu1 %v3643_v11  ;;  %v1598_v17 = vld [vmem:[#allocation13 + $0x298] sm:$0xff] }
 0x1f8   : > { %v965_v16 = vpop.permute.xlu1 %964  ;;  %3646 = vmatprep.subr.bf16.mxu1 %v3645_v14 }
 0x1f9   : > { %v969_v9 = vadd.f32 %v965_v16, %v942_v18  ;;  %v1523_v18 = vld [vmem:[#allocation13 + $0x40] sm:$0xff]  ;;  %v1524_v16 = vld [vmem:[#allocation13 + $0x48] sm:$0xff] }
 0x1fb   : > { %3576 = vmatmul.mubr.msk.f32.vlgmr.msra.gmra.mrb[0].mxu0 %vm985_vm10, %v969_v9  ;;  %v1572_v9 = vld [vmem:[#allocation13 + $0x1c8] sm:$0xff]  ;;  %vm1109_vm10 = vcmask 123904  }
 0x1fc   : > { %3664 = vmatpush3.bf16.msra.mxu0 %v3663_v42  ;;  %v3685_v42 = vpack.c.bf16 %v1576_v38, %v1575_v0 }
 0x1fd   : > { %3666 = vmatprep.subr.bf16.mxu0 %v3665_v26  ;;  %v1577_v26 = vld [vmem:[#allocation13 + $0x1f0] sm:$0xff] }
 0x200   : > { %3668 = vmatpush3.bf16.msra.mxu0 %v3667_v58  ;;  %v3689_v58 = vpack.c.bf16 %v1578_v44, %v1577_v26 }
 0x201   : > { %3670 = vmatprep.subr.bf16.mxu0 %v3669_v61  ;;  %v1561_v61 = vld [vmem:[#allocation13 + $0x170] sm:$0xff] }
 0x202   : > { %v3691_v2 = vpack.c.bf16 %v1562_v62, %v1561_v61  ;;  %v1580_v61 = vld [vmem:[#allocation13 + $0x208] sm:$0xff] }
 0x204   : > { %3672 = vmatpush3.bf16.msra.mxu0 %v3671_v41 }
 0x205   : > { %3674 = vmatprep.subr.bf16.mxu0 %v3673_v7 }
 0x2ce   : > { %v3577_v60 = vpop.f32.mrb[0].mxu0 }
 0x2cf   : > { %v1064_v19 = vadd.f32 %v3577_v60, %v3064_v51  ;;  %v1058_v53 = vpop.f32.mrb[1].mxu0  ;;  %v1541_v60 = vld [vmem:[#allocation13 + $0xd0] sm:$0xff] }
 0x2d0   : > { %v1059_v46 = vadd.f32 %v3064_v51, %v1058_v53  ;;  %v3675_v51 = vpack.c.bf16 %v1554_v48, %v1553_v10  ;;  %v3677_v53 = vpack.c.bf16 %v1572_v9, %v1571_v12 }
 0x2d1   : > { %v1068_v20 = vmax.f32 %v1064_v19, 0.0  ;;  %v1542_v19 = vld [vmem:[#allocation13 + $0xd8] sm:$0xff] }
 0x2d2   : > { %v1067_v57 = vmax.f32 %v1059_v46, 0.0  ;;  %v1555_v46 = vld [vmem:[#allocation13 + $0x140] sm:$0xff]  ;;  %3676 = vmatpush3.bf16.msra.mxu0 %v3675_v51 }
 0x2d3   : > { %v1089_v13 = vrot.slane %v1068_v20, 6  ;;  %v1556_v20 = vld [vmem:[#allocation13 + $0x148] sm:$0xff]  ;;  %3678 = vmatprep.subr.bf16.mxu0 %v3677_v53 }
 0x2d4   : > { %v1088_v52 = vrot.slane %v1067_v57, 6  ;;  %v3647_v57 = vpack.c.bf16 %v1524_v16, %v1523_v18  ;;  %v3679_v45 = vpack.c.bf16 %v1556_v20, %v1555_v46 }
 0x2d6   : > { %1091 = vrot.lane.b32.xlu0 %v1088_v52, %s4618_s25  ;;  %v1090_v22 = vsel %vm1087_vm1, %v1088_v52, %v1089_v13  ;;  %v1574_v52 = vld [vmem:[#allocation13 + $0x1d8] sm:$0xff]  ;;  %3648 = vmatpush3.bf16.msra.mxu1 %v3647_v57 }
 0x2d7   : > { %1093 = vrot.lane.b32.xlu1 %v1090_v22, %s4618_s25  ;;  %v3649_v22 = vpack.c.bf16 %v1542_v19, %v1541_v60  ;;  %3680 = vmatpush3.bf16.msra.mxu0 %v3679_v45 }
 0x2d9   : > { %3650 = vmatprep.subr.bf16.mxu1 %v3649_v22 }
 0x2da   : > { %3652 = vmatpush3.bf16.msra.mxu1 %v3651_v37 }
 0x2db   : > { %1095 = vrot.lane.b32.xlu1 %v1089_v13, %s4618_s25  ;;  %v1573_v13 = vld [vmem:[#allocation13 + $0x1d0] sm:$0xff]  ;;  %3654 = vmatprep.subr.bf16.mxu1 %v3653_v23  ;;  %s5529_s25 = scalar_lea.hbm %s5580_s6, %s3074_s15 }
 0x2dc   : > { %v3681_v29 = vpack.c.bf16 %v1574_v52, %v1573_v13 }
 0x2de   : > { %3682 = vmatprep.subr.bf16.mxu0 %v3681_v29  ;;  %3656 = vmatpush3.bf16.msra.mxu1 %v3655_v6 }
 0x2df   : > { %3684 = vmatpush3.bf16.msra.mxu0 %v3683_v21  ;;  %3658 = vmatprep.subr.bf16.mxu1 %v3657_v47 }
 0x2e0   : > { %3686 = vmatprep.subr.bf16.mxu0 %v3685_v42 }
 0x2e2   : > { %3660 = vmatpush3.bf16.msra.mxu1 %v3659_v50 }
 0x2e3   : > { %3688 = vmatpush3.bf16.msra.mxu0 %v3687_v43  ;;  %3694 = vmatprep.subr.bf16.mxu1 %v3693_v35  ;;  %v1579_v35 = vld [vmem:[#allocation13 + $0x200] sm:$0xff] }
 0x2e4   : > { %3690 = vmatprep.subr.bf16.mxu0 %v3689_v58 }
 0x2e7   : > { %3692 = vmatpush3.bf16.msra.mxu0 %v3691_v2 }
 0x2e8   : > { %3726 = vmatprep.subr.bf16.mxu0 %v3725_v32 }
 0x348   : > { %v1092_v30 = vpop.permute.xlu0 %1091 }
 0x349   : > { %1101 = vst.msk [vmem:[#allocation3] sm:$0xfc] %vm1100_vm2, %v1092_v30  ;;  %v1094_v34 = vpop.permute.xlu1 %1093 }
 0x34a   : > { %1103 = vst.msk [vmem:[#allocation3 + $0x8] sm:$0xfc] %vm1102_vm3, %v1092_v30 }
 0x34b   : > { %1105 = vst.msk [vmem:[#allocation3 + $0x10] sm:$0xff] %vm1104_vm4, %v1094_v34 }
 0x34c   : > { %1106 = vst.msk [vmem:[#allocation3 + $0x18] sm:$0xff] %vm1075_vm12, %v1094_v34 }
 0x34d   : > { %v1096_v3 = vpop.permute.xlu1 %1095 }
 0x34e   : > { %1108 = vst.msk [vmem:[#allocation3 + $0x20] sm:$0x3] %vm1107_vm5, %v1096_v3 }
 0x34f   : > { %1110 = vst.msk [vmem:[#allocation3 + $0x28] sm:$0x3] %vm1109_vm10, %v1096_v3  ;;  %v1597_v3 = vld [vmem:[#allocation13 + $0x290] sm:$0xff] }
 0x350   : > { %v5283_v41 = vld [vmem:[#allocation3] sm:$0xff] }
 0x351   : > { %v5285_v5 = vld [vmem:[#allocation3 + $0x8] sm:$0xff]  ;;  %v1184_v10 = vrot.slane %v5283_v41, 1  ;;  %v1255_v46 = vrot.slane %v5283_v41, 2  ;;  %v1325_v54 = vrot.slane %v5283_v41, 3  ;;  %v1395_v6 = vrot.slane %v5283_v41, 4 }
 0x352   : > { %v4156_v31 = vpack.i.bf16 %v5285_v5, %v5283_v41  ;;  %v5291_v39 = vld [vmem:[#allocation3 + $0x10] sm:$0xff]  ;;  %v1194_v11 = vrot.slane %v5285_v5, 1  ;;  %v1264_v52 = vrot.slane %v5285_v5, 2  ;;  %v1334_v38 = vrot.slane %v5285_v5, 3 }
 0x353   : > { %v5293_v7 = vld [vmem:[#allocation3 + $0x18] sm:$0xff]  ;;  %v1185_v48 = vrot.slane %v5291_v39, 1  ;;  %v1256_v20 = vrot.slane %v5291_v39, 2  ;;  %v1326_v36 = vrot.slane %v5291_v39, 3  ;;  %v1396_v47 = vrot.slane %v5291_v39, 4 }
 0x354   : > { %4157 = vrot.lane.b32.xlu0 %v4156_v31, %s4620_s9  ;;  %4167 = vrot.lane.b32.xlu1 %v4156_v31, %s4622_s8  ;;  %v1195_v12 = vrot.slane %v5293_v7, 1  ;;  %v4186_v14 = vpack.i.bf16 %v5293_v7, %v5291_v39  ;;  %v1265_v22 = vrot.slane %v5293_v7, 2  ;;  %v1335_v23 = vrot.slane %v5293_v7, 3 }
 0x355   : > { %v5304_v18 = vsel %vm468_vm6, %v1184_v10, %v1185_v48  ;;  %v5309_v9 = vld [vmem:[#allocation3 + $0x20] sm:$0xf]  ;;  %v5330_v63 = vsel %vm596_vm7, %v1255_v46, %v1256_v20  ;;  %v5356_v27 = vsel %vm724_vm9, %v1325_v54, %v1326_v36  ;;  %v1404_v55 = vrot.slane %v5285_v5, 4  ;;  %v1630_v46 = vld [vmem:[#allocation13 + $0x398] sm:$0xff] }
 0x356   : > { %v1196_v16 = vsel %vm468_vm6, %v1194_v11, %v1195_v12  ;;  %v5311_v51 = vld [vmem:[#allocation3 + $0x28] sm:$0xf]  ;;  %v1187_v19 = vrot.slane %v5309_v9, 1  ;;  %v1266_v45 = vsel %vm596_vm7, %v1264_v52, %v1265_v22  ;;  %v1258_v28 = vrot.slane %v5309_v9, 2  ;;  %v1611_v11 = vld [vmem:[#allocation13 + $0x300] sm:$0xff] }
 0x357   : > { %v4196_v60 = vpack.i.bf16 %v1196_v16, %v5304_v18  ;;  %v1197_v53 = vrot.slane %v5311_v51, 1  ;;  %v4226_v1 = vpack.i.bf16 %v1266_v45, %v5330_v63  ;;  %v1267_v29 = vrot.slane %v5311_v51, 2  ;;  %v1613_v54 = vld [vmem:[#allocation13 + $0x310] sm:$0xff] }
 0x358   : > { %4162 = vrot.lane.b32.xlu0 %v4156_v31, %s4623_s11  ;;  %4177 = vrot.lane.b32.xlu1 %v4156_v31, %s4624_s12  ;;  %v5321_v57 = vsel %vm468_vm6, %v1185_v48, %v1187_v19  ;;  %v5347_v37 = vsel %vm596_vm7, %v1256_v20, %v1258_v28  ;;  %v1336_v21 = vsel %vm724_vm9, %v1334_v38, %v1335_v23  ;;  %v1328_v40 = vrot.slane %v5309_v9, 3  ;;  %v1581_v31 = vld [vmem:[#allocation13 + $0x210] sm:$0xff]  ;;  %v1600_v19 = vld [vmem:[#allocation13 + $0x2a8] sm:$0xff] }
 0x359   : > { %v1198_v13 = vsel %vm468_vm6, %v1195_v12, %v1197_v53  ;;  %v1268_v0 = vsel %vm596_vm7, %v1265_v22, %v1267_v29  ;;  %v4276_v8 = vpack.i.bf16 %v1336_v21, %v5356_v27  ;;  %v1337_v42 = vrot.slane %v5311_v51, 3  ;;  %v1612_v12 = vld [vmem:[#allocation13 + $0x308] sm:$0xff]  ;;  %v1629_v53 = vld [vmem:[#allocation13 + $0x390] sm:$0xff] }
 0x35a   : > { %v4216_v15 = vpack.i.bf16 %v1198_v13, %v5321_v57  ;;  %v4251_v25 = vpack.i.bf16 %v1268_v0, %v5347_v37  ;;  %v5369_v33 = vsel %vm724_vm9, %v1326_v36, %v1328_v40  ;;  %v1405_v50 = vrot.slane %v5293_v7, 4  ;;  %v1582_v7 = vld [vmem:[#allocation13 + $0x218] sm:$0xff]  ;;  %v1584_v29 = vld [vmem:[#allocation13 + $0x228] sm:$0xff]  ;;  %v1631_v40 = vld [vmem:[#allocation13 + $0x3a0] sm:$0xff] }
 0x35b   : > { %v1338_v49 = vsel %vm724_vm9, %v1335_v23, %v1337_v42  ;;  %v5378_v26 = vsel %vm852_vm8, %v1395_v6, %v1396_v47  ;;  %v1398_v43 = vrot.slane %v5309_v9, 4  ;;  %v1407_v58 = vrot.slane %v5311_v51, 4  ;;  %v1614_v36 = vld [vmem:[#allocation13 + $0x318] sm:$0xff]  ;;  %v1601_v23 = vld [vmem:[#allocation13 + $0x2b0] sm:$0xff]  ;;  %v1632_v42 = vld [vmem:[#allocation13 + $0x3a8] sm:$0xff] }
 0x35c   : > { %4187 = vrot.lane.b32.xlu1 %v4186_v14, %s4622_s8  ;;  %4172 = vrot.lane.b32.xlu0 %v4186_v14, %s4620_s9  ;;  %v4296_v56 = vpack.i.bf16 %v1338_v49, %v5369_v33  ;;  %v1406_v44 = vsel %vm852_vm8, %v1404_v55, %v1405_v50  ;;  %vm1131_vm6 = vcmask 982016   ;;  %v3695_v5 = vpack.c.bf16 %v1580_v61, %v1579_v35  ;;  %v1585_v49 = vld [vmem:[#allocation13 + $0x230] sm:$0xff]  ;;  %v1586_v55 = vld [vmem:[#allocation13 + $0x238] sm:$0xff]  ;;  %v1604_v61 = vld [vmem:[#allocation13 + $0x2c8] sm:$0xff] }
 0x35d   : > { %v4306_v30 = vpack.i.bf16 %v1406_v44, %v5378_v26  ;;  %v5391_v24 = vsel %vm852_vm8, %v1396_v47, %v1398_v43  ;;  %v1408_v59 = vsel %vm852_vm8, %v1405_v50, %v1407_v58  ;;  %v3697_v48 = vpack.c.bf16 %v1598_v17, %v1597_v3  ;;  %v1615_v44 = vld [vmem:[#allocation13 + $0x320] sm:$0xff] }
 0x35e   : > { %v4336_v34 = vpack.i.bf16 %v1408_v59, %v5391_v24  ;;  %vm1161_vm7 = vcmask 850944   ;;  %vm1146_vm8 = vcmask 916480   ;;  %v3699_v52 = vpack.c.bf16 %v1582_v7, %v1581_v31  ;;  %v1603_v43 = vld [vmem:[#allocation13 + $0x2c0] sm:$0xff]  ;;  %v1588_v31 = vld [vmem:[#allocation13 + $0x248] sm:$0xff] }
 0x35f   : > { %v3727_v22 = vpack.c.bf16 %v1612_v12, %v1611_v11  ;;  %v3729_v28 = vpack.c.bf16 %v1630_v46, %v1629_v53  ;;  %v3731_v47 = vpack.c.bf16 %v1614_v36, %v1613_v54  ;;  %v3733_v35 = vpack.c.bf16 %v1632_v42, %v1631_v40  ;;  %v1617_v11 = vld [vmem:[#allocation13 + $0x330] sm:$0xff]  ;;  %v1618_v12 = vld [vmem:[#allocation13 + $0x338] sm:$0xff]  ;;  %v1608_v36 = vld [vmem:[#allocation13 + $0x2e8] sm:$0xff] }
 0x360   : > { %4182 = vrot.lane.b32.xlu0 %v4186_v14, %s4623_s11  ;;  %4197 = vrot.lane.b32.xlu1 %v4196_v60, %s4620_s9  ;;  %v1621_v42 = vld [vmem:[#allocation13 + $0x350] sm:$0xff]  ;;  %vm1176_vm9 = vcmask 785408  }
 0x364   : > { %4207 = vrot.lane.b32.xlu1 %v4196_v60, %s4624_s12  ;;  %4192 = vrot.lane.b32.xlu0 %v4196_v60, %s4622_s8 }
 0x368   : > { %4202 = vrot.lane.b32.xlu0 %v4186_v14, %s4624_s12  ;;  %4217 = vrot.lane.b32.xlu1 %v4216_v15, %s4622_s8  ;;  %v1599_v14 = vld [vmem:[#allocation13 + $0x2a0] sm:$0xff] }
 0x36c   : > { %4212 = vrot.lane.b32.xlu0 %v4196_v60, %s4623_s11  ;;  %4227 = vrot.lane.b32.xlu1 %v4226_v1, %s4620_s9 }
 0x370   : > { %4222 = vrot.lane.b32.xlu0 %v4216_v15, %s4620_s9  ;;  %4237 = vrot.lane.b32.xlu1 %v4216_v15, %s4623_s11 }
 0x374   : > { %4232 = vrot.lane.b32.xlu0 %v4216_v15, %s4624_s12  ;;  %4247 = vrot.lane.b32.xlu1 %v4226_v1, %s4622_s8  ;;  %v1583_v15 = vld [vmem:[#allocation13 + $0x220] sm:$0xff] }
 0x375   : > { %v3703_v6 = vpack.c.bf16 %v1584_v29, %v1583_v15  ;;  %v1607_v29 = vld [vmem:[#allocation13 + $0x2e0] sm:$0xff] }
 0x378   : > { %4242 = vrot.lane.b32.xlu0 %v4226_v1, %s4623_s11  ;;  %4257 = vrot.lane.b32.xlu1 %v4226_v1, %s4624_s12  ;;  %v3701_v1 = vpack.c.bf16 %v1600_v19, %v1599_v14  ;;  %v1605_v14 = vld [vmem:[#allocation13 + $0x2d0] sm:$0xff]  ;;  %v1636_v19 = vld [vmem:[#allocation13 + $0x3c8] sm:$0xff] }
 0x37c   : > { %4252 = vrot.lane.b32.xlu0 %v4251_v25, %s4620_s9  ;;  %4267 = vrot.lane.b32.xlu1 %v4251_v25, %s4622_s8 }
 0x380   : > { %4262 = vrot.lane.b32.xlu0 %v4251_v25, %s4623_s11  ;;  %4277 = vrot.lane.b32.xlu1 %v4276_v8, %s4620_s9 }
 0x384   : > { %4272 = vrot.lane.b32.xlu0 %v4276_v8, %s4622_s8  ;;  %4287 = vrot.lane.b32.xlu1 %v4276_v8, %s4624_s12 }
 0x388   : > { %4282 = vrot.lane.b32.xlu0 %v4251_v25, %s4624_s12  ;;  %4297 = vrot.lane.b32.xlu1 %v4296_v56, %s4622_s8  ;;  %v1602_v25 = vld [vmem:[#allocation13 + $0x2b8] sm:$0xff] }
 0x38c   : > { %4292 = vrot.lane.b32.xlu0 %v4276_v8, %s4623_s11  ;;  %4307 = vrot.lane.b32.xlu1 %v4306_v30, %s4620_s9 }
 0x390   : > { %4302 = vrot.lane.b32.xlu0 %v4296_v56, %s4620_s9  ;;  %4317 = vrot.lane.b32.xlu1 %v4296_v56, %s4623_s11 }
 0x394   : > { %4312 = vrot.lane.b32.xlu0 %v4296_v56, %s4624_s12  ;;  %4327 = vrot.lane.b32.xlu1 %v4306_v30, %s4622_s8  ;;  %v3705_v56 = vpack.c.bf16 %v1602_v25, %v1601_v23 }
 0x398   : > { %4322 = vrot.lane.b32.xlu0 %v4306_v30, %s4623_s11  ;;  %4337 = vrot.lane.b32.xlu1 %v4336_v34, %s4623_s11 }
 0x39c   : > { %4332 = vrot.lane.b32.xlu0 %v4336_v34, %s4620_s9  ;;  %4347 = vrot.lane.b32.xlu1 %v4306_v30, %s4624_s12  ;;  %v1616_v30 = vld [vmem:[#allocation13 + $0x328] sm:$0xff]  ;;  %s4530_s9 = sshll.u32 %s4625_s27, 4  ;;  %s4531_s9 = int_to_ptr.vmem [resolvable:$false] %s4530_s9 }
 0x39d   : > { %s4532_s16 = scalar_lea.vmem %s4531_s9, 512  ;;  %p4533_p13 = scmp.lt.s32.totalorder %s5524_s30, %s4531_s9 }
 0x39e   : > { %p4534_p0 = scmp.lt.s32.totalorder %s4532_s16, %s4526_s18 }
 0x3a0   : > { %4342 = vrot.lane.b32.xlu0 %v4336_v34, %s4622_s8  ;;  %p4535_p2 = por %p4534_p0, %p4533_p13 }
 0x3a2   : > { %p4536_p8 = pnand %p4535_p2, %p4529_p1 }
 0x3a4   : > { %4352 = vrot.lane.b32.xlu0 %v4336_v34, %s4624_s12 }
 0x3c6   : > { %v4158_v62 = vpop.permute.xlu0 %4157  ;;  %v4168_v2 = vpop.permute.xlu1 %4167 }
 0x3c7   : > { %v4160_v4 = vunpack.i.h.bf16 %v4158_v62  ;;  %v4159_v32 = vunpack.i.l.bf16 %v4158_v62  ;;  %v4170_v16 = vunpack.i.h.bf16 %v4168_v2  ;;  %v4169_v9 = vunpack.i.l.bf16 %v4168_v2  ;;  %v1633_v62 = vld [vmem:[#allocation13 + $0x3b0] sm:$0xff]  ;;  %v1634_v2 = vld [vmem:[#allocation13 + $0x3b8] sm:$0xff] }
 0x3c9   : > { %v1132_v10 = vsel %vm1131_vm6, %v4159_v32, %v4160_v4  ;;  %v1147_v38 = vsel %vm1146_vm8, %v4169_v9, %v4170_v16  ;;  %v3707_v4 = vpack.c.bf16 %v1586_v55, %v1585_v49  ;;  %v3735_v32 = vpack.c.bf16 %v1616_v30, %v1615_v44  ;;  %v1606_v9 = vld [vmem:[#allocation13 + $0x2d8] sm:$0xff]  ;;  %v1639_v55 = vld [vmem:[#allocation13 + $0x3e0] sm:$0xff] }
 0x3ca   : > { %v4163_v51 = vpop.permute.xlu0 %4162  ;;  %1986 = vmatprep.mubr.f32.mxu1 %v1132_v10  ;;  %v5404_v60 = vpop.permute.xlu1 %4177  ;;  %v3709_v10 = vpack.c.bf16 %v1604_v61, %v1603_v43  ;;  %v3713_v15 = vpack.c.bf16 %v1606_v9, %v1605_v14  ;;  %v1610_v49 = vld [vmem:[#allocation13 + $0x2f8] sm:$0xff]  ;;  %v1623_v61 = vld [vmem:[#allocation13 + $0x360] sm:$0xff]  ;;  %v1661_v9 = vld [vmem:[#allocation13 + $0x490] sm:$0xff] }
 0x3cb   : > { %v4165_v20 = vunpack.i.h.bf16 %v4163_v51  ;;  %v4164_v13 = vunpack.i.l.bf16 %v4163_v51  ;;  %1987 = vmatmul.mubr.f32.vlgmr.msra.gmra.mrb[0].mxu1 %v5283_v41  ;;  %v1635_v51 = vld [vmem:[#allocation13 + $0x3c0] sm:$0xff] }
 0x3cc   : > { %3696 = vmatpush3.bf16.msra.mxu1 %v3695_v5  ;;  %v1587_v5 = vld [vmem:[#allocation13 + $0x240] sm:$0xff] }
 0x3cd   : > { %v1162_v45 = vsel %vm1161_vm7, %v4164_v13, %v4165_v20  ;;  %3698 = vmatprep.subr.bf16.mxu1 %v3697_v48  ;;  %v3737_v48 = vpack.c.bf16 %v1634_v2, %v1633_v62  ;;  %v3739_v20 = vpack.c.bf16 %v1618_v12, %v1617_v11  ;;  %v1589_v13 = vld [vmem:[#allocation13 + $0x250] sm:$0xff]  ;;  %v1624_v62 = vld [vmem:[#allocation13 + $0x368] sm:$0xff]  ;;  %v1659_v2 = vld [vmem:[#allocation13 + $0x480] sm:$0xff] }
 0x3ce   : > { %2061 = vmatprep.mubr.f32.mxu0 %v1162_v45  ;;  %v4173_v0 = vpop.permute.xlu0 %4172  ;;  %v4188_v8 = vpop.permute.xlu1 %4187  ;;  %v3741_v45 = vpack.c.bf16 %v1636_v19, %v1635_v51  ;;  %v1662_v19 = vld [vmem:[#allocation13 + $0x498] sm:$0xff] }
 0x3cf   : > { %v4175_v41 = vunpack.i.h.bf16 %v4173_v0  ;;  %v4174_v21 = vunpack.i.l.bf16 %v4173_v0  ;;  %2062 = vmatmul.mubr.f32.vlgmr.msra.gmra.mrb[2].mxu0 %v1147_v38  ;;  %v4190_v58 = vunpack.i.h.bf16 %v4188_v8  ;;  %v4189_v59 = vunpack.i.l.bf16 %v4188_v8  ;;  %v1637_v0 = vld [vmem:[#allocation13 + $0x3d0] sm:$0xff]  ;;  %v1638_v38 = vld [vmem:[#allocation13 + $0x3d8] sm:$0xff] }
 0x3d0   : > { %3700 = vmatpush3.bf16.msra.mxu1 %v3699_v52  ;;  %3728 = vmatpush3.bf16.msra.mxu0 %v3727_v22  ;;  %v1590_v52 = vld [vmem:[#allocation13 + $0x258] sm:$0xff]  ;;  %v3717_v8 = vpack.c.bf16 %v1608_v36, %v1607_v29  ;;  %v3745_v40 = vpack.c.bf16 %v1638_v38, %v1637_v0 }
 0x3d1   : > { %3702 = vmatprep.subr.bf16.mxu1 %v3701_v1  ;;  %v1133_v50 = vsel %vm1131_vm6, %v4174_v21, %v4175_v41  ;;  %3730 = vmatprep.subr.bf16.mxu0 %v3729_v28  ;;  %v1619_v1 = vld [vmem:[#allocation13 + $0x340] sm:$0xff]  ;;  %v1620_v28 = vld [vmem:[#allocation13 + $0x348] sm:$0xff]  ;;  %v3715_v23 = vpack.c.bf16 %v1590_v52, %v1589_v13  ;;  %v1645_v13 = vld [vmem:[#allocation13 + $0x410] sm:$0xff] }
 0x3d2   : > { %v4183_v34 = vpop.permute.xlu0 %4182  ;;  %1991 = vmatprep.mubr.f32.mxu1 %v1133_v50  ;;  %v5415_v54 = vpop.permute.xlu1 %4197  ;;  %v3743_v25 = vpack.c.bf16 %v1620_v28, %v1619_v1  ;;  %v1591_v41 = vld [vmem:[#allocation13 + $0x260] sm:$0xff]  ;;  %v1592_v21 = vld [vmem:[#allocation13 + $0x268] sm:$0xff] }
 0x3d3   : > { %v4185_v3 = vunpack.i.h.bf16 %v4183_v34  ;;  %v4184_v17 = vunpack.i.l.bf16 %v4183_v34  ;;  %1992 = vmatmul.mubr.f32.gmra.mrb[2].mxu1 %v5291_v39  ;;  %v1148_v39 = vsel %vm1146_vm8, %v4189_v59, %v4190_v58  ;;  %v1640_v50 = vld [vmem:[#allocation13 + $0x3e8] sm:$0xff]  ;;  %v3719_v30 = vpack.c.bf16 %v1592_v21, %v1591_v41  ;;  %v1593_v58 = vld [vmem:[#allocation13 + $0x270] sm:$0xff]  ;;  %v1594_v59 = vld [vmem:[#allocation13 + $0x278] sm:$0xff] }
 0x3d4   : > { %3704 = vmatpush3.bf16.msra.mxu1 %v3703_v6  ;;  %3732 = vmatpush3.bf16.msra.mxu0 %v3731_v47  ;;  %v1622_v6 = vld [vmem:[#allocation13 + $0x358] sm:$0xff]  ;;  %v1609_v47 = vld [vmem:[#allocation13 + $0x2f0] sm:$0xff]  ;;  %v1676_v1 = vld [vmem:[#allocation13 + $0x508] sm:$0xff]  ;;  %v4200_v29 = vunpack.i.h.bf16 %v5415_v54  ;;  %v4199_v36 = vunpack.i.l.bf16 %v5415_v54 }
 0x3d5   : > { %2136 = vmatprep.mubr.f32.mxu1 %v5304_v18  ;;  %3706 = vmatprep.subr.bf16.mxu1 %v3705_v56  ;;  %v1163_v7 = vsel %vm1161_vm7, %v4184_v17, %v4185_v3  ;;  %v3711_v18 = vpack.c.bf16 %v1588_v31, %v1587_v5  ;;  %v3747_v43 = vpack.c.bf16 %v1622_v6, %v1621_v42  ;;  %v1660_v3 = vld [vmem:[#allocation13 + $0x488] sm:$0xff]  ;;  %v1641_v17 = vld [vmem:[#allocation13 + $0x3f0] sm:$0xff]  ;;  %v1663_v28 = vld [vmem:[#allocation13 + $0x4a0] sm:$0xff] }
 0x3d6   : > { %v4193_v16 = vpop.permute.xlu0 %4192  ;;  %2066 = vmatprep.mubr.f32.mxu0 %v1163_v7  ;;  %3734 = vmatprep.subr.bf16.mxu0 %v3733_v35  ;;  %v5419_v44 = vpop.permute.xlu1 %4207  ;;  %v3721_v34 = vpack.c.bf16 %v1610_v49, %v1609_v47  ;;  %v3749_v35 = vpack.c.bf16 %v1640_v50, %v1639_v55  ;;  %v3751_v5 = vpack.c.bf16 %v1624_v62, %v1623_v61  ;;  %v1625_v31 = vld [vmem:[#allocation13 + $0x370] sm:$0xff]  ;;  %v1626_v7 = vld [vmem:[#allocation13 + $0x378] sm:$0xff] }
 0x3d7   : > { %v4195_v53 = vunpack.i.h.bf16 %v4193_v16  ;;  %v4194_v46 = vunpack.i.l.bf16 %v4193_v16  ;;  %2067 = vmatmul.mubr.f32.gmra.mrb[4].mxu0 %v1148_v39  ;;  %v3757_v12 = vpack.c.bf16 %v1660_v3, %v1659_v2  ;;  %v1643_v16 = vld [vmem:[#allocation13 + $0x400] sm:$0xff]  ;;  %v1644_v39 = vld [vmem:[#allocation13 + $0x408] sm:$0xff]  ;;  %v1694_v41 = vld [vmem:[#allocation13 + $0x598] sm:$0xff]  ;;  %v4210_v21 = vunpack.i.h.bf16 %v5419_v44 }
 0x3d8   : > { %3708 = vmatpush3.bf16.msra.mxu1 %v3707_v4  ;;  %3736 = vmatpush3.bf16.msra.mxu0 %v3735_v32  ;;  %v1642_v4 = vld [vmem:[#allocation13 + $0x3f8] sm:$0xff]  ;;  %v3723_v32 = vpack.c.bf16 %v1594_v59, %v1593_v58  ;;  %v1207_v59 = vsel %vm1131_vm6, %v4199_v36, %v4200_v29  ;;  %v1665_v61 = vld [vmem:[#allocation13 + $0x4b0] sm:$0xff]  ;;  %v1699_v29 = vld [vmem:[#allocation13 + $0x5c0] sm:$0xff] }
 0x3d9   : > { %3710 = vmatprep.subr.bf16.mxu1 %v3709_v10  ;;  %3738 = vmatprep.subr.bf16.mxu0 %v3737_v48  ;;  %v1221_v22 = vsel %vm1146_vm8, %v4194_v46, %v4195_v53  ;;  %v4180_v10 = vunpack.i.h.bf16 %v5404_v60  ;;  %v4179_v48 = vunpack.i.l.bf16 %v5404_v60  ;;  %v3753_v14 = vpack.c.bf16 %v1642_v4, %v1641_v17  ;;  %v1691_v53 = vld [vmem:[#allocation13 + $0x580] sm:$0xff]  ;;  %v1692_v46 = vld [vmem:[#allocation13 + $0x588] sm:$0xff]  ;;  %v1646_v60 = vld [vmem:[#allocation13 + $0x418] sm:$0xff] }
 0x3da   : > { %2211 = vmatprep.mubr.f32.mxu0 %v1221_v22  ;;  %v5417_v56 = vpop.permute.xlu0 %4202  ;;  %v4218_v51 = vpop.permute.xlu1 %4217  ;;  %v3761_v22 = vpack.c.bf16 %v1662_v19, %v1661_v9  ;;  %v3763_v54 = vpack.c.bf16 %v1646_v60, %v1645_v13  ;;  %v1666_v17 = vld [vmem:[#allocation13 + $0x4b8] sm:$0xff]  ;;  %v1695_v4 = vld [vmem:[#allocation13 + $0x5a0] sm:$0xff]  ;;  %v1668_v19 = vld [vmem:[#allocation13 + $0x4c8] sm:$0xff] }
 0x3db   : > { %v1177_v52 = vsel %vm1176_vm9, %v4179_v48, %v4180_v10  ;;  %v4205_v0 = vunpack.i.h.bf16 %v5417_v56  ;;  %v4204_v38 = vunpack.i.l.bf16 %v5417_v56  ;;  %v4219_v42 = vunpack.i.l.bf16 %v4218_v51  ;;  %v1647_v56 = vld [vmem:[#allocation13 + $0x420] sm:$0xff]  ;;  %v1650_v10 = vld [vmem:[#allocation13 + $0x438] sm:$0xff]  ;;  %v1652_v60 = vld [vmem:[#allocation13 + $0x448] sm:$0xff] }
 0x3dc   : > { %3712 = vmatpush3.bf16.msra.mxu1 %v3711_v18  ;;  %3740 = vmatpush3.bf16.msra.mxu0 %v3739_v20  ;;  %v3755_v18 = vpack.c.bf16 %v1626_v7, %v1625_v31  ;;  %v3759_v20 = vpack.c.bf16 %v1644_v39, %v1643_v16  ;;  %v1649_v7 = vld [vmem:[#allocation13 + $0x430] sm:$0xff]  ;;  %v1679_v16 = vld [vmem:[#allocation13 + $0x520] sm:$0xff]  ;;  %v1680_v39 = vld [vmem:[#allocation13 + $0x528] sm:$0xff] }
 0x3dd   : > { %3714 = vmatprep.subr.bf16.mxu1 %v3713_v15  ;;  %3742 = vmatprep.subr.bf16.mxu0 %v3741_v45  ;;  %v3789_v15 = vpack.c.bf16 %v1692_v46, %v1691_v53  ;;  %v1675_v45 = vld [vmem:[#allocation13 + $0x500] sm:$0xff]  ;;  %v1697_v53 = vld [vmem:[#allocation13 + $0x5b0] sm:$0xff]  ;;  %v1698_v46 = vld [vmem:[#allocation13 + $0x5b8] sm:$0xff] }
 0x3de   : > { %v5423_v11 = vpop.permute.xlu0 %4212  ;;  %v4228_v47 = vpop.permute.xlu1 %4227  ;;  %v3791_v49 = vpack.c.bf16 %v1676_v1, %v1675_v45  ;;  %v1667_v9 = vld [vmem:[#allocation13 + $0x4c0] sm:$0xff]  ;;  %v1682_v45 = vld [vmem:[#allocation13 + $0x538] sm:$0xff]  ;;  %v1669_v1 = vld [vmem:[#allocation13 + $0x4d0] sm:$0xff] }
 0x3df   : > { %v4229_v62 = vunpack.i.l.bf16 %v4228_v47  ;;  %v1651_v13 = vld [vmem:[#allocation13 + $0x440] sm:$0xff]  ;;  %v1700_v36 = vld [vmem:[#allocation13 + $0x5c8] sm:$0xff] }
 0x3e0   : > { %3716 = vmatpush3.bf16.msra.mxu1 %v3715_v23  ;;  %3744 = vmatpush3.bf16.msra.mxu0 %v3743_v25  ;;  %v1664_v23 = vld [vmem:[#allocation13 + $0x4a8] sm:$0xff]  ;;  %v1693_v25 = vld [vmem:[#allocation13 + $0x590] sm:$0xff] }
 0x3e1   : > { %3718 = vmatprep.subr.bf16.mxu1 %v3717_v8  ;;  %3746 = vmatprep.subr.bf16.mxu0 %v3745_v40  ;;  %v4209_v8 = vunpack.i.l.bf16 %v5419_v44  ;;  %v4220_v40 = vunpack.i.h.bf16 %v4218_v51  ;;  %v3765_v55 = vpack.c.bf16 %v1664_v23, %v1663_v28  ;;  %v3793_v50 = vpack.c.bf16 %v1694_v41, %v1693_v25  ;;  %v1670_v28 = vld [vmem:[#allocation13 + $0x4d8] sm:$0xff]  ;;  %v1653_v23 = vld [vmem:[#allocation13 + $0x450] sm:$0xff] }
 0x3e2   : > { %v4223_v6 = vpop.permute.xlu0 %4222  ;;  %v1178_v44 = vsel %vm1176_vm9, %v4204_v38, %v4205_v0  ;;  %v3775_v0 = vpack.c.bf16 %v1652_v60, %v1651_v13  ;;  %v1654_v25 = vld [vmem:[#allocation13 + $0x458] sm:$0xff]  ;;  %v3777_v41 = vpack.c.bf16 %v1670_v28, %v1669_v1  ;;  %v4215_v13 = vunpack.i.h.bf16 %v5423_v11  ;;  %v1756_v1 = vld [vmem:[#allocation13 + $0x788] sm:$0xff]  ;;  %v4238_v28 = vpop.permute.xlu1 %4237 }
 0x3e3   : > { %v4224_v58 = vunpack.i.l.bf16 %v4223_v6  ;;  %v1222_v2 = vsel %vm1146_vm8, %v4219_v42, %v4220_v40  ;;  %v1249_v3 = vsel %vm1176_vm9, %v4209_v8, %v4210_v21  ;;  %v3805_v21 = vpack.c.bf16 %v1700_v36, %v1699_v29  ;;  %v1683_v8 = vld [vmem:[#allocation13 + $0x540] sm:$0xff]  ;;  %v1684_v40 = vld [vmem:[#allocation13 + $0x548] sm:$0xff] }
 0x3e4   : > { %3720 = vmatpush3.bf16.msra.mxu1 %v3719_v30  ;;  %3748 = vmatpush3.bf16.msra.mxu0 %v3747_v43  ;;  %v1648_v30 = vld [vmem:[#allocation13 + $0x428] sm:$0xff]  ;;  %v4225_v43 = vunpack.i.h.bf16 %v4223_v6  ;;  %v1671_v42 = vld [vmem:[#allocation13 + $0x4e0] sm:$0xff]  ;;  %v4214_v60 = vunpack.i.l.bf16 %v5423_v11  ;;  %v4240_v11 = vunpack.i.h.bf16 %v4238_v28 }
 0x3e5   : > { %3722 = vmatprep.subr.bf16.mxu1 %v3721_v34  ;;  %3750 = vmatprep.subr.bf16.mxu0 %v3749_v35  ;;  %v1677_v34 = vld [vmem:[#allocation13 + $0x510] sm:$0xff]  ;;  %v1678_v35 = vld [vmem:[#allocation13 + $0x518] sm:$0xff]  ;;  %v1672_v6 = vld [vmem:[#allocation13 + $0x4e8] sm:$0xff] }
 0x3e6   : > { %v3795_v31 = vpack.c.bf16 %v1678_v35, %v1677_v34  ;;  %v1208_v48 = vsel %vm1131_vm6, %v4224_v58, %v4225_v43  ;;  %v3781_v43 = vpack.c.bf16 %v1672_v6, %v1671_v42  ;;  %v1673_v34 = vld [vmem:[#allocation13 + $0x4f0] sm:$0xff]  ;;  %v1674_v35 = vld [vmem:[#allocation13 + $0x4f8] sm:$0xff]  ;;  %v1739_v42 = vld [vmem:[#allocation13 + $0x700] sm:$0xff] }
 0x3e7   : > { %v1740_v6 = vld [vmem:[#allocation13 + $0x708] sm:$0xff] }
 0x3e8   : > { %3724 = vmatpush3.bf16.msra.mxu1 %v3723_v32  ;;  %3752 = vmatpush3.bf16.msra.mxu0 %v3751_v5  ;;  %v1696_v32 = vld [vmem:[#allocation13 + $0x5a8] sm:$0xff]  ;;  %v3767_v5 = vpack.c.bf16 %v1648_v30, %v1647_v56  ;;  %v1655_v56 = vld [vmem:[#allocation13 + $0x460] sm:$0xff] }
 0x3e9   : > { %3758 = vmatprep.subr.bf16.mxu1 %v3757_v12  ;;  %3754 = vmatprep.subr.bf16.mxu0 %v3753_v14  ;;  %v3769_v12 = vpack.c.bf16 %v1666_v17, %v1665_v61  ;;  %v3797_v14 = vpack.c.bf16 %v1696_v32, %v1695_v4  ;;  %v1656_v30 = vld [vmem:[#allocation13 + $0x468] sm:$0xff]  ;;  %v1703_v61 = vld [vmem:[#allocation13 + $0x5e0] sm:$0xff]  ;;  %v1658_v17 = vld [vmem:[#allocation13 + $0x478] sm:$0xff]  ;;  %v3785_v4 = vpack.c.bf16 %v1674_v35, %v1673_v34 }
 0x3ea   : > { %v1712_v34 = vld [vmem:[#allocation13 + $0x628] sm:$0xff] }
 0x3eb   : > { %2137 = vmatmul.mubr.f32.vlgmr.msra.gmra.mrb[4].mxu1 %v1177_v52  ;;  %v3773_v52 = vpack.c.bf16 %v1668_v19, %v1667_v9  ;;  %v1689_v9 = vld [vmem:[#allocation13 + $0x570] sm:$0xff] }
 0x3ec   : > { %2141 = vmatprep.mubr.f32.mxu1 %v5321_v57  ;;  %3756 = vmatpush3.bf16.msra.mxu0 %v3755_v18  ;;  %v4230_v57 = vunpack.i.h.bf16 %v4228_v47  ;;  %v3771_v18 = vpack.c.bf16 %v1650_v10, %v1649_v7  ;;  %v1701_v47 = vld [vmem:[#allocation13 + $0x5d0] sm:$0xff] }
 0x3ed   : > { %3760 = vmatpush3.bf16.msra.mxu1 %v3759_v20  ;;  %3790 = vmatprep.subr.bf16.mxu0 %v3789_v15  ;;  %v3799_v20 = vpack.c.bf16 %v1680_v39, %v1679_v16  ;;  %v1681_v15 = vld [vmem:[#allocation13 + $0x530] sm:$0xff] }
 0x3ee   : > { %3762 = vmatprep.subr.bf16.mxu1 %v3761_v22  ;;  %v1277_v51 = vsel %vm1131_vm6, %v4229_v62, %v4230_v57  ;;  %v3801_v22 = vpack.c.bf16 %v1698_v46, %v1697_v53  ;;  %v3803_v38 = vpack.c.bf16 %v1682_v45, %v1681_v15  ;;  %v1704_v57 = vld [vmem:[#allocation13 + $0x5e8] sm:$0xff]  ;;  %v3783_v62 = vpack.c.bf16 %v1656_v30, %v1655_v56  ;;  %v1705_v7 = vld [vmem:[#allocation13 + $0x5f0] sm:$0xff]  ;;  %v1707_v46 = vld [vmem:[#allocation13 + $0x600] sm:$0xff] }
 0x3ef   : > { %2142 = vmatmul.mubr.f32.gmra.mrb[6].mxu1 %v1178_v44  ;;  %2212 = vmatmul.mubr.f32.vlgmr.msra.gmra.mrb[6].mxu0 %v1207_v59  ;;  %v1685_v44 = vld [vmem:[#allocation13 + $0x550] sm:$0xff]  ;;  %v1686_v59 = vld [vmem:[#allocation13 + $0x558] sm:$0xff]  ;;  %v3813_v32 = vpack.c.bf16 %v1704_v57, %v1703_v61  ;;  %v1755_v45 = vld [vmem:[#allocation13 + $0x780] sm:$0xff] }
 0x3f0   : > { %2216 = vmatprep.mubr.f32.mxu0 %v1222_v2  ;;  %2286 = vmatprep.mubr.f32.mxu1 %v1249_v3  ;;  %v3811_v2 = vpack.c.bf16 %v1686_v59, %v1685_v44  ;;  %v1657_v3 = vld [vmem:[#allocation13 + $0x470] sm:$0xff]  ;;  %v1726_v15 = vld [vmem:[#allocation13 + $0x698] sm:$0xff]  ;;  %v1728_v56 = vld [vmem:[#allocation13 + $0x6a8] sm:$0xff]  ;;  %v3855_v44 = vpack.c.bf16 %v1740_v6, %v1739_v42 }
 0x3f1   : > { %3764 = vmatpush3.bf16.msra.mxu1 %v3763_v54  ;;  %3792 = vmatpush3.bf16.msra.mxu0 %v3791_v49  ;;  %v1702_v54 = vld [vmem:[#allocation13 + $0x5d8] sm:$0xff]  ;;  %v5439_v49 = vpop.permute.xlu0 %4232  ;;  %v3787_v16 = vpack.c.bf16 %v1658_v17, %v1657_v3  ;;  %v1757_v30 = vld [vmem:[#allocation13 + $0x790] sm:$0xff]  ;;  %v1711_v59 = vld [vmem:[#allocation13 + $0x620] sm:$0xff] }
 0x3f2   : > { %3766 = vmatprep.subr.bf16.mxu1 %v3765_v55  ;;  %3794 = vmatprep.subr.bf16.mxu0 %v3793_v50  ;;  %v3779_v55 = vpack.c.bf16 %v1654_v25, %v1653_v23  ;;  %v3807_v50 = vpack.c.bf16 %v1684_v40, %v1683_v8  ;;  %v3809_v58 = vpack.c.bf16 %v1702_v54, %v1701_v47  ;;  %v1709_v25 = vld [vmem:[#allocation13 + $0x610] sm:$0xff]  ;;  %v1727_v47 = vld [vmem:[#allocation13 + $0x6a0] sm:$0xff]  ;;  %v1766_v6 = vld [vmem:[#allocation13 + $0x7d8] sm:$0xff] }
 0x3f3   : > { %2217 = vmatmul.mubr.f32.gmra.mrb[8].mxu0 %v1208_v48  ;;  %v1706_v48 = vld [vmem:[#allocation13 + $0x5f8] sm:$0xff]  ;;  %v3853_v23 = vpack.c.bf16 %v1756_v1, %v1755_v45  ;;  %v1235_v8 = vsel %vm1161_vm7, %v4214_v60, %v4215_v13  ;;  %v3829_v61 = vpack.c.bf16 %v1728_v56, %v1727_v47  ;;  %v1729_v3 = vld [vmem:[#allocation13 + $0x6b0] sm:$0xff]  ;;  %v1715_v13 = vld [vmem:[#allocation13 + $0x640] sm:$0xff] }
 0x3f4   : > { %2361 = vmatprep.mubr.f32.mxu0 %v1277_v51  ;;  %v1690_v51 = vld [vmem:[#allocation13 + $0x578] sm:$0xff]  ;;  %v3817_v19 = vpack.c.bf16 %v1706_v48, %v1705_v7  ;;  %v3831_v7 = vpack.c.bf16 %v1712_v34, %v1711_v59  ;;  %v1713_v48 = vld [vmem:[#allocation13 + $0x630] sm:$0xff]  ;;  %v1716_v60 = vld [vmem:[#allocation13 + $0x648] sm:$0xff] }
 0x3f5   : > { %3768 = vmatpush3.bf16.msra.mxu1 %v3767_v5  ;;  %3796 = vmatpush3.bf16.msra.mxu0 %v3795_v31  ;;  %v1687_v5 = vld [vmem:[#allocation13 + $0x560] sm:$0xff]  ;;  %v1688_v31 = vld [vmem:[#allocation13 + $0x568] sm:$0xff]  ;;  %v5441_v10 = vpop.permute.xlu0 %4242  ;;  %v3819_v36 = vpack.c.bf16 %v1690_v51, %v1689_v9  ;;  %v1746_v45 = vld [vmem:[#allocation13 + $0x738] sm:$0xff] }
 0x3f6   : > { %3770 = vmatprep.subr.bf16.mxu1 %v3769_v12  ;;  %3798 = vmatprep.subr.bf16.mxu0 %v3797_v14  ;;  %v1723_v12 = vld [vmem:[#allocation13 + $0x680] sm:$0xff]  ;;  %v1724_v14 = vld [vmem:[#allocation13 + $0x688] sm:$0xff]  ;;  %v3815_v39 = vpack.c.bf16 %v1688_v31, %v1687_v5  ;;  %v4245_v54 = vunpack.i.h.bf16 %v5441_v10  ;;  %v1734_v1 = vld [vmem:[#allocation13 + $0x6d8] sm:$0xff] }
 0x3f7   : > { %v3821_v53 = vpack.c.bf16 %v1724_v14, %v1723_v12  ;;  %v1759_v5 = vld [vmem:[#allocation13 + $0x7a0] sm:$0xff]  ;;  %v1760_v31 = vld [vmem:[#allocation13 + $0x7a8] sm:$0xff]  ;;  %v1714_v12 = vld [vmem:[#allocation13 + $0x638] sm:$0xff] }
 0x3f8   : > { %v1731_v9 = vld [vmem:[#allocation13 + $0x6c0] sm:$0xff]  ;;  %v1732_v51 = vld [vmem:[#allocation13 + $0x6c8] sm:$0xff]  ;;  %v1765_v42 = vld [vmem:[#allocation13 + $0x7d0] sm:$0xff] }
 0x3f9   : > { %3772 = vmatpush3.bf16.msra.mxu1 %v3771_v18  ;;  %3800 = vmatpush3.bf16.msra.mxu0 %v3799_v20  ;;  %v1708_v18 = vld [vmem:[#allocation13 + $0x608] sm:$0xff]  ;;  %v1725_v20 = vld [vmem:[#allocation13 + $0x690] sm:$0xff]  ;;  %v4253_v29 = vpop.permute.xlu0 %4252  ;;  %v3873_v56 = vpack.c.bf16 %v1766_v6, %v1765_v42  ;;  %v1767_v59 = vld [vmem:[#allocation13 + $0x7e0] sm:$0xff] }
 0x3fa   : > { %3774 = vmatprep.subr.bf16.mxu1 %v3773_v52  ;;  %3802 = vmatprep.subr.bf16.mxu0 %v3801_v22  ;;  %v4235_v52 = vunpack.i.h.bf16 %v5439_v49  ;;  %v4234_v22 = vunpack.i.l.bf16 %v5439_v49  ;;  %v4244_v49 = vunpack.i.l.bf16 %v5441_v10  ;;  %v1768_v34 = vld [vmem:[#allocation13 + $0x7e8] sm:$0xff]  ;;  %v1821_v6 = vld [vmem:[#allocation13 + $0x990] sm:$0xff] }
 0x3fb   : > { %v1792_v42 = vld [vmem:[#allocation13 + $0x8a8] sm:$0xff] }
 0x3fc   : > { %v1250_v40 = vsel %vm1176_vm9, %v4234_v22, %v4235_v52  ;;  %v3837_v52 = vpack.c.bf16 %v1732_v51, %v1731_v9 }
 0x3fd   : > { %3776 = vmatpush3.bf16.msra.mxu1 %v3775_v0  ;;  %3804 = vmatpush3.bf16.msra.mxu0 %v3803_v38  ;;  %v3823_v0 = vpack.c.bf16 %v1708_v18, %v1707_v46  ;;  %v3825_v38 = vpack.c.bf16 %v1726_v15, %v1725_v20  ;;  %v5457_v46 = vpop.permute.xlu1 %4247  ;;  %v3835_v18 = vpack.c.bf16 %v1714_v12, %v1713_v48  ;;  %v1745_v15 = vld [vmem:[#allocation13 + $0x730] sm:$0xff]  ;;  %v1788_v48 = vld [vmem:[#allocation13 + $0x888] sm:$0xff] }
 0x3fe   : > { %3778 = vmatprep.subr.bf16.mxu1 %v3777_v41  ;;  %3806 = vmatprep.subr.bf16.mxu0 %v3805_v21  ;;  %v1710_v41 = vld [vmem:[#allocation13 + $0x618] sm:$0xff]  ;;  %v4239_v21 = vunpack.i.l.bf16 %v4238_v28  ;;  %v1763_v28 = vld [vmem:[#allocation13 + $0x7c0] sm:$0xff]  ;;  %v4249_v9 = vunpack.i.l.bf16 %v5457_v46 }
 0x400   : > { %v1236_v35 = vsel %vm1161_vm7, %v4239_v21, %v4240_v11  ;;  %v1748_v11 = vld [vmem:[#allocation13 + $0x748] sm:$0xff]  ;;  %v1735_v21 = vld [vmem:[#allocation13 + $0x6e0] sm:$0xff] }
 0x401   : > { %3780 = vmatpush3.bf16.msra.mxu1 %v3779_v55  ;;  %3808 = vmatpush3.bf16.msra.mxu0 %v3807_v50  ;;  %v4255_v55 = vunpack.i.h.bf16 %v4253_v29  ;;  %v4254_v50 = vunpack.i.l.bf16 %v4253_v29  ;;  %v1764_v29 = vld [vmem:[#allocation13 + $0x7c8] sm:$0xff] }
 0x402   : > { %3782 = vmatprep.subr.bf16.mxu1 %v3781_v43  ;;  %3810 = vmatprep.subr.bf16.mxu0 %v3809_v58  ;;  %v1758_v43 = vld [vmem:[#allocation13 + $0x798] sm:$0xff]  ;;  %v3827_v58 = vpack.c.bf16 %v1710_v41, %v1709_v25  ;;  %v3869_v25 = vpack.c.bf16 %v1764_v29, %v1763_v28  ;;  %v1747_v41 = vld [vmem:[#allocation13 + $0x740] sm:$0xff]  ;;  %v1773_v28 = vld [vmem:[#allocation13 + $0x810] sm:$0xff] }
 0x403   : > { %v3857_v57 = vpack.c.bf16 %v1758_v43, %v1757_v30  ;;  %v1278_v17 = vsel %vm1131_vm6, %v4254_v50, %v4255_v55  ;;  %v1720_v55 = vld [vmem:[#allocation13 + $0x668] sm:$0xff]  ;;  %v1749_v30 = vld [vmem:[#allocation13 + $0x750] sm:$0xff]  ;;  %v1750_v43 = vld [vmem:[#allocation13 + $0x758] sm:$0xff] }
 0x404   : > { %v1774_v29 = vld [vmem:[#allocation13 + $0x818] sm:$0xff] }
 0x405   : > { %3784 = vmatpush3.bf16.msra.mxu1 %v3783_v62  ;;  %3812 = vmatpush3.bf16.msra.mxu0 %v3811_v2  ;;  %v1741_v62 = vld [vmem:[#allocation13 + $0x710] sm:$0xff]  ;;  %v1742_v2 = vld [vmem:[#allocation13 + $0x718] sm:$0xff] }
 0x406   : > { %3786 = vmatprep.subr.bf16.mxu1 %v3785_v4  ;;  %3814 = vmatprep.subr.bf16.mxu0 %v3813_v32  ;;  %v1305_v4 = vsel %vm1161_vm7, %v4244_v49, %v4245_v54  ;;  %v1730_v32 = vld [vmem:[#allocation13 + $0x6b8] sm:$0xff]  ;;  %v3859_v10 = vpack.c.bf16 %v1742_v2, %v1741_v62  ;;  %v3871_v54 = vpack.c.bf16 %v1748_v11, %v1747_v41  ;;  %v1719_v49 = vld [vmem:[#allocation13 + $0x660] sm:$0xff]  ;;  %v1721_v2 = vld [vmem:[#allocation13 + $0x670] sm:$0xff] }
 0x407   : > { %v3833_v14 = vpack.c.bf16 %v1730_v32, %v1729_v3  ;;  %v3875_v62 = vpack.c.bf16 %v1750_v43, %v1749_v30  ;;  %v1722_v3 = vld [vmem:[#allocation13 + $0x678] sm:$0xff]  ;;  %v1751_v32 = vld [vmem:[#allocation13 + $0x760] sm:$0xff]  ;;  %v3891_v30 = vpack.c.bf16 %v1774_v29, %v1773_v28  ;;  %v1797_v28 = vld [vmem:[#allocation13 + $0x8d0] sm:$0xff] }
 0x408   : > { %v3851_v12 = vpack.c.bf16 %v1722_v3, %v1721_v2  ;;  %v1806_v2 = vld [vmem:[#allocation13 + $0x918] sm:$0xff]  ;;  %v1793_v3 = vld [vmem:[#allocation13 + $0x8b0] sm:$0xff] }
 0x409   : > { %3788 = vmatpush3.bf16.msra.mxu1 %v3787_v16  ;;  %3816 = vmatpush3.bf16.msra.mxu0 %v3815_v39  ;;  %v3861_v16 = vpack.c.bf16 %v1760_v31, %v1759_v5  ;;  %v1744_v39 = vld [vmem:[#allocation13 + $0x728] sm:$0xff]  ;;  %v1769_v31 = vld [vmem:[#allocation13 + $0x7f0] sm:$0xff]  ;;  %v1798_v29 = vld [vmem:[#allocation13 + $0x8d8] sm:$0xff] }
 0x40a   : > { %3818 = vmatprep.subr.bf16.mxu0 %v3817_v19  ;;  %3822 = vmatprep.subr.bf16.mxu1 %v3821_v53  ;;  %v1761_v19 = vld [vmem:[#allocation13 + $0x7b0] sm:$0xff]  ;;  %v1762_v53 = vld [vmem:[#allocation13 + $0x7b8] sm:$0xff]  ;;  %v1752_v5 = vld [vmem:[#allocation13 + $0x768] sm:$0xff] }
 0x40b   : > { %v3865_v22 = vpack.c.bf16 %v1762_v53, %v1761_v19 }
 0x40c   : > { %2287 = vmatmul.mubr.f32.vlgmr.msra.gmra.mrb[8].mxu1 %v1235_v8  ;;  %v5459_v8 = vpop.permute.xlu1 %4257 }
 0x40d   : > { %2291 = vmatprep.mubr.f32.mxu1 %v1250_v40  ;;  %3820 = vmatpush3.bf16.msra.mxu0 %v3819_v36  ;;  %v3867_v36 = vpack.c.bf16 %v1746_v45, %v1745_v15  ;;  %v1736_v40 = vld [vmem:[#allocation13 + $0x6e8] sm:$0xff]  ;;  %v4260_v41 = vunpack.i.h.bf16 %v5459_v8  ;;  %v4259_v11 = vunpack.i.l.bf16 %v5459_v8 }
 0x40e   : > { %3824 = vmatpush3.bf16.msra.mxu1 %v3823_v0  ;;  %3854 = vmatprep.subr.bf16.mxu0 %v3853_v23  ;;  %v1717_v0 = vld [vmem:[#allocation13 + $0x650] sm:$0xff]  ;;  %v3845_v50 = vpack.c.bf16 %v1736_v40, %v1735_v21  ;;  %v1820_v15 = vld [vmem:[#allocation13 + $0x988] sm:$0xff] }
 0x40f   : > { %3826 = vmatprep.subr.bf16.mxu1 %v3825_v38  ;;  %v1718_v38 = vld [vmem:[#allocation13 + $0x658] sm:$0xff] }
 0x410   : > { %2292 = vmatmul.mubr.f32.gmra.mrb[10].mxu1 %v1236_v35  ;;  %2362 = vmatmul.mubr.f32.vlgmr.msra.gmra.mrb[10].mxu0 %v5330_v63  ;;  %v1743_v63 = vld [vmem:[#allocation13 + $0x720] sm:$0xff]  ;;  %v3843_v47 = vpack.c.bf16 %v1718_v38, %v1717_v0  ;;  %v5461_v35 = vpop.permute.xlu0 %4262 }
 0x411   : > { %2366 = vmatprep.mubr.f32.mxu0 %v1278_v17  ;;  %2436 = vmatprep.mubr.f32.mxu1 %v1305_v4  ;;  %v3863_v20 = vpack.c.bf16 %v1744_v39, %v1743_v63  ;;  %v3877_v4 = vpack.c.bf16 %v1768_v34, %v1767_v59  ;;  %v1754_v63 = vld [vmem:[#allocation13 + $0x778] sm:$0xff]  ;;  %v4250_v39 = vunpack.i.h.bf16 %v5457_v46  ;;  %v4265_v45 = vunpack.i.h.bf16 %v5461_v35  ;;  %v1803_v38 = vld [vmem:[#allocation13 + $0x900] sm:$0xff]  ;;  %v1776_v59 = vld [vmem:[#allocation13 + $0x828] sm:$0xff] }
 0x412   : > { %3828 = vmatpush3.bf16.msra.mxu1 %v3827_v58  ;;  %3856 = vmatpush3.bf16.msra.mxu0 %v3855_v44  ;;  %v1737_v58 = vld [vmem:[#allocation13 + $0x6f0] sm:$0xff]  ;;  %v1738_v44 = vld [vmem:[#allocation13 + $0x6f8] sm:$0xff] }
 0x413   : > { %3830 = vmatprep.subr.bf16.mxu1 %v3829_v61  ;;  %3858 = vmatprep.subr.bf16.mxu0 %v3857_v57  ;;  %v5463_v61 = vpop.permute.xlu1 %4267  ;;  %v3847_v57 = vpack.c.bf16 %v1720_v55, %v1719_v49  ;;  %v3849_v17 = vpack.c.bf16 %v1738_v44, %v1737_v58  ;;  %v1775_v44 = vld [vmem:[#allocation13 + $0x820] sm:$0xff] }
 0x414   : > { %2367 = vmatmul.mubr.f32.gmra.mrb[12].mxu0 %v5347_v37  ;;  %v1733_v37 = vld [vmem:[#allocation13 + $0x6d0] sm:$0xff]  ;;  %v5467_v51 = vpop.permute.xlu0 %4272  ;;  %v4270_v21 = vunpack.i.h.bf16 %v5463_v61  ;;  %v4269_v40 = vunpack.i.l.bf16 %v5463_v61 }
 0x415   : > { %2511 = vmatprep.mubr.f32.mxu0 %v5356_v27  ;;  %v3839_v27 = vpack.c.bf16 %v1716_v60, %v1715_v13  ;;  %v3841_v23 = vpack.c.bf16 %v1734_v1, %v1733_v37  ;;  %v1789_v13 = vld [vmem:[#allocation13 + $0x890] sm:$0xff]  ;;  %v4264_v37 = vunpack.i.l.bf16 %v5461_v35  ;;  %v4274_v49 = vunpack.i.l.bf16 %v5467_v51 }
 0x416   : > { %3832 = vmatpush3.bf16.msra.mxu1 %v3831_v7  ;;  %3860 = vmatpush3.bf16.msra.mxu0 %v3859_v10  ;;  %v1770_v7 = vld [vmem:[#allocation13 + $0x7f8] sm:$0xff]  ;;  %v1787_v10 = vld [vmem:[#allocation13 + $0x880] sm:$0xff]  ;;  %v1292_v61 = vsel %vm1146_vm8, %v4269_v40, %v4270_v21  ;;  %v1812_v40 = vld [vmem:[#allocation13 + $0x948] sm:$0xff] }
 0x417   : > { %3834 = vmatprep.subr.bf16.mxu1 %v3833_v14  ;;  %3862 = vmatprep.subr.bf16.mxu0 %v3861_v16  ;;  %v3879_v14 = vpack.c.bf16 %v1752_v5, %v1751_v32  ;;  %v1753_v16 = vld [vmem:[#allocation13 + $0x770] sm:$0xff]  ;;  %v3881_v19 = vpack.c.bf16 %v1770_v7, %v1769_v31  ;;  %v3885_v53 = vpack.c.bf16 %v1788_v48, %v1787_v10  ;;  %v5469_v60 = vpop.permute.xlu1 %4277  ;;  %v1794_v5 = vld [vmem:[#allocation13 + $0x8b8] sm:$0xff]  ;;  %v1823_v31 = vld [vmem:[#allocation13 + $0x9a0] sm:$0xff] }
 0x418   : > { %v3883_v46 = vpack.c.bf16 %v1754_v63, %v1753_v16  ;;  %v4283_v55 = vpop.permute.xlu0 %4282  ;;  %v1824_v7 = vld [vmem:[#allocation13 + $0x9a8] sm:$0xff]  ;;  %v3895_v10 = vpack.c.bf16 %v1776_v59, %v1775_v44  ;;  %v3897_v63 = vpack.c.bf16 %v1794_v5, %v1793_v3  ;;  %v1811_v21 = vld [vmem:[#allocation13 + $0x940] sm:$0xff]  ;;  %v1814_v44 = vld [vmem:[#allocation13 + $0x958] sm:$0xff] }
 0x419   : > { %v4285_v34 = vunpack.i.h.bf16 %v4283_v55  ;;  %v4284_v35 = vunpack.i.l.bf16 %v4283_v55  ;;  %v1801_v59 = vld [vmem:[#allocation13 + $0x8f0] sm:$0xff]  ;;  %v1816_v5 = vld [vmem:[#allocation13 + $0x968] sm:$0xff] }
 0x41a   : > { %3836 = vmatpush3.bf16.msra.mxu1 %v3835_v18  ;;  %3864 = vmatpush3.bf16.msra.mxu0 %v3863_v20  ;;  %v1771_v18 = vld [vmem:[#allocation13 + $0x800] sm:$0xff]  ;;  %v1772_v20 = vld [vmem:[#allocation13 + $0x808] sm:$0xff] }
 0x41b   : > { %3838 = vmatprep.subr.bf16.mxu1 %v3837_v52  ;;  %3866 = vmatprep.subr.bf16.mxu0 %v3865_v22  ;;  %v1790_v52 = vld [vmem:[#allocation13 + $0x898] sm:$0xff]  ;;  %v1819_v22 = vld [vmem:[#allocation13 + $0x980] sm:$0xff]  ;;  %v3887_v1 = vpack.c.bf16 %v1772_v20, %v1771_v18  ;;  %v1320_v16 = vsel %vm1176_vm9, %v4284_v35, %v4285_v34  ;;  %v1825_v18 = vld [vmem:[#allocation13 + $0x9b0] sm:$0xff] }
 0x41c   : > { %v3917_v0 = vpack.c.bf16 %v1820_v15, %v1819_v22  ;;  %v1826_v20 = vld [vmem:[#allocation13 + $0x9b8] sm:$0xff]  ;;  %v1779_v22 = vld [vmem:[#allocation13 + $0x840] sm:$0xff]  ;;  %v1780_v15 = vld [vmem:[#allocation13 + $0x848] sm:$0xff] }
 0x41d   : > { %v1802_v34 = vld [vmem:[#allocation13 + $0x8f8] sm:$0xff]  ;;  %v1831_v35 = vld [vmem:[#allocation13 + $0x9e0] sm:$0xff] }
 0x41e   : > { %3840 = vmatpush3.bf16.msra.mxu1 %v3839_v27  ;;  %3868 = vmatpush3.bf16.msra.mxu0 %v3867_v36  ;;  %v1291_v27 = vsel %vm1146_vm8, %v4249_v9, %v4250_v39  ;;  %v3889_v36 = vpack.c.bf16 %v1790_v52, %v1789_v13  ;;  %v3925_v39 = vpack.c.bf16 %v1824_v7, %v1823_v31  ;;  %v1807_v9 = vld [vmem:[#allocation13 + $0x920] sm:$0xff]  ;;  %v1833_v31 = vld [vmem:[#allocation13 + $0x9f0] sm:$0xff] }
 0x41f   : > { %3842 = vmatprep.subr.bf16.mxu1 %v3841_v23  ;;  %3870 = vmatprep.subr.bf16.mxu0 %v3869_v25  ;;  %v1804_v23 = vld [vmem:[#allocation13 + $0x908] sm:$0xff]  ;;  %v1791_v25 = vld [vmem:[#allocation13 + $0x8a0] sm:$0xff]  ;;  %v3913_v7 = vpack.c.bf16 %v1802_v34, %v1801_v59 }
 0x420   : > { %v3919_v8 = vpack.c.bf16 %v1804_v23, %v1803_v38  ;;  %v3893_v43 = vpack.c.bf16 %v1792_v42, %v1791_v25  ;;  %v1781_v23 = vld [vmem:[#allocation13 + $0x850] sm:$0xff]  ;;  %v1782_v25 = vld [vmem:[#allocation13 + $0x858] sm:$0xff]  ;;  %v1799_v42 = vld [vmem:[#allocation13 + $0x8e0] sm:$0xff] }
 0x421   : > { %v3907_v55 = vpack.c.bf16 %v1782_v25, %v1781_v23  ;;  %v1867_v25 = vld [vmem:[#allocation13 + $0xb00] sm:$0xff] }
 0x422   : > { %3844 = vmatpush3.bf16.msra.mxu1 %v3843_v47  ;;  %3872 = vmatpush3.bf16.msra.mxu0 %v3871_v54  ;;  %v1822_v47 = vld [vmem:[#allocation13 + $0x998] sm:$0xff]  ;;  %v4275_v54 = vunpack.i.h.bf16 %v5467_v51  ;;  %v1808_v51 = vld [vmem:[#allocation13 + $0x928] sm:$0xff] }
 0x423   : > { %3846 = vmatprep.subr.bf16.mxu1 %v3845_v50  ;;  %3874 = vmatprep.subr.bf16.mxu0 %v3873_v56  ;;  %v1306_v50 = vsel %vm1161_vm7, %v4264_v37, %v4265_v45  ;;  %v4288_v56 = vpop.permute.xlu1 %4287  ;;  %v3921_v58 = vpack.c.bf16 %v1822_v47, %v1821_v6  ;;  %v3927_v52 = vpack.c.bf16 %v1808_v51, %v1807_v9  ;;  %v5487_v6 = vpop.permute.xlu0 %4292  ;;  %v1800_v47 = vld [vmem:[#allocation13 + $0x8e8] sm:$0xff]  ;;  %v1817_v51 = vld [vmem:[#allocation13 + $0x970] sm:$0xff] }
 0x424   : > { %v1361_v32 = vsel %vm1146_vm8, %v4274_v49, %v4275_v54  ;;  %v3929_v37 = vpack.c.bf16 %v1826_v20, %v1825_v18  ;;  %v1829_v54 = vld [vmem:[#allocation13 + $0x9d0] sm:$0xff]  ;;  %v1830_v49 = vld [vmem:[#allocation13 + $0x9d8] sm:$0xff]  ;;  %v4279_v18 = vunpack.i.l.bf16 %v5469_v60 }
 0x426   : > { %3848 = vmatpush3.bf16.msra.mxu1 %v3847_v57  ;;  %3876 = vmatpush3.bf16.msra.mxu0 %v3875_v62  ;;  %v1319_v57 = vsel %vm1176_vm9, %v4259_v11, %v4260_v41  ;;  %v1805_v62 = vld [vmem:[#allocation13 + $0x910] sm:$0xff]  ;;  %v3905_v41 = vpack.c.bf16 %v1798_v29, %v1797_v28 }
 0x427   : > { %3850 = vmatprep.subr.bf16.mxu1 %v3849_v17  ;;  %3878 = vmatprep.subr.bf16.mxu0 %v3877_v4  ;;  %v4290_v17 = vunpack.i.h.bf16 %v4288_v56  ;;  %v4289_v4 = vunpack.i.l.bf16 %v4288_v56  ;;  %v3923_v48 = vpack.c.bf16 %v1806_v2, %v1805_v62  ;;  %v1783_v56 = vld [vmem:[#allocation13 + $0x860] sm:$0xff]  ;;  %v1785_v62 = vld [vmem:[#allocation13 + $0x870] sm:$0xff]  ;;  %v1786_v2 = vld [vmem:[#allocation13 + $0x878] sm:$0xff]  ;;  %v5489_v3 = vpop.permute.xlu0 %4302 }
 0x42a   : > { %3852 = vmatpush3.bf16.msra.mxu1 %v3851_v12  ;;  %3880 = vmatpush3.bf16.msra.mxu0 %v3879_v14  ;;  %v1777_v12 = vld [vmem:[#allocation13 + $0x830] sm:$0xff]  ;;  %v1778_v14 = vld [vmem:[#allocation13 + $0x838] sm:$0xff] }
 0x42b   : > { %3882 = vmatprep.subr.bf16.mxu0 %v3881_v19  ;;  %3886 = vmatprep.subr.bf16.mxu1 %v3885_v53  ;;  %v1795_v19 = vld [vmem:[#allocation13 + $0x8c0] sm:$0xff]  ;;  %v1389_v53 = vsel %vm1176_vm9, %v4289_v4, %v4290_v17  ;;  %v3899_v13 = vpack.c.bf16 %v1778_v14, %v1777_v12  ;;  %v1852_v14 = vld [vmem:[#allocation13 + $0xa88] sm:$0xff] }
 0x42c   : > { %v1851_v12 = vld [vmem:[#allocation13 + $0xa80] sm:$0xff] }
 0x42d   : > { %2437 = vmatmul.mubr.f32.vlgmr.msra.gmra.mrb[12].mxu1 %v1291_v27  ;;  %v1827_v27 = vld [vmem:[#allocation13 + $0x9c0] sm:$0xff]  ;;  %v3949_v9 = vpack.c.bf16 %v1852_v14, %v1851_v12  ;;  %v1888_v14 = vld [vmem:[#allocation13 + $0xba8] sm:$0xff] }
 0x42e   : > { %2441 = vmatprep.mubr.f32.mxu1 %v1306_v50  ;;  %3884 = vmatpush3.bf16.msra.mxu0 %v3883_v46  ;;  %v1809_v46 = vld [vmem:[#allocation13 + $0x930] sm:$0xff]  ;;  %v3935_v50 = vpack.c.bf16 %v1812_v40, %v1811_v21  ;;  %v4295_v21 = vunpack.i.h.bf16 %v5487_v6  ;;  %v4294_v40 = vunpack.i.l.bf16 %v5487_v6  ;;  %v1887_v12 = vld [vmem:[#allocation13 + $0xba0] sm:$0xff] }
 0x42f   : > { %3888 = vmatpush3.bf16.msra.mxu1 %v3887_v1  ;;  %3918 = vmatprep.subr.bf16.mxu0 %v3917_v0  ;;  %v1810_v1 = vld [vmem:[#allocation13 + $0x938] sm:$0xff]  ;;  %v3903_v0 = vpack.c.bf16 %v1780_v15, %v1779_v22  ;;  %v1836_v22 = vld [vmem:[#allocation13 + $0xa08] sm:$0xff]  ;;  %v1853_v15 = vld [vmem:[#allocation13 + $0xa90] sm:$0xff] }
 0x430   : > { %3890 = vmatprep.subr.bf16.mxu1 %v3889_v36  ;;  %v1828_v36 = vld [vmem:[#allocation13 + $0x9c8] sm:$0xff]  ;;  %v3931_v38 = vpack.c.bf16 %v1810_v1, %v1809_v46  ;;  %v1883_v46 = vld [vmem:[#allocation13 + $0xb80] sm:$0xff] }
 0x431   : > { %2442 = vmatmul.mubr.f32.gmra.mrb[14].mxu1 %v1292_v61  ;;  %2512 = vmatmul.mubr.f32.vlgmr.msra.gmra.mrb[14].mxu0 %v1319_v57  ;;  %v3933_v11 = vpack.c.bf16 %v1828_v36, %v1827_v27  ;;  %v1832_v61 = vld [vmem:[#allocation13 + $0x9e8] sm:$0xff]  ;;  %v4298_v57 = vpop.permute.xlu1 %4297  ;;  %v1837_v36 = vld [vmem:[#allocation13 + $0xa10] sm:$0xff] }
 0x432   : > { %2516 = vmatprep.mubr.f32.mxu0 %v5369_v33  ;;  %2586 = vmatprep.mubr.f32.mxu1 %v1361_v32  ;;  %v1796_v33 = vld [vmem:[#allocation13 + $0x8c8] sm:$0xff]  ;;  %v1815_v32 = vld [vmem:[#allocation13 + $0x960] sm:$0xff]  ;;  %v4300_v20 = vunpack.i.h.bf16 %v4298_v57 }
 0x433   : > { %3892 = vmatpush3.bf16.msra.mxu1 %v3891_v30  ;;  %3920 = vmatpush3.bf16.msra.mxu0 %v3919_v8  ;;  %v3901_v45 = vpack.c.bf16 %v1796_v33, %v1795_v19  ;;  %v1784_v30 = vld [vmem:[#allocation13 + $0x868] sm:$0xff]  ;;  %v3909_v8 = vpack.c.bf16 %v1800_v47, %v1799_v42  ;;  %v1818_v19 = vld [vmem:[#allocation13 + $0x978] sm:$0xff]  ;;  %v4280_v33 = vunpack.i.h.bf16 %v5469_v60  ;;  %v4305_v42 = vunpack.i.h.bf16 %v5489_v3 }
 0x434   : > { %3894 = vmatprep.subr.bf16.mxu1 %v3893_v43  ;;  %3922 = vmatprep.subr.bf16.mxu0 %v3921_v58  ;;  %v3937_v43 = vpack.c.bf16 %v1830_v49, %v1829_v54  ;;  %v1813_v58 = vld [vmem:[#allocation13 + $0x950] sm:$0xff]  ;;  %v3911_v17 = vpack.c.bf16 %v1784_v30, %v1783_v56  ;;  %v1884_v1 = vld [vmem:[#allocation13 + $0xb88] sm:$0xff]  ;;  %v3947_v28 = vpack.c.bf16 %v1818_v19, %v1817_v51  ;;  %v4304_v47 = vunpack.i.l.bf16 %v5489_v3 }
 0x435   : > { %2517 = vmatmul.mubr.f32.gmra.mrb[16].mxu0 %v1320_v16  ;;  %v3939_v4 = vpack.c.bf16 %v1814_v44, %v1813_v58  ;;  %v3915_v16 = vpack.c.bf16 %v1786_v2, %v1785_v62  ;;  %v1347_v60 = vsel %vm1131_vm6, %v4279_v18, %v4280_v33  ;;  %v3981_v23 = vpack.c.bf16 %v1884_v1, %v1883_v46  ;;  %v1856_v54 = vld [vmem:[#allocation13 + $0xaa8] sm:$0xff]  ;;  %v1885_v49 = vld [vmem:[#allocation13 + $0xb90] sm:$0xff]  ;;  %v1871_v33 = vld [vmem:[#allocation13 + $0xb20] sm:$0xff] }
 0x436   : > { %2661 = vmatprep.mubr.f32.mxu0 %v1389_v53  ;;  %v1835_v53 = vld [vmem:[#allocation13 + $0xa00] sm:$0xff]  ;;  %v1348_v2 = vsel %vm1131_vm6, %v4304_v47, %v4305_v42  ;;  %v1375_v3 = vsel %vm1161_vm7, %v4294_v40, %v4295_v21  ;;  %v1872_v18 = vld [vmem:[#allocation13 + $0xb28] sm:$0xff]  ;;  %v1846_v21 = vld [vmem:[#allocation13 + $0xa58] sm:$0xff] }
 0x437   : > { %3896 = vmatpush3.bf16.msra.mxu1 %v3895_v10  ;;  %3924 = vmatpush3.bf16.msra.mxu0 %v3923_v48  ;;  %v3941_v10 = vpack.c.bf16 %v1832_v61, %v1831_v35  ;;  %v1834_v48 = vld [vmem:[#allocation13 + $0x9f8] sm:$0xff]  ;;  %v3951_v29 = vpack.c.bf16 %v1836_v22, %v1835_v53  ;;  %v1839_v35 = vld [vmem:[#allocation13 + $0xa20] sm:$0xff]  ;;  %v1840_v61 = vld [vmem:[#allocation13 + $0xa28] sm:$0xff]  ;;  %v3989_v53 = vpack.c.bf16 %v1888_v14, %v1887_v12 }
 0x438   : > { %3898 = vmatprep.subr.bf16.mxu1 %v3897_v63  ;;  %3926 = vmatprep.subr.bf16.mxu0 %v3925_v39  ;;  %v3943_v63 = vpack.c.bf16 %v1816_v5, %v1815_v32  ;;  %v3945_v39 = vpack.c.bf16 %v1834_v48, %v1833_v31  ;;  %v1857_v32 = vld [vmem:[#allocation13 + $0xab0] sm:$0xff]  ;;  %v1858_v48 = vld [vmem:[#allocation13 + $0xab8] sm:$0xff]  ;;  %v1843_v46 = vld [vmem:[#allocation13 + $0xa40] sm:$0xff] }
 0x439   : > { %v3961_v19 = vpack.c.bf16 %v1858_v48, %v1857_v32  ;;  %v1889_v22 = vld [vmem:[#allocation13 + $0xbb0] sm:$0xff]  ;;  %v1844_v1 = vld [vmem:[#allocation13 + $0xa48] sm:$0xff]  ;;  %v1875_v47 = vld [vmem:[#allocation13 + $0xb40] sm:$0xff] }
 0x43a   : > { %v1850_v32 = vld [vmem:[#allocation13 + $0xa78] sm:$0xff]  ;;  %v1897_v48 = vld [vmem:[#allocation13 + $0xbf0] sm:$0xff] }
 0x43b   : > { %3900 = vmatpush3.bf16.msra.mxu1 %v3899_v13  ;;  %3928 = vmatpush3.bf16.msra.mxu0 %v3927_v52  ;;  %v4299_v13 = vunpack.i.l.bf16 %v4298_v57  ;;  %v5493_v52 = vpop.permute.xlu1 %4307  ;;  %v1898_v14 = vld [vmem:[#allocation13 + $0xbf8] sm:$0xff] }
 0x43c   : > { %3902 = vmatprep.subr.bf16.mxu1 %v3901_v45  ;;  %3930 = vmatprep.subr.bf16.mxu0 %v3929_v37  ;;  %v1854_v45 = vld [vmem:[#allocation13 + $0xa98] sm:$0xff]  ;;  %v4313_v37 = vpop.permute.xlu0 %4312  ;;  %v4309_v56 = vunpack.i.l.bf16 %v5493_v52 }
 0x43d   : > { %v3953_v27 = vpack.c.bf16 %v1854_v45, %v1853_v15  ;;  %v1890_v15 = vld [vmem:[#allocation13 + $0xbb8] sm:$0xff] }
 0x43f   : > { %3904 = vmatpush3.bf16.msra.mxu1 %v3903_v0  ;;  %3932 = vmatpush3.bf16.msra.mxu0 %v3931_v38  ;;  %v1838_v0 = vld [vmem:[#allocation13 + $0xa18] sm:$0xff]  ;;  %v1362_v38 = vsel %vm1146_vm8, %v4299_v13, %v4300_v20  ;;  %v4318_v30 = vpop.permute.xlu1 %4317  ;;  %v1859_v20 = vld [vmem:[#allocation13 + $0xac0] sm:$0xff] }
 0x440   : > { %3906 = vmatprep.subr.bf16.mxu1 %v3905_v41  ;;  %3934 = vmatprep.subr.bf16.mxu0 %v3933_v11  ;;  %v1868_v41 = vld [vmem:[#allocation13 + $0xb08] sm:$0xff]  ;;  %v1855_v11 = vld [vmem:[#allocation13 + $0xaa0] sm:$0xff]  ;;  %v4323_v58 = vpop.permute.xlu0 %4322  ;;  %v3955_v44 = vpack.c.bf16 %v1838_v0, %v1837_v36  ;;  %v4320_v57 = vunpack.i.h.bf16 %v4318_v30  ;;  %v4319_v62 = vunpack.i.l.bf16 %v4318_v30  ;;  %v1874_v36 = vld [vmem:[#allocation13 + $0xb38] sm:$0xff] }
 0x441   : > { %v3983_v6 = vpack.c.bf16 %v1868_v41, %v1867_v25  ;;  %v3957_v59 = vpack.c.bf16 %v1856_v54, %v1855_v11  ;;  %v4325_v5 = vunpack.i.h.bf16 %v4323_v58  ;;  %v4324_v31 = vunpack.i.l.bf16 %v4323_v58  ;;  %v1861_v0 = vld [vmem:[#allocation13 + $0xad0] sm:$0xff]  ;;  %v1876_v54 = vld [vmem:[#allocation13 + $0xb48] sm:$0xff]  ;;  %v1847_v58 = vld [vmem:[#allocation13 + $0xa60] sm:$0xff] }
 0x442   : > { %v1376_v51 = vsel %vm1161_vm7, %v4319_v62, %v4320_v57  ;;  %v3967_v25 = vpack.c.bf16 %v1844_v1, %v1843_v46  ;;  %v1845_v11 = vld [vmem:[#allocation13 + $0xa50] sm:$0xff]  ;;  %v1866_v57 = vld [vmem:[#allocation13 + $0xaf8] sm:$0xff]  ;;  %v1895_v62 = vld [vmem:[#allocation13 + $0xbe0] sm:$0xff] }
 0x443   : > { %3908 = vmatpush3.bf16.msra.mxu1 %v3907_v55  ;;  %3936 = vmatpush3.bf16.msra.mxu0 %v3935_v50  ;;  %v1886_v55 = vld [vmem:[#allocation13 + $0xb98] sm:$0xff]  ;;  %v4310_v50 = vunpack.i.h.bf16 %v5493_v52  ;;  %v1445_v13 = vsel %vm1161_vm7, %v4324_v31, %v4325_v5  ;;  %v1860_v52 = vld [vmem:[#allocation13 + $0xac8] sm:$0xff]  ;;  %v5509_v30 = vpop.permute.xlu1 %4327 }
 0x444   : > { %3910 = vmatprep.subr.bf16.mxu1 %v3909_v8  ;;  %3938 = vmatprep.subr.bf16.mxu0 %v3937_v43  ;;  %v4315_v8 = vunpack.i.h.bf16 %v4313_v37  ;;  %v4314_v43 = vunpack.i.l.bf16 %v4313_v37  ;;  %v3985_v34 = vpack.c.bf16 %v1886_v55, %v1885_v49  ;;  %v3991_v37 = vpack.c.bf16 %v1872_v18, %v1871_v33  ;;  %v1863_v49 = vld [vmem:[#allocation13 + $0xae0] sm:$0xff]  ;;  %v1864_v55 = vld [vmem:[#allocation13 + $0xae8] sm:$0xff]  ;;  %v1881_v33 = vld [vmem:[#allocation13 + $0xb70] sm:$0xff] }
 0x445   : > { %v1882_v18 = vld [vmem:[#allocation13 + $0xb78] sm:$0xff]  ;;  %v4329_v46 = vunpack.i.l.bf16 %v5509_v30 }
 0x447   : > { %3912 = vmatpush3.bf16.msra.mxu1 %v3911_v17  ;;  %3940 = vmatpush3.bf16.msra.mxu0 %v3939_v4  ;;  %v1869_v17 = vld [vmem:[#allocation13 + $0xb10] sm:$0xff]  ;;  %v1870_v4 = vld [vmem:[#allocation13 + $0xb18] sm:$0xff]  ;;  %v4338_v12 = vpop.permute.xlu1 %4337 }
 0x448   : > { %3914 = vmatprep.subr.bf16.mxu1 %v3913_v7  ;;  %3942 = vmatprep.subr.bf16.mxu0 %v3941_v10  ;;  %v1390_v7 = vsel %vm1176_vm9, %v4314_v43, %v4315_v8  ;;  %v1417_v10 = vsel %vm1131_vm6, %v4309_v56, %v4310_v50  ;;  %v1893_v50 = vld [vmem:[#allocation13 + $0xbd0] sm:$0xff]  ;;  %v1894_v56 = vld [vmem:[#allocation13 + $0xbd8] sm:$0xff]  ;;  %v3971_v8 = vpack.c.bf16 %v1846_v21, %v1845_v11  ;;  %v4340_v1 = vunpack.i.h.bf16 %v4338_v12 }
 0x449   : > { %v3999_v43 = vpack.c.bf16 %v1876_v54, %v1875_v47  ;;  %v1906_v47 = vld [vmem:[#allocation13 + $0xc38] sm:$0xff] }
 0x44b   : > { %3916 = vmatpush3.bf16.msra.mxu1 %v3915_v16  ;;  %3944 = vmatpush3.bf16.msra.mxu0 %v3943_v63  ;;  %v3959_v16 = vpack.c.bf16 %v1840_v61, %v1839_v35  ;;  %v3987_v63 = vpack.c.bf16 %v1870_v4, %v1869_v17  ;;  %v1878_v35 = vld [vmem:[#allocation13 + $0xb58] sm:$0xff]  ;;  %v1865_v61 = vld [vmem:[#allocation13 + $0xaf0] sm:$0xff] }
 0x44c   : > { %3946 = vmatprep.subr.bf16.mxu0 %v3945_v39  ;;  %3950 = vmatprep.subr.bf16.mxu1 %v3949_v9  ;;  %v1841_v39 = vld [vmem:[#allocation13 + $0xa30] sm:$0xff]  ;;  %v1842_v9 = vld [vmem:[#allocation13 + $0xa38] sm:$0xff]  ;;  %v3977_v5 = vpack.c.bf16 %v1866_v57, %v1865_v61 }
 0x44d   : > { %v3963_v45 = vpack.c.bf16 %v1842_v9, %v1841_v39  ;;  %v1849_v4 = vld [vmem:[#allocation13 + $0xa70] sm:$0xff]  ;;  %v4333_v39 = vpop.permute.xlu0 %4332 }
 0x44e   : > { %2587 = vmatmul.mubr.f32.vlgmr.msra.gmra.mrb[16].mxu1 %v1347_v60  ;;  %v1862_v60 = vld [vmem:[#allocation13 + $0xad8] sm:$0xff]  ;;  %v3979_v9 = vpack.c.bf16 %v1850_v32, %v1849_v4  ;;  %v3067_v4 = vld [vmem:[#allocation14] ss:$0 sm:$0xff] }
 0x44f   : > { %2591 = vmatprep.mubr.f32.mxu1 %v1362_v38  ;;  %3948 = vmatpush3.bf16.msra.mxu0 %v3947_v28  ;;  %v3965_v28 = vpack.c.bf16 %v1860_v52, %v1859_v20  ;;  %v1891_v38 = vld [vmem:[#allocation13 + $0xbc0] sm:$0xff]  ;;  %v3969_v40 = vpack.c.bf16 %v1862_v60, %v1861_v0  ;;  %v4335_v20 = vunpack.i.h.bf16 %v4333_v39  ;;  %v1901_v52 = vld [vmem:[#allocation13 + $0xc10] sm:$0xff] }
 0x450   : > { %3952 = vmatpush3.bf16.msra.mxu1 %v3951_v29  ;;  %3982 = vmatprep.subr.bf16.mxu0 %v3981_v23  ;;  %v3993_v29 = vpack.c.bf16 %v1890_v15, %v1889_v22  ;;  %v1892_v23 = vld [vmem:[#allocation13 + $0xbc8] sm:$0xff]  ;;  %v1902_v22 = vld [vmem:[#allocation13 + $0xc18] sm:$0xff]  ;;  %v4348_v15 = vpop.permute.xlu1 %4347 }
 0x451   : > { %3954 = vmatprep.subr.bf16.mxu1 %v3953_v27  ;;  %v1873_v27 = vld [vmem:[#allocation13 + $0xb30] sm:$0xff]  ;;  %v3997_v42 = vpack.c.bf16 %v1892_v23, %v1891_v38  ;;  %v4343_v0 = vpop.permute.xlu0 %4342  ;;  %v1903_v38 = vld [vmem:[#allocation13 + $0xc20] sm:$0xff]  ;;  %v1904_v23 = vld [vmem:[#allocation13 + $0xc28] sm:$0xff] }
 0x452   : > { %2592 = vmatmul.mubr.f32.gmra.mrb[18].mxu1 %v1348_v2  ;;  %2662 = vmatmul.mubr.f32.vlgmr.msra.gmra.mrb[18].mxu0 %v1375_v3  ;;  %v3995_v41 = vpack.c.bf16 %v1874_v36, %v1873_v27  ;;  %v1896_v2 = vld [vmem:[#allocation13 + $0xbe8] sm:$0xff]  ;;  %v4350_v27 = vunpack.i.h.bf16 %v4348_v15  ;;  %v4349_v36 = vunpack.i.l.bf16 %v4348_v15  ;;  %v4021_v21 = vpack.c.bf16 %v1904_v23, %v1903_v38 }
 0x453   : > { %2666 = vmatprep.mubr.f32.mxu0 %v1390_v7  ;;  %2736 = vmatprep.mubr.f32.mxu1 %v1417_v10  ;;  %v4005_v31 = vpack.c.bf16 %v1896_v2, %v1895_v62  ;;  %v1879_v7 = vld [vmem:[#allocation13 + $0xb60] sm:$0xff]  ;;  %v1880_v10 = vld [vmem:[#allocation13 + $0xb68] sm:$0xff] }
 0x454   : > { %3956 = vmatpush3.bf16.msra.mxu1 %v3955_v44  ;;  %3984 = vmatpush3.bf16.msra.mxu0 %v3983_v6  ;;  %v1848_v44 = vld [vmem:[#allocation13 + $0xa68] sm:$0xff]  ;;  %v3973_v6 = vpack.c.bf16 %v1864_v55, %v1863_v49  ;;  %v1907_v55 = vld [vmem:[#allocation13 + $0xc40] sm:$0xff] }
 0x455   : > { %3958 = vmatprep.subr.bf16.mxu1 %v3957_v59  ;;  %3986 = vmatprep.subr.bf16.mxu0 %v3985_v34  ;;  %v4001_v59 = vpack.c.bf16 %v1894_v56, %v1893_v50  ;;  %v1877_v34 = vld [vmem:[#allocation13 + $0xb50] sm:$0xff]  ;;  %v3975_v3 = vpack.c.bf16 %v1848_v44, %v1847_v58  ;;  %v1908_v50 = vld [vmem:[#allocation13 + $0xc48] sm:$0xff] }
 0x456   : > { %2667 = vmatmul.mubr.f32.gmra.mrb[20].mxu0 %v1376_v51  ;;  %v4003_v17 = vpack.c.bf16 %v1878_v35, %v1877_v34  ;;  %v4007_v51 = vpack.c.bf16 %v1880_v10, %v1879_v7  ;;  %v1909_v56 = vld [vmem:[#allocation13 + $0xc50] sm:$0xff]  ;;  %v1912_v58 = vld [vmem:[#allocation13 + $0xc68] sm:$0xff]  ;;  %v4353_v35 = vpop.permute.xlu0 %4352 }
 0x457   : > { %2811 = vmatprep.mubr.f32.mxu0 %v1445_v13  ;;  %v4334_v13 = vunpack.i.l.bf16 %v4333_v39  ;;  %v4355_v61 = vunpack.i.h.bf16 %v4353_v35  ;;  %v4354_v57 = vunpack.i.l.bf16 %v4353_v35 }
 0x458   : > { %3960 = vmatpush3.bf16.msra.mxu1 %v3959_v16  ;;  %3988 = vmatpush3.bf16.msra.mxu0 %v3987_v63  ;;  %v1899_v16 = vld [vmem:[#allocation13 + $0xc00] sm:$0xff]  ;;  %v1900_v63 = vld [vmem:[#allocation13 + $0xc08] sm:$0xff] }
 0x459   : > { %3962 = vmatprep.subr.bf16.mxu1 %v3961_v19  ;;  %3990 = vmatprep.subr.bf16.mxu0 %v3989_v53  ;;  %v4009_v19 = vpack.c.bf16 %v1898_v14, %v1897_v48  ;;  %v4013_v53 = vpack.c.bf16 %v1900_v63, %v1899_v16  ;;  %v1418_v60 = vsel %vm1131_vm6, %v4334_v13, %v4335_v20 }
 0x45a   : > { %v1460_v62 = vsel %vm1176_vm9, %v4354_v57, %v4355_v61 }
 0x45c   : > { %3964 = vmatpush3.bf16.msra.mxu1 %v3963_v45  ;;  %3992 = vmatpush3.bf16.msra.mxu0 %v3991_v37  ;;  %v4011_v45 = vpack.c.bf16 %v1882_v18, %v1881_v33  ;;  %v4330_v37 = vunpack.i.h.bf16 %v5509_v30  ;;  %v1910_v30 = vld [vmem:[#allocation13 + $0xc58] sm:$0xff] }
 0x45d   : > { %3966 = vmatprep.subr.bf16.mxu1 %v3965_v28  ;;  %3994 = vmatprep.subr.bf16.mxu0 %v3993_v29  ;;  %v4017_v28 = vpack.c.bf16 %v1902_v22, %v1901_v52  ;;  %v4339_v29 = vunpack.i.l.bf16 %v4338_v12 }
 0x45e   : > { %v1431_v11 = vsel %vm1146_vm8, %v4329_v46, %v4330_v37 }
 0x460   : > { %3968 = vmatpush3.bf16.msra.mxu1 %v3967_v25  ;;  %3996 = vmatpush3.bf16.msra.mxu0 %v3995_v41  ;;  %v4345_v25 = vunpack.i.h.bf16 %v4343_v0  ;;  %v4344_v41 = vunpack.i.l.bf16 %v4343_v0 }
 0x461   : > { %3970 = vmatprep.subr.bf16.mxu1 %v3969_v40  ;;  %3998 = vmatprep.subr.bf16.mxu0 %v3997_v42  ;;  %v1446_v40 = vsel %vm1161_vm7, %v4339_v29, %v4340_v1  ;;  %v1905_v42 = vld [vmem:[#allocation13 + $0xc30] sm:$0xff] }
 0x462   : > { %v1432_v54 = vsel %vm1146_vm8, %v4344_v41, %v4345_v25  ;;  %v4025_v49 = vpack.c.bf16 %v1906_v47, %v1905_v42 }
 0x464   : > { %3972 = vmatpush3.bf16.msra.mxu1 %v3971_v8  ;;  %4000 = vmatpush3.bf16.msra.mxu0 %v3999_v43  ;;  %v4033_v8 = vpack.c.bf16 %v1910_v30, %v1909_v56  ;;  %v1911_v43 = vld [vmem:[#allocation13 + $0xc60] sm:$0xff] }
 0x465   : > { %3974 = vmatprep.subr.bf16.mxu1 %v3973_v6  ;;  %4002 = vmatprep.subr.bf16.mxu0 %v4001_v59  ;;  %v4037_v44 = vpack.c.bf16 %v1912_v58, %v1911_v43  ;;  %v1913_v6 = vld [vmem:[#allocation13 + $0xc70] sm:$0xff]  ;;  %v1914_v59 = vld [vmem:[#allocation13 + $0xc78] sm:$0xff] }
 0x466   : > { %v4041_v34 = vpack.c.bf16 %v1914_v59, %v1913_v6 }
 0x468   : > { %3976 = vmatpush3.bf16.msra.mxu1 %v3975_v3  ;;  %4004 = vmatpush3.bf16.msra.mxu0 %v4003_v17 }
 0x469   : > { %3978 = vmatprep.subr.bf16.mxu1 %v3977_v5  ;;  %4006 = vmatprep.subr.bf16.mxu0 %v4005_v31 }
 0x46c   : > { %3980 = vmatpush3.bf16.msra.mxu1 %v3979_v9  ;;  %4008 = vmatpush3.bf16.msra.mxu0 %v4007_v51 }
 0x46d   : > { %4010 = vmatprep.subr.bf16.mxu0 %v4009_v19  ;;  %4014 = vmatprep.subr.bf16.mxu1 %v4013_v53 }
 0x46f   : > { %2737 = vmatmul.mubr.f32.vlgmr.msra.gmra.mrb[20].mxu1 %v5378_v26  ;;  %v1459_v26 = vsel %vm1176_vm9, %v4349_v36, %v4350_v27 }
 0x470   : > { %2741 = vmatprep.mubr.f32.mxu1 %v1418_v60  ;;  %4012 = vmatpush3.bf16.msra.mxu0 %v4011_v45 }
 0x471   : > { %4016 = vmatpush3.bf16.msra.mxu1 %v4013_v53 }
 0x472   : > { %4018 = vmatprep.subr.bf16.mxu1 %v4017_v28 }
 0x473   : > { %2742 = vmatmul.mubr.f32.gmra.mrb[22].mxu1 %v5391_v24  ;;  %2812 = vmatmul.mubr.f32.vlgmr.msra.gmra.mrb[22].mxu0 %v1431_v11  ;;  %v4029_v24 = vpack.c.bf16 %v1908_v50, %v1907_v55 }
 0x474   : > { %2816 = vmatprep.mubr.f32.mxu0 %v1446_v40  ;;  %3610 = vmatprep.mubr.f32.mxu1 %v1459_v26 }
 0x475   : > { %4020 = vmatpush3.bf16.msra.mxu1 %v4017_v28 }
 0x476   : > { %4022 = vmatprep.subr.bf16.mxu1 %v4021_v21 }
 0x477   : > { %2817 = vmatmul.mubr.f32.gmra.mrb[24].mxu0 %v1432_v54 }
 0x479   : > { %4024 = vmatpush3.bf16.msra.mxu1 %v4021_v21 }
 0x47a   : > { %4026 = vmatprep.subr.bf16.mxu1 %v4025_v49 }
 0x47d   : > { %4028 = vmatpush3.bf16.msra.mxu1 %v4025_v49 }
 0x47e   : > { %4030 = vmatprep.subr.bf16.mxu1 %v4029_v24 }
 0x481   : > { %4032 = vmatpush3.bf16.msra.mxu1 %v4029_v24 }
 0x482   : > { %4034 = vmatprep.subr.bf16.mxu1 %v4033_v8 }
 0x485   : > { %4036 = vmatpush3.bf16.msra.mxu1 %v4033_v8 }
 0x486   : > { %4038 = vmatprep.subr.bf16.mxu1 %v4037_v44 }
 0x489   : > { %4040 = vmatpush3.bf16.msra.mxu1 %v4037_v44 }
 0x48a   : > { %4042 = vmatprep.subr.bf16.mxu1 %v4041_v34 }
 0x48d   : > { %4044 = vmatpush3.bf16.msra.mxu1 %v4041_v34 }
 0x490   : > { %3611 = vmatmul.mubr.f32.vlgmr.msra.gmra.mrb[24].mxu1 %v1460_v62 }
 0x49e   : > { %v3117_v2 = vpop.f32.mrb[0].mxu1 }
 0x49f   : > { %v3118_v3 = vpop.f32.mrb[1].mxu1 }
 0x4a0   : > { %v3119_v17 = vadd.f32 %v3118_v3, %v3117_v2 }
 0x4a2   : > { %v3155_v32 = vpop.f32.mrb[2].mxu0  ;;  %v1989_v31 = vadd.f32 %v3119_v17, %v3067_v4 }
 0x4a3   : > { %v3156_v5 = vpop.f32.mrb[3].mxu0 }
 0x4a4   : > { %v3157_v7 = vadd.f32 %v3156_v5, %v3155_v32 }
 0x4a6   : > { %v2064_v10 = vadd.f32 %v3157_v7, %v1989_v31  ;;  %v3120_v48 = vpop.f32.mrb[2].mxu1 }
 0x4a7   : > { %v3121_v12 = vpop.f32.mrb[3].mxu1 }
 0x4a8   : > { %v3122_v14 = vadd.f32 %v3121_v12, %v3120_v48 }
 0x4aa   : > { %v3158_v16 = vpop.f32.mrb[4].mxu0  ;;  %v1994_v39 = vadd.f32 %v3122_v14, %v3067_v4 }
 0x4ab   : > { %v3159_v63 = vpop.f32.mrb[5].mxu0 }
 0x4ac   : > { %v3160_v9 = vadd.f32 %v3159_v63, %v3158_v16 }
 0x4ae   : > { %v2069_v51 = vadd.f32 %v3160_v9, %v1994_v39 }
 0x4be   : > { %v3193_v19 = vpop.f32.mrb[4].mxu1 }
 0x4bf   : > { %v3194_v53 = vpop.f32.mrb[5].mxu1 }
 0x4c0   : > { %v3195_v33 = vadd.f32 %v3194_v53, %v3193_v19 }
 0x4c2   : > { %v2139_v18 = vadd.f32 %v3195_v33, %v2064_v10  ;;  %v3196_v20 = vpop.f32.mrb[6].mxu1  ;;  %v3231_v13 = vpop.f32.mrb[6].mxu0 }
 0x4c3   : > { %v3197_v52 = vpop.f32.mrb[7].mxu1  ;;  %v3232_v22 = vpop.f32.mrb[7].mxu0 }
 0x4c4   : > { %v3198_v15 = vadd.f32 %v3197_v52, %v3196_v20  ;;  %v3233_v45 = vadd.f32 %v3232_v22, %v3231_v13 }
 0x4c6   : > { %v2144_v37 = vadd.f32 %v3198_v15, %v2069_v51  ;;  %v2214_v46 = vadd.f32 %v3233_v45, %v2139_v18  ;;  %v3234_v1 = vpop.f32.mrb[8].mxu0 }
 0x4c7   : > { %v3235_v28 = vpop.f32.mrb[9].mxu0 }
 0x4c8   : > { %v3236_v29 = vadd.f32 %v3235_v28, %v3234_v1 }
 0x4ca   : > { %v2219_v27 = vadd.f32 %v3236_v29, %v2144_v37 }
 0x4df   : > { %v3269_v36 = vpop.f32.mrb[8].mxu1 }
 0x4e0   : > { %v3270_v0 = vpop.f32.mrb[9].mxu1 }
 0x4e1   : > { %v3271_v60 = vadd.f32 %v3270_v0, %v3269_v36 }
 0x4e3   : > { %v2289_v38 = vadd.f32 %v3271_v60, %v2214_v46  ;;  %v3272_v23 = vpop.f32.mrb[10].mxu1  ;;  %v3307_v25 = vpop.f32.mrb[10].mxu0 }
 0x4e4   : > { %v3273_v41 = vpop.f32.mrb[11].mxu1  ;;  %v3308_v11 = vpop.f32.mrb[11].mxu0 }
 0x4e5   : > { %v3274_v21 = vadd.f32 %v3273_v41, %v3272_v23  ;;  %v3309_v40 = vadd.f32 %v3308_v11, %v3307_v25 }
 0x4e7   : > { %v2294_v26 = vadd.f32 %v3274_v21, %v2219_v27  ;;  %v2364_v42 = vadd.f32 %v3309_v40, %v2289_v38  ;;  %v3310_v47 = vpop.f32.mrb[12].mxu0 }
 0x4e8   : > { %v3311_v54 = vpop.f32.mrb[13].mxu0 }
 0x4e9   : > { %v3312_v49 = vadd.f32 %v3311_v54, %v3310_v47 }
 0x4eb   : > { %v2369_v55 = vadd.f32 %v3312_v49, %v2294_v26 }
 0x500   : > { %v3345_v50 = vpop.f32.mrb[12].mxu1 }
 0x501   : > { %v3346_v24 = vpop.f32.mrb[13].mxu1 }
 0x502   : > { %v3347_v56 = vadd.f32 %v3346_v24, %v3345_v50 }
 0x504   : > { %v2439_v30 = vadd.f32 %v3347_v56, %v2364_v42  ;;  %v3348_v8 = vpop.f32.mrb[14].mxu1  ;;  %v3383_v43 = vpop.f32.mrb[14].mxu0 }
 0x505   : > { %v3349_v58 = vpop.f32.mrb[15].mxu1  ;;  %v3384_v44 = vpop.f32.mrb[15].mxu0 }
 0x506   : > { %v3350_v6 = vadd.f32 %v3349_v58, %v3348_v8  ;;  %v3385_v59 = vadd.f32 %v3384_v44, %v3383_v43 }
 0x508   : > { %v2444_v34 = vadd.f32 %v3350_v6, %v2369_v55  ;;  %v2514_v35 = vadd.f32 %v3385_v59, %v2439_v30  ;;  %v3386_v61 = vpop.f32.mrb[16].mxu0 }
 0x509   : > { %v3387_v57 = vpop.f32.mrb[17].mxu0 }
 0x50a   : > { %v3388_v62 = vadd.f32 %v3387_v57, %v3386_v61 }
 0x50c   : > { %v2519_v2 = vadd.f32 %v3388_v62, %v2444_v34 }
 0x521   : > { %v3421_v3 = vpop.f32.mrb[16].mxu1 }
 0x522   : > { %v3422_v17 = vpop.f32.mrb[17].mxu1 }
 0x523   : > { %v3423_v4 = vadd.f32 %v3422_v17, %v3421_v3 }
 0x525   : > { %v2589_v32 = vadd.f32 %v3423_v4, %v2514_v35  ;;  %v3424_v5 = vpop.f32.mrb[18].mxu1  ;;  %v3459_v31 = vpop.f32.mrb[18].mxu0 }
 0x526   : > { %v3425_v7 = vpop.f32.mrb[19].mxu1  ;;  %v3460_v10 = vpop.f32.mrb[19].mxu0 }
 0x527   : > { %v3426_v48 = vadd.f32 %v3425_v7, %v3424_v5  ;;  %v3461_v12 = vadd.f32 %v3460_v10, %v3459_v31 }
 0x529   : > { %v2594_v14 = vadd.f32 %v3426_v48, %v2519_v2  ;;  %v2664_v16 = vadd.f32 %v3461_v12, %v2589_v32  ;;  %v3462_v63 = vpop.f32.mrb[20].mxu0 }
 0x52a   : > { %v3463_v39 = vpop.f32.mrb[21].mxu0 }
 0x52b   : > { %v3464_v9 = vadd.f32 %v3463_v39, %v3462_v63 }
 0x52d   : > { %v2669_v51 = vadd.f32 %v3464_v9, %v2594_v14 }
 0x542   : > { %v3497_v19 = vpop.f32.mrb[20].mxu1 }
 0x543   : > { %v3498_v53 = vpop.f32.mrb[21].mxu1 }
 0x544   : > { %v3499_v33 = vadd.f32 %v3498_v53, %v3497_v19 }
 0x546   : > { %v2739_v18 = vadd.f32 %v3499_v33, %v2664_v16  ;;  %v3500_v20 = vpop.f32.mrb[22].mxu1  ;;  %v3535_v13 = vpop.f32.mrb[22].mxu0 }
 0x547   : > { %v3501_v52 = vpop.f32.mrb[23].mxu1  ;;  %v3536_v22 = vpop.f32.mrb[23].mxu0 }
 0x548   : > { %v3502_v15 = vadd.f32 %v3501_v52, %v3500_v20  ;;  %v3537_v45 = vadd.f32 %v3536_v22, %v3535_v13 }
 0x54a   : > { %v2744_v37 = vadd.f32 %v3502_v15, %v2669_v51  ;;  %v3538_v46 = vpop.f32.mrb[24].mxu0  ;;  %v2814_v1 = vadd.f32 %v3537_v45, %v2739_v18 }
 0x54b   : > { %v3539_v28 = vpop.f32.mrb[25].mxu0 }
 0x54c   : > { %v3540_v29 = vadd.f32 %v3539_v28, %v3538_v46 }
 0x54e   : > { %v2819_v27 = vadd.f32 %v3540_v29, %v2744_v37 }
 0x563   : > { %v3612_v36 = vpop.f32.mrb[24].mxu1 }
 0x564   : > { %v2894_v0 = vadd.f32 %v3612_v36, %v2819_v27  ;;  %v2888_v60 = vpop.f32.mrb[25].mxu1 }
 0x565   : > { %v2889_v38 = vadd.f32 %v2888_v60, %v2814_v1 }
 0x566   : > { %v2898_v23 = vadd.f32 3.0, %v2894_v0 }
 0x567   : > { %v2897_v25 = vadd.f32 3.0, %v2889_v38 }
 0x568   : > { %v2900_v41 = vmax.f32 %v2898_v23, 0.0 }
 0x569   : > { %v2899_v11 = vmax.f32 %v2897_v25, 0.0 }
 0x56a   : > { %v2902_v21 = vmin.f32 %v2900_v41, 6.0 }
 0x56b   : > { %v2901_v40 = vmin.f32 %v2899_v11, 6.0 }
 0x56c   : > { %v2904_v26 = vmul.f32 %v2902_v21, %v2894_v0 }
 0x56d   : > { %v2903_v42 = vmul.f32 %v2901_v40, %v2889_v38 }
 0x56e   : > { %v2906_v47 = vmul.f32 0.16666667, %v2904_v26 }
 0x56f   : > { %v2905_v54 = vmul.f32 0.16666667, %v2903_v42 }
 0x570   : > { %2908 = vst [vmem:[%s338_s14 + $0x8] sm:$0xff] %v2906_v47 }
 0x571   : > { %2907 = vst [vmem:[%s338_s14] sm:$0xff] %v2905_v54 }
 0x572   : > { %4539 = shalt.err (!%p4536_p8)
}
 0x573   : > { %s4540_s8 = scalar_lea.hbm %s5529_s25, 256  ;;  %s4544_s14 = scalar_lea.hbm %s5580_s6, 512 }
 0x574   : > { %p4541_p6 = scmp.ne.s32.totalorder %s5529_s25, %s4540_s8  ;;  %p4545_p3 = scmp.lt.u32.totalorder %s5529_s25, %s5580_s6 }
 0x575   : > { %p4546_p5 = scmp.lt.u32.totalorder %s4544_s14, %s4540_s8  ;;  %p4548_p7 = scmp.lt.u32.totalorder %s4540_s8, %s5529_s25 }
 0x576   : > { %p4542_p10 = pnand %p4541_p6, %p5599_p4 }
 0x577   : > { %p4547_p9 = por %p4546_p5, %p4545_p3 }
 0x578   : > { %p4543_p11 = pneg %p4542_p10 }
 0x579   : > { %p4549_p12 = por %p4548_p7, %p4547_p9 }
 0x57b   : > { %p4550_p1 = pnand %p4549_p12, %p4543_p11 }
 0x57d   : > { %4553 = shalt.err (!%p4550_p1)
}
 0x57e   : > { %s4626_s20 = smov 128  }
 0x57f   : > { %4067 = dma.vmem_to_hbm [thread:$0]  (%p5599_p4), %s5524_s30, 256, %s5529_s25, %s2910_s13, %s4626_s20, %s4626_s20, %s4615_s28  }
 0x580 PF: > { %s2938_s18 = sand.u32 1, %s4592_s21   ;;  %p5600_p13 = scmp.ne.s32.totalorder %s5590_s10, 0 }
 0x581   : > { %p5601_p0 = scmp.ge.s32.totalorder %s4604_s24, 2  ;;  %s2939_s27 = scalar_lea.sflag [#allocation7], %s2938_s18 }
 0x583   : > { %p4090_p2 = pnand %p5601_p0, %p5600_p13 }
 0x585   : > { %4587 = dma.done.wait (!%p4090_p2), %s2939_s27, 256  }
 0x586   : > { %4589 = vsyncadd (!%p4090_p2), %s2939_s27, 4294967040  ;;  %p22_p8 = scmp.ge.s32.totalorder %s4830_s7, 4   ;;  %s5602_s21 = smov %s4596_s22 }
 0x587   : > { %s5603_s22 = smov %s4600_s23  ;;  %s5604_s23 = smov %s4842_s17 }
 0x588   : > { %s5605_s24 = smov %s4830_s7  ;;  %24 = sbr.rel (!%p22_p8) target bundleno = 8 (0x8), region = 109 }
 0x58f   :  { %2944 = vsyncpa [#allocation6], 1 }
 0x590   :  { %2946 = vsyncpa [#allocation6 + $0x1], 1 }
 0x591   :  { %2947 = vsyncpa [#allocation9], 1 }
 0x592   :  { %2948 = vsyncpa [#allocation12], 1 }
 0x593   :  { %2949 = vsyncpa [#allocation15], 1 }
 0x594   :  { %2950 = vsyncpa [#allocation7], 1 }
 0x595   :  { %2952 = vsyncpa [#allocation7 + $0x1], 1 }

</bundles_post_ra>
